<compile_context>
chip_gen: v6e
topology: v6e:2x2x1
jax: 0.10.0
libtpu: 0.0.40
codegen_flags: <defaults>
</compile_context>

<pallas_src>
import functools

import jax
import jax.numpy as jnp
import numpy as np
from jax import lax
from jax.experimental import pallas as pl
from jax.experimental.pallas import tpu as pltpu


def _pair(v):
    if isinstance(v, (tuple, list)):
        return tuple(v)
    return (v, v)


def circular_pad(x, pad=0):
    """Circular padding of the spherical 2-d map. x: NCHW."""
    # TODO(synk): surfify's circular_pad may treat the elevation/pole axis
    # specially; plain wrap padding on both spatial axes is used here.
    pad_az, pad_el = _pair(pad)
    if pad_az == 0 and pad_el == 0:
        return x
    return jnp.pad(x, ((0, 0), (0, 0), (pad_el, pad_el), (pad_az, pad_az)),
                   mode="wrap")


def _phase_taps(K, s, zp):
    """Polyphase tables for one axis of a transposed convolution.

    Output index o = s*u + ph reads input index i = u + q(ph) - t with kernel
    tap k = r(ph) + s*t.  Returns per-phase (q, [taps k]) plus the min/max of
    (q - t) over all phases (halo extents).
    """
    phases, offs = [], []
    for ph in range(s):
        q, r = divmod(ph + zp, s)
        taps = list(range(r, K, s))
        phases.append((q, taps))
        offs.extend(q - t for t in range(len(taps)))
    lo = min(offs) if offs else 0
    hi = max(offs) if offs else 0
    return phases, lo, hi


def ico_spma_conv_transpose(x, weight, bias, *, kernel_size, stride=1,
                            pad=0, zero_pad=0, row_tile=16, use_bf16=False):
    """x: (N, Cin, H, W); weight: (Cin, Cout, K, K) (PyTorch ConvTranspose2d
    layout); bias: (Cout,). Returns (N, Cout, Ho, Wo) in NCHW."""
    K, s, zp = int(kernel_size), int(stride), int(zero_pad)
    out_dtype = x.dtype

    # 1) circular padding of the spherical map (glue, plain JAX, small array).
    x = circular_pad(x, pad)
    N, Cin, H, W = x.shape
    Cout = weight.shape[1]

    # TODO(synk): torch's `output_size` / `output_shape` (output_padding) is
    # not supported; output shape follows the standard ConvTranspose2d formula.
    Ho = (H - 1) * s + K - 2 * zp
    Wo = (W - 1) * s + K - 2 * zp

    phases, lo, hi = _phase_taps(K, s, zp)

    U = -(-Ho // s)                    # phase-rows per output phase
    V = -(-Wo // s)                    # phase-cols per output phase
    TU = min(int(row_tile), U)         # output phase-row tile
    n_ut = -(-U // TU)
    U_pad = n_ut * TU

    # Zero-pad the (small, undilated) input so every tap read is in-bounds;
    # round the width up to a multiple of 8 so the in-kernel (rows, W, Cin)
    # <-> (rows*W, Cin) flattens stay sublane-tile friendly.
    pad_top = max(0, -lo)
    pad_bot = max(0, (U_pad - 1) + hi - (H - 1))
    pad_left = max(0, -lo)
    pad_right = max(0, (V - 1) + hi - (W - 1))
    Wp = pad_left + W + pad_right
    Wp8 = -(-Wp // 8) * 8
    pad_right += Wp8 - Wp
    Hp = pad_top + H + pad_bot

    TIH = TU + hi - lo                 # input rows (with halo) per output tile
    base = lo + pad_top                # static band-start offset (>= 0)
    F = K * K * Cout                   # GEMM RHS width (= 128 here)
    VC = V * Cout                      # lane-dense width of one output phase
    FO = s * s * VC                    # lane-dense width of one output row

    # Layout plumbing on the SMALL arrays only: NHWC input, (Cin, K*K*Cout)
    # weight (no spatial flip needed in this formulation), f32 tiled bias.
    gemm_dtype = jnp.bfloat16 if use_bf16 else x.dtype
    x_nhwc = jnp.transpose(x, (0, 2, 3, 1))
    x_nhwc = jnp.pad(x_nhwc, ((0, 0), (pad_top, pad_bot),
                              (pad_left, pad_right), (0, 0)))
    x_nhwc = x_nhwc.astype(gemm_dtype)
    w_mat = jnp.transpose(weight, (0, 2, 3, 1)).reshape(Cin, F)
    w_mat = w_mat.astype(gemm_dtype)
    # bias tiled over V so lane l = v*Cout + co carries bias[co].
    b_arr = jnp.tile(bias.astype(jnp.float32), V).reshape(1, VC)

    def kernel(x_ref, w_ref, b_ref, o_ref, p3_ref):
        t = pl.program_id(1)
        start = t * TU + base
        if TU % 8 == 0 and base % 8 == 0:
            start = pl.multiple_of(start, 8)

        # One wide GEMM covering every tap / output channel of this row band;
        # result lands in VMEM scratch (f32 accumulation).
        xb = x_ref[0, pl.ds(start, TIH), :, :]               # (TIH, Wp8, Cin)
        p3_ref[...] = jnp.dot(
            xb.reshape(TIH * Wp8, Cin), w_ref[...],
            preferred_element_type=jnp.float32).reshape(TIH, Wp8, F)

        bias_row = b_ref[...]                                 # (1, VC) f32

        # col2im: each output phase = sum of ceil(K/s)^2 shifted tap slices
        # read back from the scratch, then one lane-dense 128-wide store per
        # phase at an aligned lane offset.
        for ph in range(s):
            q_h, taps_h = phases[ph]
            for pw in range(s):
                q_w, taps_w = phases[pw]
                acc = None
                for th, kh in enumerate(taps_h):
                    a = q_h - th - lo              # static row offset in band
                    for tw, kw in enumerate(taps_w):
                        cb = q_w - tw + pad_left   # static col offset
                        cl = (kh * K + kw) * Cout  # static lane offset
                        tap = p3_ref[a:a + TU, cb:cb + V, cl:cl + Cout]
                        acc = tap if acc is None else acc + tap
                if acc is None:
                    acc = jnp.zeros((TU, V, Cout), jnp.float32)
                c0 = (ph * s + pw) * VC
                o_ref[0, :, c0:c0 + VC] = (
                    acc.reshape(TU, VC) + bias_row).astype(o_ref.dtype)

    out = pl.pallas_call(
        kernel,
        out_shape=jax.ShapeDtypeStruct((N, U_pad, FO), out_dtype),
        grid=(N, n_ut),
        in_specs=[
            pl.BlockSpec((1, Hp, Wp8, Cin), lambda n, t: (n, 0, 0, 0)),
            pl.BlockSpec((Cin, F), lambda n, t: (0, 0)),
            pl.BlockSpec((1, VC), lambda n, t: (0, 0)),
        ],
        out_specs=pl.BlockSpec((1, TU, FO), lambda n, t: (n, t, 0)),
        scratch_shapes=[pltpu.VMEM((TIH, Wp8, F), jnp.float32)],
        compiler_params=pltpu.CompilerParams(
            dimension_semantics=("parallel", "parallel")),
    )(x_nhwc, w_mat, b_arr)

    # Interleave the s*s output phases back into (N, Ho, Wo, Cout) -> NCHW
    # (cheap XLA ops on the small final output only).  Lane order per output
    # phase-row was [ph, pw, v, co].
    y = out.reshape(N, U_pad, s, s, V, Cout)          # (n, u, ph, pw, v, co)
    y = jnp.transpose(y, (0, 1, 2, 4, 3, 5))          # (n, u, ph, v, pw, co)
    y = y.reshape(N, U_pad * s, V * s, Cout)[:, :Ho, :Wo, :]
    return jnp.transpose(y, (0, 3, 1, 2))             # NCHW


if __name__ == "__main__":
    # Module config from the docstring example (smaller spatial size).
    in_feats, out_feats = 16, 8
    kernel_size, stride, zero_pad, pad = 4, 2, 3, 1

    key = jax.random.PRNGKey(0)
    kx, kw, kb = jax.random.split(key, 3)

    # Deterministic synthetic parameters (PyTorch ConvTranspose2d shapes):
    # weight (in_feats, out_feats, K, K), bias (out_feats,).
    fan = out_feats * kernel_size * kernel_size
    bound = 1.0 / np.sqrt(fan)
    weight = jax.random.uniform(
        kw, (in_feats, out_feats, kernel_size, kernel_size),
        jnp.float32, -bound, bound)
    bias = jax.random.uniform(kb, (out_feats,), jnp.float32, -bound, bound)

    # Input (NCHW, like the PyTorch module).
    x = jax.random.normal(kx, (2, in_feats, 16, 16), jnp.float32)

    fwd = jax.jit(functools.partial(
        ico_spma_conv_transpose, kernel_size=kernel_size, stride=stride,
        pad=pad, zero_pad=zero_pad))
    out = jax.block_until_ready(fwd(x, weight, bias))

    # Reference: circular pad + lax transposed conv (lhs_dilation form),
    # exact f32 accumulation.
    xc = circular_pad(x, pad)
    w_conv = jnp.transpose(jnp.flip(weight, axis=(2, 3)), (1, 0, 2, 3))
    ref = lax.conv_general_dilated(
        xc, w_conv, window_strides=(1, 1),
        padding=[(kernel_size - 1 - zero_pad,) * 2] * 2,
        lhs_dilation=(stride, stride),
        dimension_numbers=("NCHW", "OIHW", "NCHW"),
        precision=lax.Precision.HIGHEST,
    ) + bias[None, :, None, None]

    assert out.shape == (2, out_feats, 32, 32), out.shape
    np.testing.assert_allclose(np.asarray(out), np.asarray(ref),
                               rtol=5e-4, atol=5e-4)
    print("KERNEL_OK")
</pallas_src>

<mosaic_0001>
module attributes {stable_mosaic.version = 11 : i64} {
  func.func @kernel(%arg0: i32, %arg1: i32, %arg2: memref<1x18x24x16xf32, #tpu.memory_space<vmem>>, %arg3: memref<16x128xf32, #tpu.memory_space<vmem>>, %arg4: memref<1x128xf32, #tpu.memory_space<vmem>>, %arg5: memref<1x16x512xf32, #tpu.memory_space<vmem>>, %arg6: memref<18x24x128xf32, #tpu.memory_space<vmem>>) attributes {dimension_semantics = [#tpu.dimension_semantics<parallel>, #tpu.dimension_semantics<parallel>], iteration_bounds = array<i64: 2, 1>, scalar_prefetch = 0 : i64, scratch_operands = 1 : i64, tpu.core_type = #tpu.core_type<tc>, window_params = [{transform_indices = @transform_0, window_bounds = array<i64: 1, 18, 24, 16>}, {pipeline_mode = #tpu.pipeline_mode<synchronous>, transform_indices = @transform_1, window_bounds = array<i64: 16, 128>}, {pipeline_mode = #tpu.pipeline_mode<synchronous>, transform_indices = @transform_2, window_bounds = array<i64: 1, 128>}, {transform_indices = @transform_3, window_bounds = array<i64: 1, 16, 512>}]} {
    %c16_i32 = arith.constant 16 : i32
    %0 = arith.muli %arg1, %c16_i32 : i32
    %c0_i32 = arith.constant 0 : i32
    %1 = arith.addi %0, %c0_i32 : i32
    %2 = tpu.assume_multiple %1, 8 : i32
    %c0 = arith.constant 0 : index
    %3 = arith.index_cast %2 : i32 to index
    %c0_0 = arith.constant 0 : index
    %c0_1 = arith.constant 0 : index
    %4 = vector.load %arg2[%c0, %3, %c0_0, %c0_1] : memref<1x18x24x16xf32, #tpu.memory_space<vmem>>, vector<1x18x24x16xf32>
    %5 = vector.shape_cast %4 : vector<1x18x24x16xf32> to vector<18x24x16xf32>
    %6 = vector.shape_cast %5 : vector<18x24x16xf32> to vector<432x16xf32>
    %c0_2 = arith.constant 0 : index
    %c0_3 = arith.constant 0 : index
    %7 = vector.load %arg3[%c0_2, %c0_3] : memref<16x128xf32, #tpu.memory_space<vmem>>, vector<16x128xf32>
    %cst = arith.constant dense<0.000000e+00> : vector<432x128xf32>
    %8 = tpu.matmul %6, %7, %cst {dimension_numbers = #tpu.dot_dimension_numbers<[1], [0], [0], [1], [0, 0, 1, 1], [], []>} : vector<432x16xf32>, vector<16x128xf32>, vector<432x128xf32> -> vector<432x128xf32>
    %9 = vector.shape_cast %8 : vector<432x128xf32> to vector<18x24x128xf32>
    %c0_4 = arith.constant 0 : index
    %c0_5 = arith.constant 0 : index
    %c0_6 = arith.constant 0 : index
    %10 = vector.load %arg6[%c0_4, %c0_5, %c0_6] : memref<18x24x128xf32, #tpu.memory_space<vmem>>, vector<18x24x128xf32>
    tpu.vector_store %arg6[%c0_4, %c0_5, %c0_6], %9 {strides = array<i32>} : memref<18x24x128xf32, #tpu.memory_space<vmem>>, vector<18x24x128xf32>,
    %c0_7 = arith.constant 0 : index
    %c0_8 = arith.constant 0 : index
    %11 = vector.load %arg4[%c0_7, %c0_8] : memref<1x128xf32, #tpu.memory_space<vmem>>, vector<1x128xf32>
    %c1 = arith.constant 1 : index
    %c1_9 = arith.constant 1 : index
    %c40 = arith.constant 40 : index
    %12 = vector.load %arg6[%c1, %c1_9, %c40] : memref<18x24x128xf32, #tpu.memory_space<vmem>>, vector<16x16x8xf32>
    %c1_10 = arith.constant 1 : index
    %c0_11 = arith.constant 0 : index
    %c56 = arith.constant 56 : index
    %13 = vector.load %arg6[%c1_10, %c0_11, %c56] : memref<18x24x128xf32, #tpu.memory_space<vmem>>, vector<16x16x8xf32>
    %14 = arith.addf %12, %13 : vector<16x16x8xf32>
    %c0_12 = arith.constant 0 : index
    %c1_13 = arith.constant 1 : index
    %c104 = arith.constant 104 : index
    %15 = vector.load %arg6[%c0_12, %c1_13, %c104] : memref<18x24x128xf32, #tpu.memory_space<vmem>>, vector<16x16x8xf32>
    %16 = arith.addf %14, %15 : vector<16x16x8xf32>
    %c0_14 = arith.constant 0 : index
    %c0_15 = arith.constant 0 : index
    %c120 = arith.constant 120 : index
    %17 = vector.load %arg6[%c0_14, %c0_15, %c120] : memref<18x24x128xf32, #tpu.memory_space<vmem>>, vector<16x16x8xf32>
    %18 = arith.addf %16, %17 : vector<16x16x8xf32>
    %19 = vector.shape_cast %18 : vector<16x16x8xf32> to vector<16x128xf32>
    %20 = vector.broadcast %11 : vector<1x128xf32> to vector<16x128xf32>
    %21 = arith.addf %19, %20 : vector<16x128xf32>
    %c0_16 = arith.constant 0 : index
    %c0_17 = arith.constant 0 : index
    %c0_18 = arith.constant 0 : index
    %22 = vector.load %arg5[%c0_16, %c0_17, %c0_18] : memref<1x16x512xf32, #tpu.memory_space<vmem>>, vector<1x16x128xf32>
    %23 = vector.shape_cast %22 : vector<1x16x128xf32> to vector<16x128xf32>
    %24 = vector.shape_cast %21 : vector<16x128xf32> to vector<1x16x128xf32>
    tpu.vector_store %arg5[%c0_16, %c0_17, %c0_18], %24 {strides = array<i32>} : memref<1x16x512xf32, #tpu.memory_space<vmem>>, vector<1x16x128xf32>,
    %c1_19 = arith.constant 1 : index
    %c2 = arith.constant 2 : index
    %c32 = arith.constant 32 : index
    %25 = vector.load %arg6[%c1_19, %c2, %c32] : memref<18x24x128xf32, #tpu.memory_space<vmem>>, vector<16x16x8xf32>
    %c1_20 = arith.constant 1 : index
    %c1_21 = arith.constant 1 : index
    %c48 = arith.constant 48 : index
    %26 = vector.load %arg6[%c1_20, %c1_21, %c48] : memref<18x24x128xf32, #tpu.memory_space<vmem>>, vector<16x16x8xf32>
    %27 = arith.addf %25, %26 : vector<16x16x8xf32>
    %c0_22 = arith.constant 0 : index
    %c2_23 = arith.constant 2 : index
    %c96 = arith.constant 96 : index
    %28 = vector.load %arg6[%c0_22, %c2_23, %c96] : memref<18x24x128xf32, #tpu.memory_space<vmem>>, vector<16x16x8xf32>
    %29 = arith.addf %27, %28 : vector<16x16x8xf32>
    %c0_24 = arith.constant 0 : index
    %c1_25 = arith.constant 1 : index
    %c112 = arith.constant 112 : index
    %30 = vector.load %arg6[%c0_24, %c1_25, %c112] : memref<18x24x128xf32, #tpu.memory_space<vmem>>, vector<16x16x8xf32>
    %31 = arith.addf %29, %30 : vector<16x16x8xf32>
    %32 = vector.shape_cast %31 : vector<16x16x8xf32> to vector<16x128xf32>
    %33 = vector.broadcast %11 : vector<1x128xf32> to vector<16x128xf32>
    %34 = arith.addf %32, %33 : vector<16x128xf32>
    %c0_26 = arith.constant 0 : index
    %c0_27 = arith.constant 0 : index
    %c128 = arith.constant 128 : index
    %35 = vector.load %arg5[%c0_26, %c0_27, %c128] : memref<1x16x512xf32, #tpu.memory_space<vmem>>, vector<1x16x128xf32>
    %36 = vector.shape_cast %35 : vector<1x16x128xf32> to vector<16x128xf32>
    %37 = vector.shape_cast %34 : vector<16x128xf32> to vector<1x16x128xf32>
    tpu.vector_store %arg5[%c0_26, %c0_27, %c128], %37 {strides = array<i32>} : memref<1x16x512xf32, #tpu.memory_space<vmem>>, vector<1x16x128xf32>,
    %c2_28 = arith.constant 2 : index
    %c1_29 = arith.constant 1 : index
    %c8 = arith.constant 8 : index
    %38 = vector.load %arg6[%c2_28, %c1_29, %c8] : memref<18x24x128xf32, #tpu.memory_space<vmem>>, vector<16x16x8xf32>
    %c2_30 = arith.constant 2 : index
    %c0_31 = arith.constant 0 : index
    %c24 = arith.constant 24 : index
    %39 = vector.load %arg6[%c2_30, %c0_31, %c24] : memref<18x24x128xf32, #tpu.memory_space<vmem>>, vector<16x16x8xf32>
    %40 = arith.addf %38, %39 : vector<16x16x8xf32>
    %c1_32 = arith.constant 1 : index
    %c1_33 = arith.constant 1 : index
    %c72 = arith.constant 72 : index
    %41 = vector.load %arg6[%c1_32, %c1_33, %c72] : memref<18x24x128xf32, #tpu.memory_space<vmem>>, vector<16x16x8xf32>
    %42 = arith.addf %40, %41 : vector<16x16x8xf32>
    %c1_34 = arith.constant 1 : index
    %c0_35 = arith.constant 0 : index
    %c88 = arith.constant 88 : index
    %43 = vector.load %arg6[%c1_34, %c0_35, %c88] : memref<18x24x128xf32, #tpu.memory_space<vmem>>, vector<16x16x8xf32>
    %44 = arith.addf %42, %43 : vector<16x16x8xf32>
    %45 = vector.shape_cast %44 : vector<16x16x8xf32> to vector<16x128xf32>
    %46 = vector.broadcast %11 : vector<1x128xf32> to vector<16x128xf32>
    %47 = arith.addf %45, %46 : vector<16x128xf32>
    %c0_36 = arith.constant 0 : index
    %c0_37 = arith.constant 0 : index
    %c256 = arith.constant 256 : index
    %48 = vector.load %arg5[%c0_36, %c0_37, %c256] : memref<1x16x512xf32, #tpu.memory_space<vmem>>, vector<1x16x128xf32>
    %49 = vector.shape_cast %48 : vector<1x16x128xf32> to vector<16x128xf32>
    %50 = vector.shape_cast %47 : vector<16x128xf32> to vector<1x16x128xf32>
    tpu.vector_store %arg5[%c0_36, %c0_37, %c256], %50 {strides = array<i32>} : memref<1x16x512xf32, #tpu.memory_space<vmem>>, vector<1x16x128xf32>,
    %c2_38 = arith.constant 2 : index
    %c2_39 = arith.constant 2 : index
    %c0_40 = arith.constant 0 : index
    %51 = vector.load %arg6[%c2_38, %c2_39, %c0_40] : memref<18x24x128xf32, #tpu.memory_space<vmem>>, vector<16x16x8xf32>
    %c2_41 = arith.constant 2 : index
    %c1_42 = arith.constant 1 : index
    %c16 = arith.constant 16 : index
    %52 = vector.load %arg6[%c2_41, %c1_42, %c16] : memref<18x24x128xf32, #tpu.memory_space<vmem>>, vector<16x16x8xf32>
    %53 = arith.addf %51, %52 : vector<16x16x8xf32>
    %c1_43 = arith.constant 1 : index
    %c2_44 = arith.constant 2 : index
    %c64 = arith.constant 64 : index
    %54 = vector.load %arg6[%c1_43, %c2_44, %c64] : memref<18x24x128xf32, #tpu.memory_space<vmem>>, vector<16x16x8xf32>
    %55 = arith.addf %53, %54 : vector<16x16x8xf32>
    %c1_45 = arith.constant 1 : index
    %c1_46 = arith.constant 1 : index
    %c80 = arith.constant 80 : index
    %56 = vector.load %arg6[%c1_45, %c1_46, %c80] : memref<18x24x128xf32, #tpu.memory_space<vmem>>, vector<16x16x8xf32>
    %57 = arith.addf %55, %56 : vector<16x16x8xf32>
    %58 = vector.shape_cast %57 : vector<16x16x8xf32> to vector<16x128xf32>
    %59 = vector.broadcast %11 : vector<1x128xf32> to vector<16x128xf32>
    %60 = arith.addf %58, %59 : vector<16x128xf32>
    %c0_47 = arith.constant 0 : index
    %c0_48 = arith.constant 0 : index
    %c384 = arith.constant 384 : index
    %61 = vector.load %arg5[%c0_47, %c0_48, %c384] : memref<1x16x512xf32, #tpu.memory_space<vmem>>, vector<1x16x128xf32>
    %62 = vector.shape_cast %61 : vector<1x16x128xf32> to vector<16x128xf32>
    %63 = vector.shape_cast %60 : vector<16x128xf32> to vector<1x16x128xf32>
    tpu.vector_store %arg5[%c0_47, %c0_48, %c384], %63 {strides = array<i32>} : memref<1x16x512xf32, #tpu.memory_space<vmem>>, vector<1x16x128xf32>,
    return
  }
  func.func @transform_0(%arg0: i32, %arg1: i32) -> (i32, i32, i32, i32) {
    %c0_i32 = arith.constant 0 : i32
    %c0_i32_0 = arith.constant 0 : i32
    %c0_i32_1 = arith.constant 0 : i32
    %c0_i32_2 = arith.constant 0 : i32
    return %arg0, %c0_i32, %c0_i32_0, %c0_i32_1 : i32, i32, i32, i32
  }
  func.func @transform_1(%arg0: i32, %arg1: i32) -> (i32, i32) {
    %c0_i32 = arith.constant 0 : i32
    %c0_i32_0 = arith.constant 0 : i32
    %c0_i32_1 = arith.constant 0 : i32
    return %c0_i32, %c0_i32_0 : i32, i32
  }
  func.func @transform_2(%arg0: i32, %arg1: i32) -> (i32, i32) {
    %c0_i32 = arith.constant 0 : i32
    %c0_i32_0 = arith.constant 0 : i32
    %c0_i32_1 = arith.constant 0 : i32
    return %c0_i32, %c0_i32_0 : i32, i32
  }
  func.func @transform_3(%arg0: i32, %arg1: i32) -> (i32, i32, i32) {
    %c0_i32 = arith.constant 0 : i32
    %c0_i32_0 = arith.constant 0 : i32
    return %arg0, %arg1, %c0_i32 : i32, i32, i32
  }
}

</mosaic_0001>

<bundles_post_ra>
// kernel: tile.8
= control target key start
LH: loop header
LB: loop body
LE: loop exit
PB: predicated region body
PF: predicated region fallthrough
CT: control target
= control target key end

     0   :  { %s28_s0 = inlined_call_operand.vmem [shape: f32[8], index: 0, kind: input, shape index: {}]   ;;  %s29_s1 = inlined_call_operand.vmem [shape: f32[16,8], index: 1, kind: output, shape index: {}]  }
   0x1   :  { %v4_v0 = vld [vmem:[%s28_s0] ss:$0 sm:$0xff] }
   0x2   :  { %5 = vst [vmem:[%s29_s1] sm:$0xff] %v4_v0  ;;  %8 = vst [vmem:[%s29_s1 + $0x8] sm:$0xff] %v4_v0 }

// kernel: tile.9
= control target key start
LH: loop header
LB: loop body
LE: loop exit
PB: predicated region body
PF: predicated region fallthrough
CT: control target
= control target key end

     0   :  { %s133_s10 = smov 120   ;;  %s134_s11 = smov 104   ;;  %vm3_vm0 = vcmask 64512   ;;  %vm9_vm1 = vcmask 1048512   ;;  %vm15_vm2 = vcmask 982912   ;;  %vm21_vm3 = vcmask 917312   ;;  %s209_s0 = inlined_call_operand.vmem [shape: f32[16,8], index: 0, kind: input, shape index: {}]   ;;  %s210_s1 = inlined_call_operand.vmem [shape: f32[1,128], index: 1, kind: output, shape index: {}]  }
   0x1   :  { %v103_v0 = vld [vmem:[%s209_s0 + $0xf] sm:$0x1]   ;;  %v105_v1 = vld [vmem:[%s209_s0 + $0xd] sm:$0x1]   ;;  %v104_v2 = vld [vmem:[%s209_s0 + $0xe] sm:$0x1]  }
   0x2   :  { %7 = vrot.lane.b32.xlu0 %v103_v0, %s133_s10  ;;  %19 = vrot.lane.b32.xlu1 %v105_v1, %s134_s11  ;;  %v106_v3 = vld [vmem:[%s209_s0 + $0xc] sm:$0x1]   ;;  %s135_s16 = smov 112   ;;  %s136_s17 = smov 96   ;;  %v107_v4 = vld [vmem:[%s209_s0 + $0xb] sm:$0x1]  }
   0x3   :  { %v108_v5 = vld [vmem:[%s209_s0 + $0xa] sm:$0x1]   ;;  %v2_v6 = vld [vmem:[%s209_s0] sm:$0x1]   ;;  %s137_s24 = smov 88   ;;  %s138_s25 = smov 80  }
   0x4   :  { %4 = vst.msk [vmem:[#allocation0] sm:$0x1] %vm3_vm0, %v2_v6   ;;  %v109_v7 = vld [vmem:[%s209_s0 + $0x9] sm:$0x1]   ;;  %v110_v8 = vld [vmem:[%s209_s0 + $0x8] sm:$0x1]  }
   0x5   :  { %s139_s30 = smov 72   ;;  %s140_s2 = smov 64   ;;  %v111_v9 = vld [vmem:[%s209_s0 + $0x7] sm:$0x1]   ;;  %v112_v10 = vld [vmem:[%s209_s0 + $0x6] sm:$0x1]  }
   0x6   :  { %13 = vrot.lane.b32.xlu0 %v104_v2, %s135_s16  ;;  %25 = vrot.lane.b32.xlu1 %v106_v3, %s136_s17  ;;  %s141_s7 = smov 56   ;;  %s142_s8 = smov 48   ;;  %v113_v11 = vld [vmem:[%s209_s0 + $0x5] sm:$0x1]   ;;  %v114_v12 = vld [vmem:[%s209_s0 + $0x4] sm:$0x1]  }
   0x7   :  { %s143_s13 = smov 40   ;;  %s144_s14 = smov 32   ;;  %v115_v13 = vld [vmem:[%s209_s0 + $0x3] sm:$0x1]   ;;  %v116_v14 = vld [vmem:[%s209_s0 + $0x2] sm:$0x1]  }
   0x8   :  { %s145_s19 = smov 24   ;;  %s146_s20 = smov 16   ;;  %v117_v15 = vld [vmem:[%s209_s0 + $0x1] sm:$0x1]   ;;  %vm27_vm4 = vcmask 851712   ;;  %vm33_vm5 = vcmask 786112  }
   0x9   :  { %s147_s0 = smov 8   ;;  %vm39_vm6 = vcmask 720512   ;;  %vm45_vm7 = vcmask 654912   ;;  %vm51_vm8 = vcmask 589312   ;;  %vm57_vm9 = vcmask 523712  }
   0xa   :  { %31 = vrot.lane.b32.xlu0 %v107_v4, %s137_s24  ;;  %37 = vrot.lane.b32.xlu1 %v108_v5, %s138_s25  ;;  %vm63_vm10 = vcmask 458112   ;;  %vm69_vm11 = vcmask 392512   ;;  %vm75_vm12 = vcmask 326912   ;;  %vm81_vm13 = vcmask 261312  }
   0xb   :  { %vm87_vm14 = vcmask 195712   ;;  %vm93_vm15 = vcmask 130112  }
   0xe   :  { %43 = vrot.lane.b32.xlu0 %v109_v7, %s139_s30  ;;  %49 = vrot.lane.b32.xlu1 %v110_v8, %s140_s2 }
  0x12   :  { %55 = vrot.lane.b32.xlu0 %v111_v9, %s141_s7  ;;  %61 = vrot.lane.b32.xlu1 %v112_v10, %s142_s8 }
  0x16   :  { %67 = vrot.lane.b32.xlu0 %v113_v11, %s143_s13  ;;  %73 = vrot.lane.b32.xlu1 %v114_v12, %s144_s14 }
  0x1a   :  { %79 = vrot.lane.b32.xlu0 %v115_v13, %s145_s19  ;;  %85 = vrot.lane.b32.xlu1 %v116_v14, %s146_s20 }
  0x1e   :  { %91 = vrot.lane.b32.xlu0 %v117_v15, %s147_s0 }
  0x74   :  { %v8_v16 = vpop.permute.xlu0 %7   ;;  %v20_v17 = vpop.permute.xlu1 %19  }
  0x75   :  { %10 = vst.msk [vmem:[#allocation0] sm:$0x1] %vm9_vm1, %v8_v16  }
  0x78   :  { %v14_v18 = vpop.permute.xlu0 %13   ;;  %v26_v19 = vpop.permute.xlu1 %25  }
  0x79   :  { %16 = vst.msk [vmem:[#allocation0] sm:$0x1] %vm15_vm2, %v14_v18  }
  0x7a   :  { %22 = vst.msk [vmem:[#allocation0] sm:$0x1] %vm21_vm3, %v20_v17  }
  0x7b   :  { %28 = vst.msk [vmem:[#allocation0] sm:$0x1] %vm27_vm4, %v26_v19  }
  0x7c   :  { %v32_v20 = vpop.permute.xlu0 %31   ;;  %v38_v21 = vpop.permute.xlu1 %37  }
  0x7d   :  { %34 = vst.msk [vmem:[#allocation0] sm:$0x1] %vm33_vm5, %v32_v20  }
  0x7e   :  { %40 = vst.msk [vmem:[#allocation0] sm:$0x1] %vm39_vm6, %v38_v21  }
  0x80   :  { %v44_v22 = vpop.permute.xlu0 %43   ;;  %v50_v23 = vpop.permute.xlu1 %49  }
  0x81   :  { %46 = vst.msk [vmem:[#allocation0] sm:$0x1] %vm45_vm7, %v44_v22  }
  0x82   :  { %52 = vst.msk [vmem:[#allocation0] sm:$0x1] %vm51_vm8, %v50_v23  }
  0x84   :  { %v56_v24 = vpop.permute.xlu0 %55   ;;  %v62_v25 = vpop.permute.xlu1 %61  }
  0x85   :  { %58 = vst.msk [vmem:[#allocation0] sm:$0x1] %vm57_vm9, %v56_v24  }
  0x86   :  { %64 = vst.msk [vmem:[#allocation0] sm:$0x1] %vm63_vm10, %v62_v25  }
  0x88   :  { %v68_v26 = vpop.permute.xlu0 %67   ;;  %v74_v27 = vpop.permute.xlu1 %73  }
  0x89   :  { %70 = vst.msk [vmem:[#allocation0] sm:$0x1] %vm69_vm11, %v68_v26  }
  0x8a   :  { %76 = vst.msk [vmem:[#allocation0] sm:$0x1] %vm75_vm12, %v74_v27  }
  0x8c   :  { %v80_v28 = vpop.permute.xlu0 %79   ;;  %v86_v29 = vpop.permute.xlu1 %85  }
  0x8d   :  { %82 = vst.msk [vmem:[#allocation0] sm:$0x1] %vm81_vm13, %v80_v28  }
  0x8e   :  { %88 = vst.msk [vmem:[#allocation0] sm:$0x1] %vm87_vm14, %v86_v29  }
  0x90   :  { %v92_v30 = vpop.permute.xlu0 %91  }
  0x91   :  { %94 = vst.msk [vmem:[#allocation0] sm:$0x1] %vm93_vm15, %v92_v30  }
  0x98   :  { %v99_v31 = vld [vmem:[#allocation0] sm:$0x1] }
  0x99   :  { %102 = vst [vmem:[%s210_s1] sm:$0x1] %v99_v31 }

// kernel: ico_spma_conv_transpose.1
= control target key start
LH: loop header
LB: loop body
LE: loop exit
PB: predicated region body
PF: predicated region fallthrough
CT: control target
= control target key end

     0   :  { %s6874_s12 = smov 0   ;;  %s6876_s13 = smov 0   ;;  %s10180_s0 = inlined_call_operand.vmem [shape: f32[2,18,24,16], index: 0, kind: input, shape index: {}]   ;;  %s10181_s1 = inlined_call_operand.vmem [shape: f32[16,128], index: 1, kind: input, shape index: {}]   ;;  %s10182_s2 = inlined_call_operand.vmem [shape: f32[1,128], index: 2, kind: input, shape index: {}]   ;;  %s10183_s3 = inlined_call_operand.vmem [shape: f32[2,16,512], index: 3, kind: output, shape index: {}]  }
   0x1   :  { %s6878_s14 = smov 0  }
   0x2 LB: > { %s25_s15 = sadd.s32 1, %s6831_s13  ;;  %p6531_p0 = scmp.ge.s32.totalorder %s6835_s14, 1  ;;  %s6835_s14 = sphi %s6878_s14, %s13_s14   ;;  %s6831_s13 = sphi %s6876_s13, %s10569_s13   ;;  %s6827_s12 = sphi %s6874_s12, %s10568_s12  }
   0x3   : > { %p27_p1 = scmp.ge.s32.totalorder %s25_s15, 2  ;;  %p151_p2 = scmp.lt.s32.totalorder %s6835_s14, 3 }
   0x5   : > { %s10571_s15 = smov (%p27_p1, %s25_s15), 0  ;;  %p152_p3 = pnand %p6531_p0, %p151_p2 }
   0x7   : > { %155 = sbr.rel (%p152_p3) target bundleno = 1946 (0x79a), region = 32 }
   0xc   : > { %v254_v0 = vld [vmem:[%s10181_s1 + $0x8] sm:$0xff]  ;;  %v253_v1 = vld [vmem:[%s10181_s1] sm:$0xff]  ;;  %p180_p4 = scmp.lt.s32.totalorder %s6827_s12, 1  ;;  %vm255_vm0 = vcmask 130048   ;;  %s6837_s24 = smov 48   ;;  %vm2209_vm1 = vcmask 64512  }
   0xd   : > { %6649 = vmatprep.subr.mxu0 %v254_v0  ;;  %6734 = vmatprep.subr.mxu1 %v254_v0  ;;  %s6838_s25 = smov 112   ;;  %s6839_s26 = smov 64   ;;  %vm2214_vm2 = vcmask 195584   ;;  %vm2217_vm3 = vcmask 261120   ;;  %vm2220_vm4 = vcmask 326656   ;;  %vm2223_vm5 = vcmask 392192  }
   0xe   : > { %6650 = vmatpush3.msra.mxu0 %v254_v0  ;;  %6736 = vmatpush3.msra.mxu1 %v254_v0  ;;  %s10573_s12 = smov (!%p180_p4, %s6827_s12), 1  ;;  %s6840_s27 = smov 88   ;;  %vm2226_vm6 = vcmask 457728   ;;  %vm2229_vm7 = vcmask 523264   ;;  %vm2232_vm8 = vcmask 588800   ;;  %vm2235_vm9 = vcmask 654336  }
   0xf   : > { %6651 = vmatprep.subr.mxu0 %v253_v1  ;;  %6735 = vmatprep.subr.mxu1 %v253_v1  ;;  %s6738_s20 = smul.u32 432, %s10573_s12  ;;  %s6843_s28 = smov 96   ;;  %vm2238_vm10 = vcmask 719872   ;;  %vm2241_vm11 = vcmask 785408   ;;  %vm2244_vm12 = vcmask 850944   ;;  %vm2247_vm13 = vcmask 916480  }
  0x10   : > { %6652 = vmatpush3.msra.mxu0 %v253_v1  ;;  %6737 = vmatpush3.msra.mxu1 %v253_v1  ;;  %s6844_s29 = smov 72   ;;  %s6845_s30 = smov 80   ;;  %vm2250_vm14 = vcmask 982016  }
  0x11   : > { %s6904_s23 = scalar_lea.vmem %s10180_s0, %s6738_s20  ;;  %s6846_s4 = smov 8  }
  0x12   : > { %v199_v2 = vld [vmem:[%s6904_s23] sm:$0xff]  ;;  %v200_v4 = vld [vmem:[%s6904_s23 + $0x8] sm:$0xff]  ;;  %v201_v6 = vld [vmem:[%s6904_s23 + $0x10] sm:$0xff]  ;;  %s6847_s5 = smov 16   ;;  %s6848_s6 = smov 24  }
  0x13   : > { %v227_v3 = vld [vmem:[%s6904_s23 + $0xe0] sm:$0xff]  ;;  %6653 = vmatprep.mubr.msk.f32.mxu0 %vm255_vm0, %v199_v2  ;;  %v228_v5 = vld [vmem:[%s6904_s23 + $0xe8] sm:$0xff]  ;;  %v202_v7 = vld [vmem:[%s6904_s23 + $0x18] sm:$0xff]  ;;  %s6849_s7 = smov 104   ;;  %s6850_s8 = smov 32  }
  0x14   : > { %6695 = vmatprep.mubr.msk.f32.mxu1 %vm255_vm0, %v227_v3  ;;  %6654 = vmatmul.mubr.msk.f32.vlgmr.msra.gmra.mxu0 %vm255_vm0, %v200_v4  ;;  %v229_v8 = vld [vmem:[%s6904_s23 + $0xf0] sm:$0xff]  ;;  %v230_v9 = vld [vmem:[%s6904_s23 + $0xf8] sm:$0xff]  ;;  %v203_v10 = vld [vmem:[%s6904_s23 + $0x20] sm:$0xff]  ;;  %s6851_s9 = smov 40   ;;  %s6852_s10 = smov 120  }
  0x15   : > { %6696 = vmatmul.mubr.msk.f32.vlgmr.msra.gmra.mxu1 %vm255_vm0, %v228_v5  ;;  %6656 = vmatprep.mubr.msk.f32.mxu0 %vm255_vm0, %v201_v6  ;;  %v231_v11 = vld [vmem:[%s6904_s23 + $0x100] sm:$0xff]  ;;  %v204_v12 = vld [vmem:[%s6904_s23 + $0x28] sm:$0xff]  ;;  %v205_v14 = vld [vmem:[%s6904_s23 + $0x30] sm:$0xff]  ;;  %s6853_s11 = smov 56   ;;  %s6592_s16 = sshll.u32 %s10573_s12, 6 }
  0x16   : > { %6698 = vmatprep.mubr.msk.f32.mxu1 %vm255_vm0, %v229_v8  ;;  %v232_v13 = vld [vmem:[%s6904_s23 + $0x108] sm:$0xff]  ;;  %v233_v15 = vld [vmem:[%s6904_s23 + $0x110] sm:$0xff]  ;;  %v206_v16 = vld [vmem:[%s6904_s23 + $0x38] sm:$0xff]  ;;  %s8369_s20 = scalar_lea.vmem %s10183_s3, %s6592_s16 }
  0x17   : > { %v234_v17 = vld [vmem:[%s6904_s23 + $0x118] sm:$0xff]  ;;  %v207_v18 = vld [vmem:[%s6904_s23 + $0x40] sm:$0xff]  ;;  %v208_v20 = vld [vmem:[%s6904_s23 + $0x48] sm:$0xff] }
  0x18   : > { %6657 = vmatmul.mubr.msk.f32.gmra.mxu0 %vm255_vm0, %v202_v7  ;;  %v235_v19 = vld [vmem:[%s6904_s23 + $0x120] sm:$0xff]  ;;  %v236_v21 = vld [vmem:[%s6904_s23 + $0x128] sm:$0xff]  ;;  %v209_v22 = vld [vmem:[%s6904_s23 + $0x50] sm:$0xff] }
  0x19   : > { %6699 = vmatmul.mubr.msk.f32.gmra.mxu1 %vm255_vm0, %v230_v9  ;;  %6659 = vmatprep.mubr.msk.f32.mxu0 %vm255_vm0, %v203_v10  ;;  %v237_v23 = vld [vmem:[%s6904_s23 + $0x130] sm:$0xff]  ;;  %v210_v24 = vld [vmem:[%s6904_s23 + $0x58] sm:$0xff]  ;;  %v211_v26 = vld [vmem:[%s6904_s23 + $0x60] sm:$0xff] }
  0x1a   : > { %6701 = vmatprep.mubr.msk.f32.mxu1 %vm255_vm0, %v231_v11  ;;  %v238_v25 = vld [vmem:[%s6904_s23 + $0x138] sm:$0xff]  ;;  %v239_v27 = vld [vmem:[%s6904_s23 + $0x140] sm:$0xff]  ;;  %v212_v28 = vld [vmem:[%s6904_s23 + $0x68] sm:$0xff] }
  0x1b   : > { %v240_v29 = vld [vmem:[%s6904_s23 + $0x148] sm:$0xff]  ;;  %v213_v30 = vld [vmem:[%s6904_s23 + $0x70] sm:$0xff]  ;;  %v214_v32 = vld [vmem:[%s6904_s23 + $0x78] sm:$0xff] }
  0x1c   : > { %6660 = vmatmul.mubr.msk.f32.gmra.mxu0 %vm255_vm0, %v204_v12  ;;  %v241_v31 = vld [vmem:[%s6904_s23 + $0x150] sm:$0xff]  ;;  %v242_v33 = vld [vmem:[%s6904_s23 + $0x158] sm:$0xff]  ;;  %v215_v34 = vld [vmem:[%s6904_s23 + $0x80] sm:$0xff] }
  0x1d   : > { %6702 = vmatmul.mubr.msk.f32.gmra.mxu1 %vm255_vm0, %v232_v13  ;;  %6662 = vmatprep.mubr.msk.f32.mxu0 %vm255_vm0, %v205_v14  ;;  %v243_v35 = vld [vmem:[%s6904_s23 + $0x160] sm:$0xff]  ;;  %v216_v36 = vld [vmem:[%s6904_s23 + $0x88] sm:$0xff]  ;;  %v217_v38 = vld [vmem:[%s6904_s23 + $0x90] sm:$0xff] }
  0x1e   : > { %6704 = vmatprep.mubr.msk.f32.mxu1 %vm255_vm0, %v233_v15  ;;  %v244_v37 = vld [vmem:[%s6904_s23 + $0x168] sm:$0xff]  ;;  %v245_v39 = vld [vmem:[%s6904_s23 + $0x170] sm:$0xff]  ;;  %v218_v40 = vld [vmem:[%s6904_s23 + $0x98] sm:$0xff] }
  0x1f   : > { %v246_v41 = vld [vmem:[%s6904_s23 + $0x178] sm:$0xff]  ;;  %v219_v42 = vld [vmem:[%s6904_s23 + $0xa0] sm:$0xff]  ;;  %v220_v43 = vld [vmem:[%s6904_s23 + $0xa8] sm:$0xff] }
  0x20   : > { %6663 = vmatmul.mubr.msk.f32.gmra.mxu0 %vm255_vm0, %v206_v16  ;;  %v221_v44 = vld [vmem:[%s6904_s23 + $0xb0] sm:$0xff]  ;;  %v222_v45 = vld [vmem:[%s6904_s23 + $0xb8] sm:$0xff]  ;;  %v223_v46 = vld [vmem:[%s6904_s23 + $0xc0] sm:$0xff] }
  0x21   : > { %6705 = vmatmul.mubr.msk.f32.gmra.mxu1 %vm255_vm0, %v234_v17  ;;  %6665 = vmatprep.mubr.msk.f32.mxu0 %vm255_vm0, %v207_v18  ;;  %v224_v47 = vld [vmem:[%s6904_s23 + $0xc8] sm:$0xff]  ;;  %v225_v48 = vld [vmem:[%s6904_s23 + $0xd0] sm:$0xff]  ;;  %v226_v49 = vld [vmem:[%s6904_s23 + $0xd8] sm:$0xff] }
  0x22   : > { %6707 = vmatprep.mubr.msk.f32.mxu1 %vm255_vm0, %v235_v19  ;;  %v247_v50 = vld [vmem:[%s6904_s23 + $0x180] sm:$0xff]  ;;  %v248_v51 = vld [vmem:[%s6904_s23 + $0x188] sm:$0xff]  ;;  %v249_v52 = vld [vmem:[%s6904_s23 + $0x190] sm:$0xff] }
  0x23   : > { %v250_v53 = vld [vmem:[%s6904_s23 + $0x198] sm:$0xff]  ;;  %v251_v54 = vld [vmem:[%s6904_s23 + $0x1a0] sm:$0xff]  ;;  %v252_v55 = vld [vmem:[%s6904_s23 + $0x1a8] sm:$0xff] }
  0x24   : > { %6666 = vmatmul.mubr.msk.f32.gmra.mxu0 %vm255_vm0, %v208_v20 }
  0x25   : > { %6708 = vmatmul.mubr.msk.f32.gmra.mxu1 %vm255_vm0, %v236_v21  ;;  %6668 = vmatprep.mubr.msk.f32.mxu0 %vm255_vm0, %v209_v22 }
  0x26   : > { %6710 = vmatprep.mubr.msk.f32.mxu1 %vm255_vm0, %v237_v23 }
  0x28   : > { %6669 = vmatmul.mubr.msk.f32.gmra.mxu0 %vm255_vm0, %v210_v24 }
  0x29   : > { %6711 = vmatmul.mubr.msk.f32.gmra.mxu1 %vm255_vm0, %v238_v25  ;;  %6671 = vmatprep.mubr.msk.f32.mxu0 %vm255_vm0, %v211_v26 }
  0x2a   : > { %6713 = vmatprep.mubr.msk.f32.mxu1 %vm255_vm0, %v239_v27 }
  0x2c   : > { %6672 = vmatmul.mubr.msk.f32.gmra.mxu0 %vm255_vm0, %v212_v28 }
  0x2d   : > { %6714 = vmatmul.mubr.msk.f32.gmra.mxu1 %vm255_vm0, %v240_v29  ;;  %6674 = vmatprep.mubr.msk.f32.mxu0 %vm255_vm0, %v213_v30 }
  0x2e   : > { %6716 = vmatprep.mubr.msk.f32.mxu1 %vm255_vm0, %v241_v31 }
  0x30   : > { %6675 = vmatmul.mubr.msk.f32.gmra.mxu0 %vm255_vm0, %v214_v32 }
  0x31   : > { %6717 = vmatmul.mubr.msk.f32.gmra.mxu1 %vm255_vm0, %v242_v33  ;;  %6677 = vmatprep.mubr.msk.f32.mxu0 %vm255_vm0, %v215_v34 }
  0x32   : > { %6719 = vmatprep.mubr.msk.f32.mxu1 %vm255_vm0, %v243_v35 }
  0x34   : > { %6678 = vmatmul.mubr.msk.f32.gmra.mxu0 %vm255_vm0, %v216_v36 }
  0x35   : > { %6720 = vmatmul.mubr.msk.f32.gmra.mxu1 %vm255_vm0, %v244_v37  ;;  %6680 = vmatprep.mubr.msk.f32.mxu0 %vm255_vm0, %v217_v38 }
  0x36   : > { %6722 = vmatprep.mubr.msk.f32.mxu1 %vm255_vm0, %v245_v39 }
  0x38   : > { %6681 = vmatmul.mubr.msk.f32.gmra.mxu0 %vm255_vm0, %v218_v40 }
  0x39   : > { %6723 = vmatmul.mubr.msk.f32.gmra.mxu1 %vm255_vm0, %v246_v41  ;;  %6683 = vmatprep.mubr.msk.f32.mxu0 %vm255_vm0, %v219_v42 }
  0x3a   : > { %6725 = vmatprep.mubr.msk.f32.mxu1 %vm255_vm0, %v247_v50 }
  0x3c   : > { %6684 = vmatmul.mubr.msk.f32.gmra.mxu0 %vm255_vm0, %v220_v43 }
  0x3d   : > { %6686 = vmatprep.mubr.msk.f32.mxu0 %vm255_vm0, %v221_v44  ;;  %6726 = vmatmul.mubr.msk.f32.gmra.mxu1 %vm255_vm0, %v248_v51 }
  0x3e   : > { %6728 = vmatprep.mubr.msk.f32.mxu1 %vm255_vm0, %v249_v52 }
  0x40   : > { %6687 = vmatmul.mubr.msk.f32.gmra.mxu0 %vm255_vm0, %v222_v45 }
  0x41   : > { %6689 = vmatprep.mubr.msk.f32.mxu0 %vm255_vm0, %v223_v46  ;;  %6729 = vmatmul.mubr.msk.f32.gmra.mxu1 %vm255_vm0, %v250_v53 }
  0x42   : > { %6731 = vmatprep.mubr.msk.f32.mxu1 %vm255_vm0, %v251_v54 }
  0x44   : > { %6690 = vmatmul.mubr.msk.f32.gmra.mxu0 %vm255_vm0, %v224_v47 }
  0x45   : > { %6692 = vmatprep.mubr.msk.f32.mxu0 %vm255_vm0, %v225_v48  ;;  %6732 = vmatmul.mubr.msk.f32.gmra.mxu1 %vm255_vm0, %v252_v55 }
  0x48   : > { %6693 = vmatmul.mubr.msk.f32.gmra.mxu0 %vm255_vm0, %v226_v49 }
  0xd4   : > { %v6655_v56 = vpop.f32.mrf.mxu0 }
  0xd5   : > { %v6697_v57 = vpop.f32.mrf.mxu1  ;;  %754 = vst [vmem:[#allocation2 + $0x8] sm:$0xff] %v6655_v56  ;;  %1291 = vrot.lane.b32.xlu1 %v6655_v56, %s6837_s24 }
  0xd6   : > { %782 = vst [vmem:[#allocation2 + $0xe8] sm:$0xff] %v6697_v57  ;;  %v484_v58 = vpop.f32.mrf.mxu0 }
  0xd7   : > { %v624_v59 = vpop.f32.mrf.mxu1  ;;  %753 = vst [vmem:[#allocation2] sm:$0xff] %v484_v58 }
  0xd8   : > { %781 = vst [vmem:[#allocation2 + $0xe0] sm:$0xff] %v624_v59  ;;  %v6658_v60 = vpop.f32.mrf.mxu0 }
  0xd9   : > { %v6700_v61 = vpop.f32.mrf.mxu1  ;;  %756 = vst [vmem:[#allocation2 + $0x18] sm:$0xff] %v6658_v60  ;;  %939 = vrot.lane.b32.xlu1 %v624_v59, %s6838_s25 }
  0xda   : > { %784 = vst [vmem:[#allocation2 + $0xf8] sm:$0xff] %v6700_v61  ;;  %v494_v62 = vpop.f32.mrf.mxu0 }
  0xdb   : > { %v7016_v63 = vpop.f32.mrf.mxu1  ;;  %755 = vst [vmem:[#allocation2 + $0x10] sm:$0xff] %v494_v62 }
  0xdc   : > { %783 = vst [vmem:[#allocation2 + $0xf0] sm:$0xff] %v7016_v63  ;;  %v6661_v0 = vpop.f32.mrf.mxu0 }
  0xdd   : > { %v7019_v1 = vpop.f32.mrf.mxu1  ;;  %758 = vst [vmem:[#allocation2 + $0x28] sm:$0xff] %v6661_v0 }
  0xde   : > { %786 = vst [vmem:[#allocation2 + $0x108] sm:$0xff] %v7019_v1  ;;  %v7022_v2 = vpop.f32.mrf.mxu0  ;;  %v1033_v3 = vld [vmem:[#allocation2 + $0x1] sm:$0xff] }
  0xdf   : > { %v1052_v4 = vld [vmem:[#allocation2 + $0xe1] sm:$0xff]  ;;  %v644_v5 = vpop.f32.mrf.mxu1  ;;  %757 = vst [vmem:[#allocation2 + $0x20] sm:$0xff] %v7022_v2  ;;  %1097 = vrot.lane.b32.xlu0 %v1033_v3, %s6839_s26 }
  0xe0   : > { %1135 = vrot.lane.b32.xlu1 %v1052_v4, %s6839_s26  ;;  %785 = vst [vmem:[#allocation2 + $0x100] sm:$0xff] %v644_v5  ;;  %v7027_v6 = vpop.f32.mrf.mxu0  ;;  %v2487_v13 = vld [vmem:[#allocation2 + $0x2] sm:$0xff] }
  0xe1   : > { %v6706_v7 = vpop.f32.mrf.mxu1  ;;  %760 = vst [vmem:[#allocation2 + $0x38] sm:$0xff] %v7027_v6 }
  0xe2   : > { %788 = vst [vmem:[#allocation2 + $0x118] sm:$0xff] %v6706_v7  ;;  %v7030_v8 = vpop.f32.mrf.mxu0  ;;  %v1034_v26 = vld [vmem:[#allocation2 + $0x9] sm:$0xff] }
  0xe3   : > { %v7032_v9 = vpop.f32.mrf.mxu1  ;;  %759 = vst [vmem:[#allocation2 + $0x30] sm:$0xff] %v7030_v8  ;;  %1289 = vrot.lane.b32.xlu0 %v484_v58, %s6837_s24  ;;  %v7085_v31 = vld [vmem:[#allocation2 + $0xf1] sm:$0xff] }
  0xe4   : > { %1327 = vrot.lane.b32.xlu1 %v624_v59, %s6837_s24  ;;  %787 = vst [vmem:[#allocation2 + $0x110] sm:$0xff] %v7032_v9  ;;  %v7038_v10 = vpop.f32.mrf.mxu0  ;;  %10250 = vst [vmem:[#allocation3_spill] sm:$0xff] %v7085_v31  ;;  %v2488_v32 = vld [vmem:[#allocation2 + $0xa] sm:$0xff] }
  0xe5   : > { %v7040_v11 = vpop.f32.mrf.mxu1  ;;  %762 = vst [vmem:[#allocation2 + $0x48] sm:$0xff] %v7038_v10 }
  0xe6   : > { %790 = vst [vmem:[#allocation2 + $0x128] sm:$0xff] %v7040_v11  ;;  %v524_v12 = vpop.f32.mrf.mxu0  ;;  %v7096_v36 = vld [vmem:[#allocation2 + $0x21] sm:$0xff]  ;;  %v7139_v47 = vld [vmem:[#allocation2 + $0x19] sm:$0xff] }
  0xe7   : > { %v7044_v14 = vpop.f32.mrf.mxu1  ;;  %761 = vst [vmem:[#allocation2 + $0x40] sm:$0xff] %v524_v12  ;;  %2551 = vrot.lane.b32.xlu0 %v2487_v13, %s6839_s26  ;;  %v7108_v41 = vld [vmem:[#allocation2 + $0xf9] sm:$0xff]  ;;  %v2490_v48 = vld [vmem:[#allocation2 + $0x22] sm:$0xff] }
  0xe8   : > { %2393 = vrot.lane.b32.xlu1 %v1052_v4, %s6838_s25  ;;  %789 = vst [vmem:[#allocation2 + $0x120] sm:$0xff] %v7044_v14  ;;  %v6670_v15 = vpop.f32.mrf.mxu0  ;;  %v2489_v49 = vld [vmem:[#allocation2 + $0x1a] sm:$0xff] }
  0xe9   : > { %v7049_v16 = vpop.f32.mrf.mxu1  ;;  %764 = vst [vmem:[#allocation2 + $0x58] sm:$0xff] %v6670_v15 }
  0xea   : > { %792 = vst [vmem:[#allocation2 + $0x138] sm:$0xff] %v7049_v16  ;;  %v7052_v17 = vpop.f32.mrf.mxu0  ;;  %v7151_v50 = vld [vmem:[#allocation2 + $0x31] sm:$0xff] }
  0xeb   : > { %v674_v18 = vpop.f32.mrf.mxu1  ;;  %763 = vst [vmem:[#allocation2 + $0x50] sm:$0xff] %v7052_v17  ;;  %905 = vrot.lane.b32.xlu0 %v6658_v60, %s6838_s25  ;;  %v7157_v51 = vld [vmem:[#allocation2 + $0x109] sm:$0xff]  ;;  %v7163_v52 = vld [vmem:[#allocation2 + $0x111] sm:$0xff] }
  0xec   : > { %943 = vrot.lane.b32.xlu1 %v6700_v61, %s6838_s25  ;;  %791 = vst [vmem:[#allocation2 + $0x130] sm:$0xff] %v674_v18  ;;  %v7057_v19 = vpop.f32.mrf.mxu0 }
  0xed   : > { %v6715_v20 = vpop.f32.mrf.mxu1  ;;  %766 = vst [vmem:[#allocation2 + $0x68] sm:$0xff] %v7057_v19 }
  0xee   : > { %794 = vst [vmem:[#allocation2 + $0x148] sm:$0xff] %v6715_v20  ;;  %v7060_v21 = vpop.f32.mrf.mxu0  ;;  %v7191_v57 = vld [vmem:[#allocation2 + $0x39] sm:$0xff] }
  0xef   : > { %v7062_v22 = vpop.f32.mrf.mxu1  ;;  %765 = vst [vmem:[#allocation2 + $0x60] sm:$0xff] %v7060_v21  ;;  %1293 = vrot.lane.b32.xlu0 %v6658_v60, %s6837_s24  ;;  %v7197_v58 = vld [vmem:[#allocation2 + $0x121] sm:$0xff] }
  0xf0   : > { %1331 = vrot.lane.b32.xlu1 %v6700_v61, %s6837_s24  ;;  %793 = vst [vmem:[#allocation2 + $0x140] sm:$0xff] %v7062_v22  ;;  %v7068_v23 = vpop.f32.mrf.mxu0 }
  0xf1   : > { %v7070_v24 = vpop.f32.mrf.mxu1  ;;  %768 = vst [vmem:[#allocation2 + $0x78] sm:$0xff] %v7068_v23 }
  0xf2   : > { %796 = vst [vmem:[#allocation2 + $0x158] sm:$0xff] %v7070_v24  ;;  %v554_v25 = vpop.f32.mrf.mxu0  ;;  %v7207_v61 = vld [vmem:[#allocation2 + $0x51] sm:$0xff] }
  0xf3   : > { %v7074_v27 = vpop.f32.mrf.mxu1  ;;  %767 = vst [vmem:[#allocation2 + $0x70] sm:$0xff] %v554_v25  ;;  %941 = vrot.lane.b32.xlu0 %v7016_v63, %s6838_s25  ;;  %v7213_v62 = vld [vmem:[#allocation2 + $0x129] sm:$0xff] }
  0xf4   : > { %1099 = vrot.lane.b32.xlu1 %v1034_v26, %s6839_s26  ;;  %795 = vst [vmem:[#allocation2 + $0x150] sm:$0xff] %v7074_v27  ;;  %v6679_v28 = vpop.f32.mrf.mxu0 }
  0xf5   : > { %v7080_v29 = vpop.f32.mrf.mxu1  ;;  %770 = vst [vmem:[#allocation2 + $0x88] sm:$0xff] %v6679_v28 }
  0xf6   : > { %798 = vst [vmem:[#allocation2 + $0x168] sm:$0xff] %v7080_v29  ;;  %v7083_v30 = vpop.f32.mrf.mxu0  ;;  %v7249_v7 = vld [vmem:[#allocation2 + $0x61] sm:$0xff] }
  0xf7   : > { %v704_v33 = vpop.f32.mrf.mxu1  ;;  %769 = vst [vmem:[#allocation2 + $0x80] sm:$0xff] %v7083_v30  ;;  %1137 = vrot.lane.b32.xlu0 %v7085_v31, %s6839_s26  ;;  %v7263_v12 = vld [vmem:[#allocation2 + $0x139] sm:$0xff]  ;;  %v7273_v15 = vld [vmem:[#allocation2 + $0x141] sm:$0xff] }
  0xf8   : > { %2553 = vrot.lane.b32.xlu1 %v2488_v32, %s6839_s26  ;;  %797 = vst [vmem:[#allocation2 + $0x160] sm:$0xff] %v704_v33  ;;  %v7091_v34 = vpop.f32.mrf.mxu0 }
  0xf9   : > { %772 = vst [vmem:[#allocation2 + $0x98] sm:$0xff] %v7091_v34  ;;  %v6724_v37 = vpop.f32.mrf.mxu1 }
  0xfa   : > { %v7094_v35 = vpop.f32.mrf.mxu0  ;;  %800 = vst [vmem:[#allocation2 + $0x178] sm:$0xff] %v6724_v37  ;;  %v7315_v32 = vld [vmem:[#allocation2 + $0x69] sm:$0xff] }
  0xfb   : > { %771 = vst [vmem:[#allocation2 + $0x90] sm:$0xff] %v7094_v35  ;;  %1329 = vrot.lane.b32.xlu0 %v7016_v63, %s6837_s24  ;;  %v7106_v39 = vpop.f32.mrf.mxu1 }
  0xfc   : > { %1103 = vrot.lane.b32.xlu1 %v7096_v36, %s6839_s26  ;;  %v7103_v38 = vpop.f32.mrf.mxu0  ;;  %799 = vst [vmem:[#allocation2 + $0x170] sm:$0xff] %v7106_v39 }
  0xfd   : > { %774 = vst [vmem:[#allocation2 + $0xa8] sm:$0xff] %v7103_v38  ;;  %v7173_v53 = vpop.f32.mrf.mxu1 }
  0xfe   : > { %v584_v40 = vpop.f32.mrf.mxu0  ;;  %802 = vst [vmem:[#allocation2 + $0x188] sm:$0xff] %v7173_v53 }
  0xff   : > { %773 = vst [vmem:[#allocation2 + $0xa0] sm:$0xff] %v584_v40  ;;  %2395 = vrot.lane.b32.xlu0 %v7085_v31, %s6838_s25  ;;  %v7176_v54 = vpop.f32.mrf.mxu1 }
 0x100   : > { %1139 = vrot.lane.b32.xlu1 %v7108_v41, %s6839_s26  ;;  %v6688_v42 = vpop.f32.mrf.mxu0  ;;  %801 = vst [vmem:[#allocation2 + $0x180] sm:$0xff] %v7176_v54 }
 0x101   : > { %776 = vst [vmem:[#allocation2 + $0xb8] sm:$0xff] %v6688_v42  ;;  %v6730_v55 = vpop.f32.mrf.mxu1 }
 0x102   : > { %v7115_v43 = vpop.f32.mrf.mxu0  ;;  %804 = vst [vmem:[#allocation2 + $0x198] sm:$0xff] %v6730_v55 }
 0x103   : > { %775 = vst [vmem:[#allocation2 + $0xb0] sm:$0xff] %v7115_v43  ;;  %945 = vrot.lane.b32.xlu0 %v7019_v1, %s6838_s25  ;;  %v734_v56 = vpop.f32.mrf.mxu1  ;;  %v7407_v31 = vld [vmem:[#allocation2 + $0x169] sm:$0xff] }
 0x104   : > { %1295 = vrot.lane.b32.xlu1 %v7022_v2, %s6837_s24  ;;  %v7122_v44 = vpop.f32.mrf.mxu0  ;;  %803 = vst [vmem:[#allocation2 + $0x190] sm:$0xff] %v734_v56  ;;  %10270 = vst [vmem:[#allocation23_spill] sm:$0xff] %v7407_v31 }
 0x105   : > { %778 = vst [vmem:[#allocation2 + $0xc8] sm:$0xff] %v7122_v44  ;;  %v6733_v59 = vpop.f32.mrf.mxu1 }
 0x106   : > { %v7125_v45 = vpop.f32.mrf.mxu0  ;;  %806 = vst [vmem:[#allocation2 + $0x1a8] sm:$0xff] %v6733_v59 }
 0x107   : > { %777 = vst [vmem:[#allocation2 + $0xc0] sm:$0xff] %v7125_v45  ;;  %1333 = vrot.lane.b32.xlu0 %v7019_v1, %s6837_s24  ;;  %v744_v60 = vpop.f32.mrf.mxu1 }
 0x108   : > { %2361 = vrot.lane.b32.xlu1 %v7096_v36, %s6838_s25  ;;  %v7132_v46 = vpop.f32.mrf.mxu0  ;;  %805 = vst [vmem:[#allocation2 + $0x1a0] sm:$0xff] %v744_v60 }
 0x109   : > { %780 = vst [vmem:[#allocation2 + $0xd8] sm:$0xff] %v7132_v46 }
 0x10a   : > { %v614_v1 = vpop.f32.mrf.mxu0 }
 0x10b   : > { %907 = vrot.lane.b32.xlu0 %v7022_v2, %s6838_s25  ;;  %v7227_v2 = vld [vmem:[#allocation2 + $0x49] sm:$0xff]  ;;  %779 = vst [vmem:[#allocation2 + $0xd0] sm:$0xff] %v614_v1 }
 0x10c   : > { %2397 = vrot.lane.b32.xlu1 %v7108_v41, %s6838_s25 }
 0x10f   : > { %1101 = vrot.lane.b32.xlu0 %v7139_v47, %s6839_s26 }
 0x110   : > { %2557 = vrot.lane.b32.xlu1 %v2490_v48, %s6839_s26 }
 0x113   : > { %2359 = vrot.lane.b32.xlu0 %v7139_v47, %s6838_s25 }
 0x114   : > { %911 = vrot.lane.b32.xlu1 %v7027_v6, %s6838_s25 }
 0x117   : > { %2555 = vrot.lane.b32.xlu0 %v2489_v49, %s6839_s26  ;;  %v7343_v49 = vld [vmem:[#allocation2 + $0x81] sm:$0xff] }
 0x118   : > { %1299 = vrot.lane.b32.xlu1 %v7027_v6, %s6837_s24  ;;  %10261 = vst [vmem:[#allocation14_spill] sm:$0xff] %v7343_v49 }
 0x11b   : > { %1105 = vrot.lane.b32.xlu0 %v7151_v50, %s6839_s26 }
 0x11c   : > { %909 = vrot.lane.b32.xlu1 %v7030_v8, %s6838_s25 }
 0x11f   : > { %1141 = vrot.lane.b32.xlu0 %v7157_v51, %s6839_s26 }
 0x120   : > { %947 = vrot.lane.b32.xlu1 %v7032_v9, %s6838_s25 }
 0x123   : > { %1297 = vrot.lane.b32.xlu0 %v7030_v8, %s6837_s24 }
 0x124   : > { %1143 = vrot.lane.b32.xlu1 %v7163_v52, %s6839_s26 }
 0x127   : > { %2363 = vrot.lane.b32.xlu0 %v7151_v50, %s6838_s25 }
 0x128   : > { %1335 = vrot.lane.b32.xlu1 %v7032_v9, %s6837_s24 }
 0x12b   : > { %2399 = vrot.lane.b32.xlu0 %v7157_v51, %s6838_s25 }
 0x12c   : > { %2401 = vrot.lane.b32.xlu1 %v7163_v52, %s6838_s25 }
 0x12f   : > { %913 = vrot.lane.b32.xlu0 %v7038_v10, %s6838_s25 }
 0x130   : > { %951 = vrot.lane.b32.xlu1 %v7040_v11, %s6838_s25 }
 0x133   : > { %1301 = vrot.lane.b32.xlu0 %v7038_v10, %s6837_s24 }
 0x134   : > { %1339 = vrot.lane.b32.xlu1 %v7040_v11, %s6837_s24 }
 0x137   : > { %949 = vrot.lane.b32.xlu0 %v7044_v14, %s6838_s25 }
 0x138   : > { %1107 = vrot.lane.b32.xlu1 %v7191_v57, %s6839_s26 }
 0x13b   : > { %1145 = vrot.lane.b32.xlu0 %v7197_v58, %s6839_s26 }
 0x13c   : > { %2365 = vrot.lane.b32.xlu1 %v7191_v57, %s6838_s25 }
 0x13f   : > { %1337 = vrot.lane.b32.xlu0 %v7044_v14, %s6837_s24 }
 0x140   : > { %915 = vrot.lane.b32.xlu1 %v7052_v17, %s6838_s25 }
 0x143   : > { %2403 = vrot.lane.b32.xlu0 %v7197_v58, %s6838_s25 }
 0x144   : > { %1111 = vrot.lane.b32.xlu1 %v7207_v61, %s6839_s26 }
 0x147   : > { %953 = vrot.lane.b32.xlu0 %v7049_v16, %s6838_s25  ;;  %v7219_v63 = vpop.permute.xlu1 %1291 }
 0x148   : > { %1147 = vrot.lane.b32.xlu1 %v7213_v62, %s6839_s26 }
 0x14b   : > { %1341 = vrot.lane.b32.xlu0 %v7049_v16, %s6837_s24  ;;  %v7225_v0 = vpop.permute.xlu1 %939 }
 0x14c   : > { %1303 = vrot.lane.b32.xlu1 %v7052_v17, %s6837_s24  ;;  %10251 = vst [vmem:[#allocation4_spill] sm:$0xff] %v7225_v0  ;;  %v7417_v0 = vld [vmem:[#allocation2 + $0x171] sm:$0xff] }
 0x14d   : > { %10271 = vst [vmem:[#allocation24_spill] sm:$0xff] %v7417_v0 }
 0x14f   : > { %1109 = vrot.lane.b32.xlu0 %v7227_v2, %s6839_s26 }
 0x150   : > { %2369 = vrot.lane.b32.xlu1 %v7207_v61, %s6838_s25 }
 0x151   : > { %v7233_v3 = vpop.permute.xlu0 %1097 }
 0x152   : > { %v7235_v4 = vpop.permute.xlu1 %1135 }
 0x153   : > { %2367 = vrot.lane.b32.xlu0 %v7227_v2, %s6838_s25 }
 0x154   : > { %2405 = vrot.lane.b32.xlu1 %v7213_v62, %s6838_s25 }
 0x155   : > { %v7241_v5 = vpop.permute.xlu0 %1289 }
 0x156   : > { %v7243_v6 = vpop.permute.xlu1 %1327 }
 0x157   : > { %917 = vrot.lane.b32.xlu0 %v7060_v21, %s6838_s25 }
 0x158   : > { %919 = vrot.lane.b32.xlu1 %v7057_v19, %s6838_s25 }
 0x159   : > { %v7251_v8 = vpop.permute.xlu0 %2551 }
 0x15a   : > { %10252 = vst [vmem:[#allocation5_spill] sm:$0xff] %v7251_v8  ;;  %v7253_v9 = vpop.permute.xlu1 %2393 }
 0x15b   : > { %10253 = vst [vmem:[#allocation6_spill] sm:$0xff] %v7253_v9  ;;  %1113 = vrot.lane.b32.xlu0 %v7249_v7, %s6839_s26  ;;  %v7371_v9 = vld [vmem:[#allocation2 + $0x79] sm:$0xff] }
 0x15c   : > { %1307 = vrot.lane.b32.xlu1 %v7057_v19, %s6837_s24  ;;  %10265 = vst [vmem:[#allocation18_spill] sm:$0xff] %v7371_v9 }
 0x15d   : > { %v7259_v10 = vpop.permute.xlu0 %905 }
 0x15e   : > { %v7261_v11 = vpop.permute.xlu1 %943 }
 0x15f   : > { %1149 = vrot.lane.b32.xlu0 %v7263_v12, %s6839_s26 }
 0x160   : > { %955 = vrot.lane.b32.xlu1 %v7062_v22, %s6838_s25 }
 0x161   : > { %v7269_v13 = vpop.permute.xlu0 %1293 }
 0x162   : > { %v7271_v14 = vpop.permute.xlu1 %1331 }
 0x163   : > { %1305 = vrot.lane.b32.xlu0 %v7060_v21, %s6837_s24 }
 0x164   : > { %1151 = vrot.lane.b32.xlu1 %v7273_v15, %s6839_s26 }
 0x165   : > { %v7279_v16 = vpop.permute.xlu0 %941 }
 0x166   : > { %10254 = vst [vmem:[#allocation7_spill] sm:$0xff] %v7279_v16  ;;  %v7281_v17 = vpop.permute.xlu1 %1099 }
 0x167   : > { %2371 = vrot.lane.b32.xlu0 %v7249_v7, %s6838_s25 }
 0x168   : > { %1343 = vrot.lane.b32.xlu1 %v7062_v22, %s6837_s24 }
 0x169   : > { %v7287_v18 = vpop.permute.xlu0 %1137 }
 0x16a   : > { %v7289_v19 = vpop.permute.xlu1 %2553 }
 0x16b   : > { %10255 = vst [vmem:[#allocation8_spill] sm:$0xff] %v7289_v19  ;;  %2407 = vrot.lane.b32.xlu0 %v7263_v12, %s6838_s25 }
 0x16c   : > { %2409 = vrot.lane.b32.xlu1 %v7273_v15, %s6838_s25 }
 0x16d   : > { %v7295_v20 = vpop.permute.xlu0 %1329 }
 0x16e   : > { %v7297_v21 = vpop.permute.xlu1 %1103 }
 0x16f   : > { %921 = vrot.lane.b32.xlu0 %v7068_v23, %s6838_s25 }
 0x170   : > { %959 = vrot.lane.b32.xlu1 %v7070_v24, %s6838_s25 }
 0x171   : > { %v7303_v22 = vpop.permute.xlu0 %2395 }
 0x172   : > { %10256 = vst [vmem:[#allocation9_spill] sm:$0xff] %v7303_v22  ;;  %v7305_v25 = vpop.permute.xlu1 %1139 }
 0x173   : > { %1309 = vrot.lane.b32.xlu0 %v7068_v23, %s6837_s24  ;;  %v7325_v23 = vld [vmem:[#allocation2 + $0x151] sm:$0xff] }
 0x174   : > { %1347 = vrot.lane.b32.xlu1 %v7070_v24, %s6837_s24  ;;  %10258 = vst [vmem:[#allocation11_spill] sm:$0xff] %v7325_v23 }
 0x175   : > { %v7311_v26 = vpop.permute.xlu0 %945 }
 0x176   : > { %v7313_v28 = vpop.permute.xlu1 %1295 }
 0x177   : > { %957 = vrot.lane.b32.xlu0 %v7074_v27, %s6838_s25 }
 0x178   : > { %1115 = vrot.lane.b32.xlu1 %v7315_v32, %s6839_s26 }
 0x179   : > { %v7321_v33 = vpop.permute.xlu0 %1333 }
 0x17a   : > { %v7323_v37 = vpop.permute.xlu1 %2361 }
 0x17b   : > { %10257 = vst [vmem:[#allocation10_spill] sm:$0xff] %v7323_v37  ;;  %1153 = vrot.lane.b32.xlu0 %v7325_v23, %s6839_s26 }
 0x17c   : > { %2373 = vrot.lane.b32.xlu1 %v7315_v32, %s6838_s25 }
 0x17d   : > { %v7331_v24 = vpop.permute.xlu0 %907 }
 0x17e   : > { %v7333_v40 = vpop.permute.xlu1 %2397 }
 0x17f   : > { %10259 = vst [vmem:[#allocation12_spill] sm:$0xff] %v7333_v40  ;;  %1345 = vrot.lane.b32.xlu0 %v7074_v27, %s6837_s24  ;;  %v7353_v27 = vld [vmem:[#allocation2 + $0x159] sm:$0xff] }
 0x180   : > { %923 = vrot.lane.b32.xlu1 %v7083_v30, %s6838_s25  ;;  %10263 = vst [vmem:[#allocation16_spill] sm:$0xff] %v7353_v27 }
 0x181   : > { %v7339_v42 = vpop.permute.xlu0 %1101 }
 0x182   : > { %v7341_v48 = vpop.permute.xlu1 %2557 }
 0x183   : > { %10260 = vst [vmem:[#allocation13_spill] sm:$0xff] %v7341_v48  ;;  %2411 = vrot.lane.b32.xlu0 %v7325_v23, %s6838_s25 }
 0x184   : > { %1119 = vrot.lane.b32.xlu1 %v7343_v49, %s6839_s26 }
 0x185   : > { %v7349_v55 = vpop.permute.xlu0 %2359 }
 0x186   : > { %10262 = vst [vmem:[#allocation15_spill] sm:$0xff] %v7349_v55  ;;  %v7351_v56 = vpop.permute.xlu1 %911 }
 0x187   : > { %961 = vrot.lane.b32.xlu0 %v7080_v29, %s6838_s25 }
 0x188   : > { %1155 = vrot.lane.b32.xlu1 %v7353_v27, %s6839_s26 }
 0x189   : > { %v7359_v59 = vpop.permute.xlu0 %2555 }
 0x18a   : > { %10264 = vst [vmem:[#allocation17_spill] sm:$0xff] %v7359_v59  ;;  %v7361_v60 = vpop.permute.xlu1 %1299  ;;  %v7393_v59 = vld [vmem:[#allocation2 + $0x91] sm:$0xff] }
 0x18b   : > { %1349 = vrot.lane.b32.xlu0 %v7080_v29, %s6837_s24  ;;  %10266 = vst [vmem:[#allocation19_spill] sm:$0xff] %v7393_v59 }
 0x18c   : > { %1311 = vrot.lane.b32.xlu1 %v7083_v30, %s6837_s24 }
 0x18d   : > { %v7367_v1 = vpop.permute.xlu0 %1105 }
 0x18e   : > { %v7369_v40 = vpop.permute.xlu1 %909 }
 0x18f   : > { %1117 = vrot.lane.b32.xlu0 %v7371_v9, %s6839_s26 }
 0x190   : > { %2377 = vrot.lane.b32.xlu1 %v7343_v49, %s6838_s25  ;;  %v7451_v49 = vld [vmem:[#allocation2 + $0x99] sm:$0xff] }
 0x191   : > { %v7377_v22 = vpop.permute.xlu0 %1141  ;;  %10276 = vst [vmem:[#allocation29_spill] sm:$0xff] %v7451_v49 }
 0x192   : > { %v7379_v48 = vpop.permute.xlu1 %947 }
 0x193   : > { %2375 = vrot.lane.b32.xlu0 %v7371_v9, %s6838_s25  ;;  %v7481_v9 = vld [vmem:[#allocation2 + $0xb1] sm:$0xff] }
 0x194   : > { %2413 = vrot.lane.b32.xlu1 %v7353_v27, %s6838_s25  ;;  %10283 = vst [vmem:[#allocation36_spill] sm:$0xff] %v7481_v9  ;;  %v7503_v27 = vld [vmem:[#allocation2 + $0xc1] sm:$0xff] }
 0x195   : > { %v7385_v29 = vpop.permute.xlu0 %1297  ;;  %10288 = vst [vmem:[#allocation41_spill] sm:$0xff] %v7503_v27 }
 0x196   : > { %v7387_v30 = vpop.permute.xlu1 %1143 }
 0x197   : > { %925 = vrot.lane.b32.xlu0 %v7094_v35, %s6838_s25 }
 0x198   : > { %927 = vrot.lane.b32.xlu1 %v7091_v34, %s6838_s25 }
 0x199   : > { %v7395_v8 = vpop.permute.xlu0 %2363 }
 0x19a   : > { %10267 = vst [vmem:[#allocation20_spill] sm:$0xff] %v7395_v8  ;;  %v7397_v55 = vpop.permute.xlu1 %1335 }
 0x19b   : > { %1121 = vrot.lane.b32.xlu0 %v7393_v59, %s6839_s26 }
 0x19c   : > { %1315 = vrot.lane.b32.xlu1 %v7091_v34, %s6837_s24 }
 0x19d   : > { %v7403_v19 = vpop.permute.xlu0 %2399 }
 0x19e   : > { %10268 = vst [vmem:[#allocation21_spill] sm:$0xff] %v7403_v19  ;;  %v7405_v37 = vpop.permute.xlu1 %2401 }
 0x19f   : > { %10269 = vst [vmem:[#allocation22_spill] sm:$0xff] %v7405_v37  ;;  %1157 = vrot.lane.b32.xlu0 %v7407_v31, %s6839_s26 }
 0x1a0   : > { %963 = vrot.lane.b32.xlu1 %v7106_v39, %s6838_s25 }
 0x1a1   : > { %v7413_v8 = vpop.permute.xlu0 %913 }
 0x1a2   : > { %v7415_v16 = vpop.permute.xlu1 %951 }
 0x1a3   : > { %1313 = vrot.lane.b32.xlu0 %v7094_v35, %s6837_s24 }
 0x1a4   : > { %1159 = vrot.lane.b32.xlu1 %v7417_v0, %s6839_s26 }
 0x1a5   : > { %v7423_v34 = vpop.permute.xlu0 %1301 }
 0x1a6   : > { %10272 = vst [vmem:[#allocation25_spill] sm:$0xff] %v7423_v34  ;;  %v7425_v37 = vpop.permute.xlu1 %1339 }
 0x1a7   : > { %10273 = vst [vmem:[#allocation26_spill] sm:$0xff] %v7425_v37  ;;  %2379 = vrot.lane.b32.xlu0 %v7393_v59, %s6838_s25  ;;  %v7469_v37 = vld [vmem:[#allocation2 + $0x181] sm:$0xff] }
 0x1a8   : > { %1351 = vrot.lane.b32.xlu1 %v7106_v39, %s6837_s24  ;;  %10279 = vst [vmem:[#allocation32_spill] sm:$0xff] %v7469_v37 }
 0x1a9   : > { %v7431_v19 = vpop.permute.xlu0 %949 }
 0x1aa   : > { %v7433_v23 = vpop.permute.xlu1 %1107 }
 0x1ab   : > { %2415 = vrot.lane.b32.xlu0 %v7407_v31, %s6838_s25 }
 0x1ac   : > { %2417 = vrot.lane.b32.xlu1 %v7417_v0, %s6838_s25 }
 0x1ad   : > { %v7439_v35 = vpop.permute.xlu0 %1145 }
 0x1ae   : > { %v7441_v34 = vpop.permute.xlu1 %2365 }
 0x1af   : > { %10274 = vst [vmem:[#allocation27_spill] sm:$0xff] %v7441_v34  ;;  %929 = vrot.lane.b32.xlu0 %v7103_v38, %s6838_s25 }
 0x1b0   : > { %967 = vrot.lane.b32.xlu1 %v7173_v53, %s6838_s25 }
 0x1b1   : > { %v7447_v39 = vpop.permute.xlu0 %1337 }
 0x1b2   : > { %10275 = vst [vmem:[#allocation28_spill] sm:$0xff] %v7447_v39  ;;  %v7449_v59 = vpop.permute.xlu1 %915 }
 0x1b3   : > { %1317 = vrot.lane.b32.xlu0 %v7103_v38, %s6837_s24 }
 0x1b4   : > { %1123 = vrot.lane.b32.xlu1 %v7451_v49, %s6839_s26 }
 0x1b5   : > { %v7457_v0 = vpop.permute.xlu0 %2403 }
 0x1b6   : > { %10277 = vst [vmem:[#allocation30_spill] sm:$0xff] %v7457_v0  ;;  %v7459_v34 = vpop.permute.xlu1 %1111 }
 0x1b7   : > { %965 = vrot.lane.b32.xlu0 %v7176_v54, %s6838_s25  ;;  %v7479_v54 = vld [vmem:[#allocation2 + $0xa9] sm:$0xff] }
 0x1b8   : > { %2381 = vrot.lane.b32.xlu1 %v7451_v49, %s6838_s25  ;;  %10282 = vst [vmem:[#allocation35_spill] sm:$0xff] %v7479_v54 }
 0x1b9   : > { %v7465_v53 = vpop.permute.xlu0 %953 }
 0x1ba   : > { %v7467_v31 = vpop.permute.xlu1 %1147 }
 0x1bb   : > { %10278 = vst [vmem:[#allocation31_spill] sm:$0xff] %v7467_v31  ;;  %2419 = vrot.lane.b32.xlu0 %v7469_v37, %s6838_s25  ;;  %v7542_v31 = vld [vmem:[#allocation2 + $0xd9] sm:$0xff] }
 0x1bc   : > { %931 = vrot.lane.b32.xlu1 %v7115_v43, %s6838_s25  ;;  %10297 = vst [vmem:[#allocation50_spill] sm:$0xff] %v7542_v31 }
 0x1bd   : > { %v7475_v38 = vpop.permute.xlu0 %1341 }
 0x1be   : > { %10280 = vst [vmem:[#allocation33_spill] sm:$0xff] %v7475_v38  ;;  %v7477_v0 = vpop.permute.xlu1 %1303 }
 0x1bf   : > { %10281 = vst [vmem:[#allocation34_spill] sm:$0xff] %v7477_v0  ;;  %1125 = vrot.lane.b32.xlu0 %v7479_v54, %s6839_s26  ;;  %v2496_v0 = vld [vmem:[#allocation2 + $0x6a] sm:$0xff] }
 0x1c0   : > { %1127 = vrot.lane.b32.xlu1 %v7481_v9, %s6839_s26 }
 0x1c1   : > { %v7487_v49 = vpop.permute.xlu0 %1109 }
 0x1c2   : > { %10284 = vst [vmem:[#allocation37_spill] sm:$0xff] %v7487_v49  ;;  %v7489_v37 = vpop.permute.xlu1 %2369 }
 0x1c3   : > { %10285 = vst [vmem:[#allocation38_spill] sm:$0xff] %v7489_v37  ;;  %2383 = vrot.lane.b32.xlu0 %v7479_v54, %s6838_s25  ;;  %v7509_v54 = vld [vmem:[#allocation2 + $0x189] sm:$0xff] }
 0x1c4   : > { %1319 = vrot.lane.b32.xlu1 %v7115_v43, %s6837_s24  ;;  %10289 = vst [vmem:[#allocation42_spill] sm:$0xff] %v7509_v54 }
 0x1c5   : > { %v7495_v38 = vpop.permute.xlu0 %2367 }
 0x1c6   : > { %10286 = vst [vmem:[#allocation39_spill] sm:$0xff] %v7495_v38  ;;  %v7497_v39 = vpop.permute.xlu1 %2405 }
 0x1c7   : > { %10287 = vst [vmem:[#allocation40_spill] sm:$0xff] %v7497_v39  ;;  %933 = vrot.lane.b32.xlu0 %v7125_v45, %s6838_s25 }
 0x1c8   : > { %2385 = vrot.lane.b32.xlu1 %v7481_v9, %s6838_s25 }
 0x1c9   : > { %v7505_v49 = vpop.permute.xlu0 %917 }
 0x1ca   : > { %v7507_v37 = vpop.permute.xlu1 %919 }
 0x1cb   : > { %1129 = vrot.lane.b32.xlu0 %v7503_v27, %s6839_s26 }
 0x1cc   : > { %2421 = vrot.lane.b32.xlu1 %v7509_v54, %s6838_s25 }
 0x1cd   : > { %v7515_v43 = vpop.permute.xlu0 %1113 }
 0x1ce   : > { %10290 = vst [vmem:[#allocation43_spill] sm:$0xff] %v7515_v43  ;;  %v7517_v39 = vpop.permute.xlu1 %1307 }
 0x1cf   : > { %10291 = vst [vmem:[#allocation44_spill] sm:$0xff] %v7517_v39  ;;  %1321 = vrot.lane.b32.xlu0 %v7125_v45, %s6837_s24  ;;  %v2266_v39 = vld [vmem:[#allocation2 + $0x3a] sm:$0xff] }
 0x1d0   : > { %935 = vrot.lane.b32.xlu1 %v7122_v44, %s6838_s25 }
 0x1d1   : > { %v7523_v38 = vpop.permute.xlu0 %1149 }
 0x1d2   : > { %10292 = vst [vmem:[#allocation45_spill] sm:$0xff] %v7523_v38  ;;  %v7525_v9 = vpop.permute.xlu1 %955 }
 0x1d3   : > { %2387 = vrot.lane.b32.xlu0 %v7503_v27, %s6838_s25  ;;  %v7544_v27 = vld [vmem:[#allocation2 + $0xc9] sm:$0xff] }
 0x1d4   : > { %1323 = vrot.lane.b32.xlu1 %v7122_v44, %s6837_s24  ;;  %10298 = vst [vmem:[#allocation51_spill] sm:$0xff] %v7544_v27 }
 0x1d5   : > { %v7531_v54 = vpop.permute.xlu0 %1305 }
 0x1d6   : > { %10293 = vst [vmem:[#allocation46_spill] sm:$0xff] %v7531_v54  ;;  %v7533_v43 = vpop.permute.xlu1 %1151 }
 0x1d7   : > { %10294 = vst [vmem:[#allocation47_spill] sm:$0xff] %v7533_v43  ;;  %937 = vrot.lane.b32.xlu0 %v7132_v46, %s6838_s25 }
 0x1d8   : > { %2561 = vrot.lane.b32.xlu1 %v2266_v39, %s6839_s26 }
 0x1d9   : > { %v7538_v45 = vpop.permute.xlu0 %2371 }
 0x1da   : > { %10295 = vst [vmem:[#allocation48_spill] sm:$0xff] %v7538_v45  ;;  %v7540_v38 = vpop.permute.xlu1 %1343 }
 0x1db   : > { %10296 = vst [vmem:[#allocation49_spill] sm:$0xff] %v7540_v38  ;;  %1133 = vrot.lane.b32.xlu0 %v7542_v31, %s6839_s26  ;;  %v2268_v38 = vld [vmem:[#allocation2 + $0x52] sm:$0xff] }
 0x1dc   : > { %1131 = vrot.lane.b32.xlu1 %v7544_v27, %s6839_s26 }
 0x1dd   : > { %v7550_v44 = vpop.permute.xlu0 %2407 }
 0x1de   : > { %10299 = vst [vmem:[#allocation52_spill] sm:$0xff] %v7550_v44  ;;  %v7552_v54 = vpop.permute.xlu1 %2409 }
 0x1df   : > { %10300 = vst [vmem:[#allocation53_spill] sm:$0xff] %v7552_v54  ;;  %1325 = vrot.lane.b32.xlu0 %v7132_v46, %s6837_s24  ;;  %v2265_v54 = vld [vmem:[#allocation2 + $0x32] sm:$0xff] }
 0x1e0   : > { %2389 = vrot.lane.b32.xlu1 %v7544_v27, %s6838_s25 }
 0x1e1   : > { %v7558_v39 = vpop.permute.xlu0 %921 }
 0x1e2   : > { %10301 = vst [vmem:[#allocation54_spill] sm:$0xff] %v7558_v39  ;;  %v7560_v45 = vpop.permute.xlu1 %959  ;;  %v2267_v39 = vld [vmem:[#allocation2 + $0x4a] sm:$0xff] }
 0x1e3   : > { %10302 = vst [vmem:[#allocation55_spill] sm:$0xff] %v7560_v45  ;;  %2391 = vrot.lane.b32.xlu0 %v7542_v31, %s6838_s25  ;;  %v2498_v45 = vld [vmem:[#allocation2 + $0x82] sm:$0xff] }
 0x1e4   : > { %2565 = vrot.lane.b32.xlu1 %v2268_v38, %s6839_s26 }
 0x1e5   : > { %v7565_v43 = vpop.permute.xlu0 %1309 }
 0x1e6   : > { %10303 = vst [vmem:[#allocation56_spill] sm:$0xff] %v7565_v43  ;;  %v7567_v44 = vpop.permute.xlu1 %1347  ;;  %v2269_v43 = vld [vmem:[#allocation2 + $0x62] sm:$0xff] }
 0x1e7   : > { %10304 = vst [vmem:[#allocation57_spill] sm:$0xff] %v7567_v44  ;;  %2559 = vrot.lane.b32.xlu0 %v2265_v54, %s6839_s26  ;;  %v2500_v44 = vld [vmem:[#allocation2 + $0x9a] sm:$0xff] }
 0x1e8   : > { %2569 = vrot.lane.b32.xlu1 %v2496_v0, %s6839_s26 }
 0x1e9   : > { %v7571_v46 = vpop.permute.xlu0 %957 }
 0x1ea   : > { %10305 = vst [vmem:[#allocation58_spill] sm:$0xff] %v7571_v46  ;;  %v7573_v27 = vpop.permute.xlu1 %1115  ;;  %v2502_v46 = vld [vmem:[#allocation2 + $0xb2] sm:$0xff] }
 0x1eb   : > { %10306 = vst [vmem:[#allocation59_spill] sm:$0xff] %v7573_v27  ;;  %2563 = vrot.lane.b32.xlu0 %v2267_v39, %s6839_s26  ;;  %v2497_v27 = vld [vmem:[#allocation2 + $0x7a] sm:$0xff] }
 0x1ec   : > { %2573 = vrot.lane.b32.xlu1 %v2498_v45, %s6839_s26 }
 0x1ed   : > { %v7577_v38 = vpop.permute.xlu0 %1153 }
 0x1ee   : > { %10307 = vst [vmem:[#allocation60_spill] sm:$0xff] %v7577_v38  ;;  %v7579_v31 = vpop.permute.xlu1 %2373  ;;  %v2504_v38 = vld [vmem:[#allocation2 + $0xca] sm:$0xff] }
 0x1ef   : > { %10308 = vst [vmem:[#allocation61_spill] sm:$0xff] %v7579_v31  ;;  %2567 = vrot.lane.b32.xlu0 %v2269_v43, %s6839_s26  ;;  %v2499_v31 = vld [vmem:[#allocation2 + $0x92] sm:$0xff] }
 0x1f0   : > { %2577 = vrot.lane.b32.xlu1 %v2500_v44, %s6839_s26 }
 0x1f1   : > { %v7583_v0 = vpop.permute.xlu0 %1345 }
 0x1f2   : > { %10309 = vst [vmem:[#allocation62_spill] sm:$0xff] %v7583_v0  ;;  %v7585_v54 = vpop.permute.xlu1 %923  ;;  %v2280_v0 = vld [vmem:[#allocation2 + $0xe2] sm:$0xff] }
 0x1f3   : > { %10310 = vst [vmem:[#allocation63_spill] sm:$0xff] %v7585_v54  ;;  %2571 = vrot.lane.b32.xlu0 %v2497_v27, %s6839_s26  ;;  %v2501_v54 = vld [vmem:[#allocation2 + $0xaa] sm:$0xff] }
 0x1f4   : > { %2581 = vrot.lane.b32.xlu1 %v2502_v46, %s6839_s26 }
 0x1f5   : > { %v7589_v45 = vpop.permute.xlu0 %2411 }
 0x1f6   : > { %10311 = vst [vmem:[#allocation64_spill] sm:$0xff] %v7589_v45  ;;  %v7591_v39 = vpop.permute.xlu1 %1119  ;;  %v2282_v45 = vld [vmem:[#allocation2 + $0xfa] sm:$0xff] }
 0x1f7   : > { %10312 = vst [vmem:[#allocation65_spill] sm:$0xff] %v7591_v39  ;;  %2575 = vrot.lane.b32.xlu0 %v2499_v31, %s6839_s26  ;;  %v2503_v39 = vld [vmem:[#allocation2 + $0xc2] sm:$0xff] }
 0x1f8   : > { %2585 = vrot.lane.b32.xlu1 %v2504_v38, %s6839_s26 }
 0x1f9   : > { %v7595_v43 = vpop.permute.xlu0 %961 }
 0x1fa   : > { %10313 = vst [vmem:[#allocation66_spill] sm:$0xff] %v7595_v43  ;;  %v7597_v44 = vpop.permute.xlu1 %1155  ;;  %v2505_v43 = vld [vmem:[#allocation2 + $0xda] sm:$0xff] }
 0x1fb   : > { %10314 = vst [vmem:[#allocation67_spill] sm:$0xff] %v7597_v44  ;;  %2579 = vrot.lane.b32.xlu0 %v2501_v54, %s6839_s26  ;;  %v2284_v44 = vld [vmem:[#allocation2 + $0x112] sm:$0xff] }
 0x1fc   : > { %2589 = vrot.lane.b32.xlu1 %v2280_v0, %s6839_s26 }
 0x1fd   : > { %v7601_v27 = vpop.permute.xlu0 %1349 }
 0x1fe   : > { %10315 = vst [vmem:[#allocation68_spill] sm:$0xff] %v7601_v27  ;;  %v7603_v46 = vpop.permute.xlu1 %1311  ;;  %v2281_v27 = vld [vmem:[#allocation2 + $0xf2] sm:$0xff] }
 0x1ff   : > { %10316 = vst [vmem:[#allocation69_spill] sm:$0xff] %v7603_v46  ;;  %2583 = vrot.lane.b32.xlu0 %v2503_v39, %s6839_s26  ;;  %v2286_v46 = vld [vmem:[#allocation2 + $0x12a] sm:$0xff] }
 0x200   : > { %2593 = vrot.lane.b32.xlu1 %v2282_v45, %s6839_s26 }
 0x201   : > { %v7607_v31 = vpop.permute.xlu0 %1117 }
 0x202   : > { %10317 = vst [vmem:[#allocation70_spill] sm:$0xff] %v7607_v31  ;;  %v7609_v38 = vpop.permute.xlu1 %2377  ;;  %v2288_v31 = vld [vmem:[#allocation2 + $0x142] sm:$0xff] }
 0x203   : > { %10318 = vst [vmem:[#allocation71_spill] sm:$0xff] %v7609_v38  ;;  %2587 = vrot.lane.b32.xlu0 %v2505_v43, %s6839_s26  ;;  %v2283_v38 = vld [vmem:[#allocation2 + $0x10a] sm:$0xff]  ;;  %v1020_v43 = vadd.f32 %v7108_v41, %v7261_v11  ;;  %v2287_v41 = vld [vmem:[#allocation2 + $0x13a] sm:$0xff]  ;;  %v2518_v11 = vld [vmem:[#allocation2 + $0x172] sm:$0xff] }
 0x204   : > { %2597 = vrot.lane.b32.xlu1 %v2284_v44, %s6839_s26 }
 0x205   : > { %v7613_v0 = vpop.permute.xlu0 %2375 }
 0x206   : > { %10319 = vst [vmem:[#allocation72_spill] sm:$0xff] %v7613_v0  ;;  %v7615_v54 = vpop.permute.xlu1 %2413  ;;  %v2290_v0 = vld [vmem:[#allocation2 + $0x15a] sm:$0xff] }
 0x207   : > { %10320 = vst [vmem:[#allocation73_spill] sm:$0xff] %v7615_v54  ;;  %2591 = vrot.lane.b32.xlu0 %v2281_v27, %s6839_s26  ;;  %v2285_v27 = vld [vmem:[#allocation2 + $0x122] sm:$0xff] }
 0x208   : > { %2601 = vrot.lane.b32.xlu1 %v2286_v46, %s6839_s26  ;;  %v1212_v46 = vadd.f32 %v7235_v4, %v1020_v43 }
 0x209   : > { %v7619_v45 = vpop.permute.xlu0 %925 }
 0x20a   : > { %10321 = vst [vmem:[#allocation74_spill] sm:$0xff] %v7619_v45  ;;  %v7621_v39 = vpop.permute.xlu1 %927 }
 0x20b   : > { %2595 = vrot.lane.b32.xlu0 %v2283_v38, %s6839_s26  ;;  %v1002_v38 = vadd.f32 %v7096_v36, %v7331_v24  ;;  %v1004_v36 = vadd.f32 %v7191_v57, %v7351_v56  ;;  %v1022_v57 = vadd.f32 %v7163_v52, %v7379_v48 }
 0x20c   : > { %2605 = vrot.lane.b32.xlu1 %v2288_v31, %s6839_s26 }
 0x20d   : > { %v7627_v44 = vpop.permute.xlu0 %1121  ;;  %v1194_v4 = vadd.f32 %v7281_v17, %v1002_v38  ;;  %v1196_v17 = vadd.f32 %v7297_v21, %v1004_v36  ;;  %v1214_v52 = vadd.f32 %v7305_v25, %v1022_v57  ;;  %v1005_v25 = vadd.f32 %v7227_v2, %v7413_v8  ;;  %v10333_v36 = vld [vmem:[#allocation18_spill] sm:$0xff] }
 0x20e   : > { %v7629_v54 = vpop.permute.xlu1 %1315 }
 0x20f   : > { %10322 = vst [vmem:[#allocation75_spill] sm:$0xff] %v7629_v54  ;;  %2599 = vrot.lane.b32.xlu0 %v2285_v27, %s6839_s26  ;;  %v1001_v27 = vadd.f32 %v7139_v47, %v7259_v10  ;;  %v2289_v54 = vld [vmem:[#allocation2 + $0x152] sm:$0xff]  ;;  %v1021_v47 = vadd.f32 %v7157_v51, %v7311_v26  ;;  %v1386_v10 = vadd.f32 %v7219_v63, %v1194_v4 }
 0x210   : > { %2609 = vrot.lane.b32.xlu1 %v2290_v0, %s6839_s26  ;;  %v1404_v0 = vadd.f32 %v7243_v6, %v1212_v46  ;;  %v1388_v21 = vadd.f32 %v7313_v28, %v1196_v17  ;;  %v1024_v26 = vadd.f32 %v7213_v62, %v7415_v16  ;;  %v1006_v62 = vadd.f32 %v7207_v61, %v7449_v59  ;;  %v10336_v17 = vld [vmem:[#allocation47_spill] sm:$0xff] }
 0x211   : > { %v7636_v45 = vpop.permute.xlu0 %1157  ;;  %v1193_v6 = vadd.f32 %v7233_v3, %v1001_v27  ;;  %v1213_v51 = vadd.f32 %v7287_v18, %v1021_v47  ;;  %v1003_v3 = vadd.f32 %v7151_v50, %v7369_v40  ;;  %v1197_v2 = vadd.f32 %v7367_v1, %v1005_v25  ;;  %v10342_v25 = vld [vmem:[#allocation25_spill] sm:$0xff] }
 0x212   : > { %v7638_v31 = vpop.permute.xlu1 %963  ;;  %v1216_v28 = vadd.f32 %v7387_v30, %v1024_v26  ;;  %v1008_v61 = vadd.f32 %v7315_v32, %v7507_v37  ;;  %v1026_v32 = vadd.f32 %v7273_v15, %v7525_v9  ;;  %v10328_v9 = vld [vmem:[#allocation55_spill] sm:$0xff]  ;;  %v10329_v15 = vld [vmem:[#allocation16_spill] sm:$0xff] }
 0x213   : > { %2603 = vrot.lane.b32.xlu0 %v2287_v41, %s6839_s26  ;;  %v1385_v63 = vadd.f32 %v7241_v5, %v1193_v6  ;;  %v1405_v18 = vadd.f32 %v7295_v20, %v1213_v51  ;;  %v1195_v50 = vadd.f32 %v7339_v42, %v1003_v3  ;;  %v1406_v5 = vadd.f32 %v7271_v14, %v1214_v52  ;;  %v10335_v6 = vld [vmem:[#allocation26_spill] sm:$0xff]  ;;  %v10339_v52 = vld [vmem:[#allocation43_spill] sm:$0xff] }
 0x214   : > { %2613 = vrot.lane.b32.xlu1 %v2518_v11, %s6839_s26  ;;  %v1023_v14 = vadd.f32 %v7197_v58, %v7431_v19  ;;  %v1408_v8 = vadd.f32 %v7397_v55, %v1216_v28  ;;  %v1198_v42 = vadd.f32 %v7433_v23, %v1006_v62  ;;  %v1025_v58 = vadd.f32 %v7263_v12, %v7465_v53  ;;  %v10327_v53 = vld [vmem:[#allocation31_spill] sm:$0xff]  ;;  %v10338_v51 = vld [vmem:[#allocation14_spill] sm:$0xff]  ;;  %v10343_v62 = vld [vmem:[#allocation49_spill] sm:$0xff] }
 0x215   : > { %v7648_v24 = vpop.permute.xlu0 %1313  ;;  %v1387_v20 = vadd.f32 %v7269_v13, %v1195_v50  ;;  %v1389_v19 = vadd.f32 %v7385_v29, %v1197_v2  ;;  %v1200_v55 = vadd.f32 %v7459_v34, %v1008_v61  ;;  %v10326_v29 = vld [vmem:[#allocation34_spill] sm:$0xff]  ;;  %v1218_v41 = vadd.f32 %v10327_v53, %v1026_v32  ;;  %v10341_v50 = vld [vmem:[#allocation11_spill] sm:$0xff]  ;;  %v10348_v32 = vld [vmem:[#allocation44_spill] sm:$0xff] }
 0x216   : > { %v7650_v43 = vpop.permute.xlu1 %1159  ;;  %v1215_v13 = vadd.f32 %v7377_v22, %v1023_v14  ;;  %v1390_v23 = vadd.f32 %v7361_v60, %v1198_v42  ;;  %v1217_v12 = vadd.f32 %v7439_v35, %v1025_v58  ;;  %v1007_v60 = vadd.f32 %v7249_v7, %v7505_v49  ;;  %v10332_v35 = vld [vmem:[#allocation54_spill] sm:$0xff]  ;;  %v10334_v7 = vld [vmem:[#allocation37_spill] sm:$0xff]  ;;  %v10344_v14 = vld [vmem:[#allocation59_spill] sm:$0xff] }
 0x217   : > { %2607 = vrot.lane.b32.xlu0 %v2289_v54, %s6839_s26  ;;  %v2517_v54 = vld [vmem:[#allocation2 + $0x16a] sm:$0xff]  ;;  %v1392_v34 = vadd.f32 %v10326_v29, %v1200_v55  ;;  %v1028_v11 = vadd.f32 %v10329_v15, %v10328_v9  ;;  %v1009_v47 = vadd.f32 %v10333_v36, %v10332_v35 }
 0x218   : > { %1487 = vrot.lane.b32.xlu1 %v1404_v0, %s6840_s27  ;;  %v1407_v22 = vadd.f32 %v7321_v33, %v1215_v13  ;;  %v10331_v33 = vld [vmem:[#allocation28_spill] sm:$0xff]  ;;  %v1199_v49 = vadd.f32 %v10334_v7, %v1007_v60  ;;  %v10346_v58 = vld [vmem:[#allocation46_spill] sm:$0xff]  ;;  %v10350_v60 = vld [vmem:[#allocation23_spill] sm:$0xff] }
 0x219   : > { %v7661_v56 = vpop.permute.xlu0 %2379  ;;  %v1409_v4 = vadd.f32 %v10331_v33, %v1217_v12  ;;  %v1220_v57 = vadd.f32 %v10336_v17, %v1028_v11  ;;  %v1201_v26 = vadd.f32 %v10339_v52, %v1009_v47  ;;  %v10349_v12 = vld [vmem:[#allocation66_spill] sm:$0xff]  ;;  %v10354_v11 = vld [vmem:[#allocation33_spill] sm:$0xff]  ;;  %v10356_v35 = vld [vmem:[#allocation19_spill] sm:$0xff] }
 0x21a   : > { %v7663_v46 = vpop.permute.xlu1 %1351  ;;  %v1391_v28 = vadd.f32 %v10342_v25, %v1199_v49  ;;  %v1029_v29 = vadd.f32 %v10350_v60, %v10349_v12  ;;  %v10357_v7 = vld [vmem:[#allocation60_spill] sm:$0xff]  ;;  %v10359_v17 = vld [vmem:[#allocation67_spill] sm:$0xff]  ;;  %v10364_v25 = vld [vmem:[#allocation62_spill] sm:$0xff] }
 0x21b   : > { %2611 = vrot.lane.b32.xlu0 %v2517_v54, %s6839_s26  ;;  %v10337_v54 = vld [vmem:[#allocation63_spill] sm:$0xff] }
 0x21c   : > { %1451 = vrot.lane.b32.xlu1 %v1386_v10, %s6840_s27  ;;  %v1410_v10 = vadd.f32 %v10335_v6, %v1218_v41  ;;  %v1010_v3 = vadd.f32 %v10338_v51, %v10337_v54  ;;  %v1221_v49 = vadd.f32 %v10357_v7, %v1029_v29  ;;  %v10358_v6 = vld [vmem:[#allocation69_spill] sm:$0xff] }
 0x21d   : > { %v7675_v48 = vpop.permute.xlu0 %2415 }
 0x21e   : > { %10323 = vst [vmem:[#allocation76_spill] sm:$0xff] %v7675_v48  ;;  %v7677_v38 = vpop.permute.xlu1 %2417  ;;  %v1202_v2 = vadd.f32 %v10344_v14, %v1010_v3 }
 0x21f   : > { %10324 = vst [vmem:[#allocation77_spill] sm:$0xff] %v7677_v38  ;;  %1449 = vrot.lane.b32.xlu0 %v1385_v63, %s6840_s27 }
 0x220   : > { %1455 = vrot.lane.b32.xlu1 %v1388_v21, %s6840_s27 }
 0x221   : > { %v7689_v16 = vpop.permute.xlu0 %929 }
 0x222   : > { %v7691_v40 = vpop.permute.xlu1 %967 }
 0x223   : > { %1489 = vrot.lane.b32.xlu0 %v1405_v18, %s6840_s27  ;;  %v10340_v18 = vld [vmem:[#allocation58_spill] sm:$0xff] }
 0x224   : > { %1491 = vrot.lane.b32.xlu1 %v1406_v5, %s6840_s27  ;;  %v1027_v5 = vadd.f32 %v10341_v50, %v10340_v18  ;;  %v10363_v50 = vld [vmem:[#allocation35_spill] sm:$0xff] }
 0x225   : > { %v7703_v59 = vpop.permute.xlu0 %1317 }
 0x226   : > { %v7705_v30 = vpop.permute.xlu1 %1123 }
 0x227   : > { %1453 = vrot.lane.b32.xlu0 %v1387_v20, %s6840_s27  ;;  %v1412_v20 = vadd.f32 %v10343_v62, %v1220_v57  ;;  %v10365_v62 = vld [vmem:[#allocation57_spill] sm:$0xff] }
 0x228   : > { %1495 = vrot.lane.b32.xlu1 %v1408_v8, %s6840_s27  ;;  %v10345_v8 = vld [vmem:[#allocation29_spill] sm:$0xff] }
 0x229   : > { %v7717_v37 = vpop.permute.xlu0 %965  ;;  %v1012_v42 = vadd.f32 %v10345_v8, %v7621_v39  ;;  %v10352_v39 = vld [vmem:[#allocation24_spill] sm:$0xff] }
 0x22a   : > { %v7719_v1 = vpop.permute.xlu1 %2381  ;;  %v1030_v41 = vadd.f32 %v10352_v39, %v7638_v31  ;;  %v10360_v31 = vld [vmem:[#allocation42_spill] sm:$0xff] }
 0x22b   : > { %10325 = vst [vmem:[#allocation78_spill] sm:$0xff] %v7719_v1  ;;  %1457 = vrot.lane.b32.xlu0 %v1389_v19, %s6840_s27  ;;  %v1393_v19 = vadd.f32 %v10346_v58, %v1201_v26  ;;  %v1032_v54 = vadd.f32 %v10360_v31, %v7691_v40  ;;  %v10362_v26 = vld [vmem:[#allocation70_spill] sm:$0xff]  ;;  %v10376_v31 = vld [vmem:[#allocation3_spill] sm:$0xff] }
 0x22c   : > { %1459 = vrot.lane.b32.xlu1 %v1390_v23, %s6840_s27  ;;  %v10347_v23 = vld [vmem:[#allocation45_spill] sm:$0xff]  ;;  %v1222_v57 = vadd.f32 %v10359_v17, %v1030_v41 }
 0x22d   : > { %v7731_v27 = vpop.permute.xlu0 %2419  ;;  %v1219_v55 = vadd.f32 %v10347_v23, %v1027_v5  ;;  %v1013_v5 = vadd.f32 %v10363_v50, %v7689_v16  ;;  %v1224_v14 = vadd.f32 %v7650_v43, %v1032_v54  ;;  %v10372_v41 = vld [vmem:[#allocation41_spill] sm:$0xff] }
 0x22e   : > { %10330 = vst [vmem:[#allocation34_spill] sm:$0xff] %v7731_v27  ;;  %v932_v0 = vpop.permute.xlu1 %931 }
 0x22f   : > { %1493 = vrot.lane.b32.xlu0 %v1407_v22, %s6840_s27  ;;  %v1394_v22 = vadd.f32 %v10348_v32, %v1202_v2  ;;  %v1411_v33 = vadd.f32 %v10354_v11, %v1219_v55  ;;  %v10366_v2 = vld [vmem:[#allocation36_spill] sm:$0xff]  ;;  %v1205_v55 = vadd.f32 %v7627_v44, %v1013_v5  ;;  %v1416_v16 = vadd.f32 %v7663_v46, %v1224_v14 }
 0x230   : > { %1463 = vrot.lane.b32.xlu1 %v1392_v34, %s6840_s27  ;;  %v10351_v34 = vld [vmem:[#allocation65_spill] sm:$0xff]  ;;  %v1014_v40 = vadd.f32 %v10366_v2, %v932_v0  ;;  %v10368_v32 = vld [vmem:[#allocation32_spill] sm:$0xff]  ;;  %v10370_v0 = vld [vmem:[#allocation51_spill] sm:$0xff] }
 0x231   : > { %v7743_v63 = vpop.permute.xlu0 %1125  ;;  %v1204_v53 = vadd.f32 %v10351_v34, %v1012_v42  ;;  %v1397_v34 = vadd.f32 %v7648_v24, %v1205_v55 }
 0x232   : > { %v1128_v21 = vpop.permute.xlu1 %1127  ;;  %v1206_v12 = vadd.f32 %v7705_v30, %v1014_v40  ;;  %v2680_v40 = vld [vmem:[#allocation2 + $0x9] sm:$0xff] }
 0x233   : > { %1497 = vrot.lane.b32.xlu0 %v1409_v4, %s6840_s27  ;;  %v10355_v4 = vld [vmem:[#allocation74_spill] sm:$0xff] }
 0x234   : > { %1499 = vrot.lane.b32.xlu1 %v1410_v10, %s6840_s27  ;;  %v1011_v47 = vadd.f32 %v10356_v35, %v10355_v4  ;;  %v1396_v10 = vadd.f32 %v10358_v6, %v1204_v53  ;;  %v10371_v53 = vld [vmem:[#allocation75_spill] sm:$0xff]  ;;  %v6780_v4 = vld [vmem:[#allocation2 + $0xe1] sm:$0xff] }
 0x235   : > { %v7755_v61 = vpop.permute.xlu0 %2383  ;;  %v1398_v46 = vadd.f32 %v10371_v53, %v1206_v12  ;;  %v2681_v12 = vld [vmem:[#allocation2 + $0x19] sm:$0xff]  ;;  %v2688_v53 = vld [vmem:[#allocation2 + $0x69] sm:$0xff] }
 0x236   : > { %v1320_v13 = vpop.permute.xlu1 %1319  ;;  %v1203_v18 = vadd.f32 %v10362_v26, %v1011_v47  ;;  %v10373_v47 = vld [vmem:[#allocation4_spill] sm:$0xff] }
 0x237   : > { %1461 = vrot.lane.b32.xlu0 %v1391_v28, %s6840_s27  ;;  %v1413_v28 = vadd.f32 %v10364_v25, %v1221_v49  ;;  %v1018_v7 = vadd.f32 %v6780_v4, %v10373_v47  ;;  %v10374_v49 = vld [vmem:[#allocation68_spill] sm:$0xff]  ;;  %v2687_v47 = vld [vmem:[#allocation2 + $0x61] sm:$0xff] }
 0x238   : > { %1503 = vrot.lane.b32.xlu1 %v1412_v20, %s6840_s27  ;;  %v1414_v20 = vadd.f32 %v10365_v62, %v1222_v57 }
 0x239   : > { %v934_v9 = vpop.permute.xlu0 %933 }
 0x23a   : > { %v7767_v15 = vpop.permute.xlu1 %2385  ;;  %v1015_v11 = vadd.f32 %v10372_v41, %v934_v9  ;;  %v10375_v9 = vld [vmem:[#allocation7_spill] sm:$0xff] }
 0x23b   : > { %10353 = vst [vmem:[#allocation31_spill] sm:$0xff] %v7767_v15  ;;  %1465 = vrot.lane.b32.xlu0 %v1393_v19, %s6840_s27  ;;  %v10367_v19 = vld [vmem:[#allocation56_spill] sm:$0xff]  ;;  %v1019_v54 = vadd.f32 %v10376_v31, %v10375_v9  ;;  %v2704_v9 = vld [vmem:[#allocation2 + $0x129] sm:$0xff] }
 0x23c   : > { %1467 = vrot.lane.b32.xlu1 %v1394_v22, %s6840_s27  ;;  %v1395_v23 = vadd.f32 %v10367_v19, %v1203_v18  ;;  %v1031_v22 = vadd.f32 %v10368_v32, %v7717_v37  ;;  %v1207_v24 = vadd.f32 %v7743_v63, %v1015_v11  ;;  %v10377_v18 = vld [vmem:[#allocation50_spill] sm:$0xff]  ;;  %v2684_v32 = vld [vmem:[#allocation2 + $0x39] sm:$0xff] }
 0x23d   : > { %v1130_v3 = vpop.permute.xlu0 %1129 }
 0x23e   : > { %v7779_v52 = vpop.permute.xlu1 %2421  ;;  %v1223_v44 = vadd.f32 %v7636_v45, %v1031_v22  ;;  %v1399_v26 = vadd.f32 %v7703_v59, %v1207_v24 }
 0x23f   : > { %10361 = vst [vmem:[#allocation55_spill] sm:$0xff] %v7779_v52  ;;  %1501 = vrot.lane.b32.xlu0 %v1411_v33, %s6840_s27 }
 0x240   : > { %1471 = vrot.lane.b32.xlu1 %v1396_v10, %s6840_s27  ;;  %v1415_v6 = vadd.f32 %v10374_v49, %v1223_v44  ;;  %v2683_v44 = vld [vmem:[#allocation2 + $0x31] sm:$0xff] }
 0x241   : > { %v1322_v42 = vpop.permute.xlu0 %1321 }
 0x242   : > { %v936_v58 = vpop.permute.xlu1 %935 }
 0x243   : > { %1505 = vrot.lane.b32.xlu0 %v1413_v28, %s6840_s27  ;;  %v1016_v60 = vadd.f32 %v10370_v0, %v936_v58 }
 0x244   : > { %1507 = vrot.lane.b32.xlu1 %v1414_v20, %s6840_s27 }
 0x245   : > { %v7798_v43 = vpop.permute.xlu0 %2387  ;;  %v1208_v37 = vadd.f32 %v1128_v21, %v1016_v60  ;;  %v2686_v60 = vld [vmem:[#allocation2 + $0x51] sm:$0xff] }
 0x246   : > { %10369 = vst [vmem:[#allocation16_spill] sm:$0xff] %v7798_v43  ;;  %v1324_v29 = vpop.permute.xlu1 %1323 }
 0x247   : > { %1469 = vrot.lane.b32.xlu0 %v1395_v23, %s6840_s27  ;;  %v1400_v45 = vadd.f32 %v1320_v13, %v1208_v37  ;;  %v2682_v23 = vld [vmem:[#allocation2 + $0x21] sm:$0xff]  ;;  %v2685_v37 = vld [vmem:[#allocation2 + $0x49] sm:$0xff] }
 0x248   : > { %1511 = vrot.lane.b32.xlu1 %v1416_v16, %s6840_s27  ;;  %v2679_v16 = vld [vmem:[#allocation2 + $0x1] sm:$0xff] }
 0x249   : > { %v938_v33 = vpop.permute.xlu0 %937 }
 0x24a   : > { %v7807_v30 = vpop.permute.xlu1 %2561  ;;  %v1017_v5 = vadd.f32 %v10377_v18, %v938_v33 }
 0x24b   : > { %1473 = vrot.lane.b32.xlu0 %v1397_v34, %s6840_s27 }
 0x24c   : > { %1475 = vrot.lane.b32.xlu1 %v1398_v46, %s6840_s27  ;;  %v1209_v13 = vadd.f32 %v1130_v3, %v1017_v5 }
 0x24d   : > { %v1134_v10 = vpop.permute.xlu0 %1133 }
 0x24e   : > { %v1132_v17 = vpop.permute.xlu1 %1131  ;;  %v1211_v63 = vadd.f32 %v1134_v10, %v1019_v54  ;;  %v1401_v59 = vadd.f32 %v1322_v42, %v1209_v13  ;;  %v2700_v10 = vld [vmem:[#allocation2 + $0xf9] sm:$0xff]  ;;  %v2701_v54 = vld [vmem:[#allocation2 + $0x109] sm:$0xff] }
 0x24f   : > { %v1210_v57 = vadd.f32 %v1132_v17, %v1018_v7  ;;  %1509 = vrot.lane.b32.xlu0 %v1415_v6, %s6840_s27  ;;  %v2702_v17 = vld [vmem:[#allocation2 + $0x111] sm:$0xff] }
 0x250   : > { %1479 = vrot.lane.b32.xlu1 %v1400_v45, %s6840_s27  ;;  %v2698_v45 = vld [vmem:[#allocation2 + $0xe1] sm:$0xff] }
 0x251   : > { %v1402_v21 = vadd.f32 %v1324_v29, %v1210_v57  ;;  %v1326_v25 = vpop.permute.xlu0 %1325 }
 0x252   : > { %v7820_v28 = vpop.permute.xlu1 %2389  ;;  %v1403_v62 = vadd.f32 %v1326_v25, %v1211_v63  ;;  %v2703_v25 = vld [vmem:[#allocation2 + $0x121] sm:$0xff]  ;;  %v2708_v63 = vld [vmem:[#allocation2 + $0x159] sm:$0xff] }
 0x253   : > { %10378 = vst [vmem:[#allocation28_spill] sm:$0xff] %v7820_v28  ;;  %1477 = vrot.lane.b32.xlu0 %v1399_v26, %s6840_s27  ;;  %v2706_v26 = vld [vmem:[#allocation2 + $0x141] sm:$0xff] }
 0x254   : > { %1483 = vrot.lane.b32.xlu1 %v1402_v21, %s6840_s27  ;;  %v2699_v21 = vld [vmem:[#allocation2 + $0xf1] sm:$0xff] }
 0x255   : > { %v7824_v20 = vpop.permute.xlu0 %2391 }
 0x256   : > { %10379 = vst [vmem:[#allocation54_spill] sm:$0xff] %v7824_v20  ;;  %v7826_v14 = vpop.permute.xlu1 %2565 }
 0x257   : > { %1485 = vrot.lane.b32.xlu0 %v1403_v62, %s6840_s27 }
 0x258   : > { %2745 = vrot.lane.b32.xlu1 %v2680_v40, %s6837_s24  ;;  %v2705_v40 = vld [vmem:[#allocation2 + $0x139] sm:$0xff] }
 0x259   : > { %v7830_v58 = vpop.permute.xlu0 %2559 }
 0x25a   : > { %v7832_v19 = vpop.permute.xlu1 %2569 }
 0x25b   : > { %1481 = vrot.lane.b32.xlu0 %v1401_v59, %s6840_s27 }
 0x25c   : > { %2749 = vrot.lane.b32.xlu1 %v2682_v23, %s6837_s24 }
 0x25d   : > { %v7836_v3 = vpop.permute.xlu0 %2563 }
 0x25e   : > { %v7838_v55 = vpop.permute.xlu1 %2573 }
 0x25f   : > { %10380 = vst [vmem:[#allocation18_spill] sm:$0xff] %v7838_v55  ;;  %2743 = vrot.lane.b32.xlu0 %v2679_v16, %s6837_s24  ;;  %v2707_v16 = vld [vmem:[#allocation2 + $0x151] sm:$0xff] }
 0x260   : > { %2753 = vrot.lane.b32.xlu1 %v2684_v32, %s6837_s24 }
 0x261   : > { %v7842_v42 = vpop.permute.xlu0 %2567 }
 0x262   : > { %v7844_v22 = vpop.permute.xlu1 %2577 }
 0x263   : > { %10381 = vst [vmem:[#allocation37_spill] sm:$0xff] %v7844_v22  ;;  %2747 = vrot.lane.b32.xlu0 %v2681_v12, %s6837_s24 }
 0x264   : > { %2757 = vrot.lane.b32.xlu1 %v2686_v60, %s6837_s24  ;;  %v2709_v60 = vld [vmem:[#allocation2 + $0x169] sm:$0xff] }
 0x265   : > { %v7848_v29 = vpop.permute.xlu0 %2571 }
 0x266   : > { %v7850_v34 = vpop.permute.xlu1 %2581 }
 0x267   : > { %10382 = vst [vmem:[#allocation26_spill] sm:$0xff] %v7850_v34  ;;  %2751 = vrot.lane.b32.xlu0 %v2683_v44, %s6837_s24 }
 0x268   : > { %2761 = vrot.lane.b32.xlu1 %v2688_v53, %s6837_s24 }
 0x269   : > { %v7854_v46 = vpop.permute.xlu0 %2575 }
 0x26a   : > { %10383 = vst [vmem:[#allocation47_spill] sm:$0xff] %v7854_v46  ;;  %v7856_v11 = vpop.permute.xlu1 %2585 }
 0x26b   : > { %10384 = vst [vmem:[#allocation63_spill] sm:$0xff] %v7856_v11  ;;  %2755 = vrot.lane.b32.xlu0 %v2685_v37, %s6837_s24  ;;  %v6781_v11 = vld [vmem:[#allocation2 + $0x22] sm:$0xff] }
 0x26c   : > { %2765 = vrot.lane.b32.xlu1 %v10338_v51, %s6837_s24 }
 0x26d   : > { %v7861_v33 = vpop.permute.xlu0 %2579 }
 0x26e   : > { %10385 = vst [vmem:[#allocation14_spill] sm:$0xff] %v7861_v33  ;;  %v7863_v4 = vpop.permute.xlu1 %2589  ;;  %v10404_v33 = vld [vmem:[#allocation8_spill] sm:$0xff] }
 0x26f   : > { %10386 = vst [vmem:[#allocation43_spill] sm:$0xff] %v7863_v4  ;;  %2759 = vrot.lane.b32.xlu0 %v2687_v47, %s6837_s24 }
 0x270   : > { %2769 = vrot.lane.b32.xlu1 %v10345_v8, %s6837_s24 }
 0x271   : > { %v7868_v7 = vpop.permute.xlu0 %2583 }
 0x272   : > { %10387 = vst [vmem:[#allocation58_spill] sm:$0xff] %v7868_v7  ;;  %v7870_v49 = vpop.permute.xlu1 %2593 }
 0x273   : > { %10388 = vst [vmem:[#allocation11_spill] sm:$0xff] %v7870_v49  ;;  %2763 = vrot.lane.b32.xlu0 %v10333_v36, %s6837_s24 }
 0x274   : > { %2773 = vrot.lane.b32.xlu1 %v10366_v2, %s6837_s24 }
 0x275   : > { %v7876_v51 = vpop.permute.xlu0 %2587 }
 0x276   : > { %10389 = vst [vmem:[#allocation25_spill] sm:$0xff] %v7876_v51  ;;  %v7878_v6 = vpop.permute.xlu1 %2597  ;;  %v10402_v51 = vld [vmem:[#allocation10_spill] sm:$0xff] }
 0x277   : > { %10390 = vst [vmem:[#allocation49_spill] sm:$0xff] %v7878_v6  ;;  %2767 = vrot.lane.b32.xlu0 %v10356_v35, %s6837_s24  ;;  %v2456_v34 = vadd.f32 %v6781_v11, %v10402_v51 }
 0x278   : > { %2777 = vrot.lane.b32.xlu1 %v10370_v0, %s6837_s24 }
 0x279   : > { %v7884_v8 = vpop.permute.xlu0 %2591  ;;  %v2648_v15 = vadd.f32 %v10404_v33, %v2456_v34 }
 0x27a   : > { %10391 = vst [vmem:[#allocation59_spill] sm:$0xff] %v7884_v8  ;;  %v7886_v24 = vpop.permute.xlu1 %2601 }
 0x27b   : > { %10392 = vst [vmem:[#allocation29_spill] sm:$0xff] %v7886_v24  ;;  %2771 = vrot.lane.b32.xlu0 %v10363_v50, %s6837_s24 }
 0x27c   : > { %2781 = vrot.lane.b32.xlu1 %v2698_v45, %s6837_s24 }
 0x27d   : > { %v7891_v36 = vpop.permute.xlu0 %2595 }
 0x27e   : > { %10393 = vst [vmem:[#allocation46_spill] sm:$0xff] %v7891_v36  ;;  %v7893_v2 = vpop.permute.xlu1 %2605 }
 0x27f   : > { %10394 = vst [vmem:[#allocation45_spill] sm:$0xff] %v7893_v2  ;;  %2775 = vrot.lane.b32.xlu0 %v10372_v41, %s6837_s24 }
 0x280   : > { %2785 = vrot.lane.b32.xlu1 %v2700_v10, %s6837_s24 }
 0x281   : > { %v7898_v35 = vpop.permute.xlu0 %2599 }
 0x282   : > { %10395 = vst [vmem:[#allocation44_spill] sm:$0xff] %v7898_v35  ;;  %v7900_v0 = vpop.permute.xlu1 %2609 }
 0x283   : > { %10396 = vst [vmem:[#allocation66_spill] sm:$0xff] %v7900_v0  ;;  %2779 = vrot.lane.b32.xlu0 %v10377_v18, %s6837_s24 }
 0x284   : > { %2789 = vrot.lane.b32.xlu1 %v2702_v17, %s6837_s24 }
 0x285   : > { %v7905_v50 = vpop.permute.xlu0 %2603 }
 0x286   : > { %10397 = vst [vmem:[#allocation23_spill] sm:$0xff] %v7905_v50  ;;  %v7907_v57 = vpop.permute.xlu1 %2613 }
 0x287   : > { %10398 = vst [vmem:[#allocation65_spill] sm:$0xff] %v7907_v57  ;;  %2783 = vrot.lane.b32.xlu0 %v2699_v21, %s6837_s24 }
 0x288   : > { %2793 = vrot.lane.b32.xlu1 %v2704_v9, %s6837_s24 }
 0x289   : > { %v7911_v41 = vpop.permute.xlu0 %2607 }
 0x28a   : > { %10399 = vst [vmem:[#allocation24_spill] sm:$0xff] %v7911_v41  ;;  %v7913_v31 = vpop.permute.xlu1 %1487  ;;  %v6842_v41 = vmov 1934713408  }
 0x28b   : > { %2787 = vrot.lane.b32.xlu0 %v2701_v54, %s6837_s24  ;;  %v1612_v48 = vunpack.c.l.s4 %v6842_v41 }
 0x28c   : > { %2797 = vrot.lane.b32.xlu1 %v2706_v26, %s6837_s24 }
 0x28d   : > { %v7917_v18 = vpop.permute.xlu0 %2611  ;;  %v1613_v49 = vunpack.c.0.s8 %v1612_v48 }
 0x28e   : > { %10400 = vst [vmem:[#allocation33_spill] sm:$0xff] %v7917_v18  ;;  %v7919_v5 = vpop.permute.xlu1 %1451 }
 0x28f   : > { %2791 = vrot.lane.b32.xlu0 %v2703_v25, %s6837_s24 }
 0x290   : > { %2801 = vrot.lane.b32.xlu1 %v2708_v63, %s6837_s24 }
 0x291   : > { %v7923_v13 = vpop.permute.xlu0 %1449 }
 0x292   : > { %v7925_v62 = vpop.permute.xlu1 %1455 }
 0x293   : > { %2795 = vrot.lane.b32.xlu0 %v2705_v40, %s6837_s24  ;;  %v6841_v40 = vmov 1983009808  }
 0x294   : > { %2805 = vrot.lane.b32.xlu1 %v10352_v39, %s6837_s24 }
 0x295   : > { %v7930_v59 = vpop.permute.xlu0 %1489 }
 0x296   : > { %v7932_v23 = vpop.permute.xlu1 %1491 }
 0x297   : > { %2799 = vrot.lane.b32.xlu0 %v2707_v16, %s6837_s24  ;;  %v1548_v16 = vunpack.c.l.s4 %v6841_v40 }
 0x299   : > { %v7935_v32 = vpop.permute.xlu0 %1453  ;;  %v1549_v0 = vunpack.c.0.s8 %v1548_v16 }
 0x29a   : > { %v7937_v12 = vpop.permute.xlu1 %1495 }
 0x29b   : > { %2803 = vrot.lane.b32.xlu0 %v2709_v60, %s6837_s24  ;;  %v1550_v60 = vlaneseq }
 0x29d   : > { %v7940_v44 = vpop.permute.xlu0 %1457  ;;  %v1551_v18 = vshrl.u32 %v1550_v60, 7 }
 0x29e   : > { %v1460_v53 = vpop.permute.xlu1 %1459 }
 0x29f   : > { %v7974_v24 = vsub.s32 %v1549_v0, %v1551_v18  ;;  %v1817_v50 = vcombine.low %v7919_v5, %v1460_v53  ;;  %v7990_v20 = vsub.s32 %v1613_v49, %v1551_v18  ;;  %v1545_v49 = vcombine.low %v7923_v13, %v7940_v44 }
 0x2a1   : > { %v7942_v37 = vpop.permute.xlu0 %1493  ;;  %10401 = vst [vmem:[#allocation74_spill] sm:$0xff] %v7974_v24  ;;  %v1825_v4 = vrot.slane %v1817_v50, %v7974_v24  ;;  %10403 = vst [vmem:[#allocation19_spill] sm:$0xff] %v7990_v20  ;;  %v1818_v50 = vcombine.high %v7919_v5, %v1460_v53 }
 0x2a2   : > { %v7944_v39 = vpop.permute.xlu1 %1463 }
 0x2a3   : > { %v1833_v2 = vcombine.low %v7925_v62, %v7944_v39  ;;  %v8006_v46 = vrot.slane %v1818_v50, %v7974_v24  ;;  %v1834_v34 = vcombine.high %v7925_v62, %v7944_v39 }
 0x2a5   : > { %v7946_v47 = vpop.permute.xlu0 %1497  ;;  %v1841_v60 = vrot.slane %v1833_v2, %v7974_v24 }
 0x2a6   : > { %v7948_v45 = vpop.permute.xlu1 %1499 }
 0x2a7   : > { %v1881_v7 = vcombine.low %v1825_v4, %v1841_v60  ;;  %v1882_v1 = vcombine.high %v1825_v4, %v1841_v60 }
 0x2a9   : > { %v7950_v10 = vpop.permute.xlu0 %1461  ;;  %v1889_v11 = vrot.slane %v1881_v7, %v7990_v20 }
 0x2aa   : > { %v7952_v17 = vpop.permute.xlu1 %1503 }
 0x2ad   : > { %v7954_v21 = vpop.permute.xlu0 %1465 }
 0x2ae   : > { %v7956_v9 = vpop.permute.xlu1 %1467 }
 0x2b1   : > { %v7958_v54 = vpop.permute.xlu0 %1501 }
 0x2b2   : > { %v7960_v26 = vpop.permute.xlu1 %1471 }
 0x2b5   : > { %v7962_v25 = vpop.permute.xlu0 %1505 }
 0x2b6   : > { %v7964_v63 = vpop.permute.xlu1 %1507 }
 0x2b9   : > { %v7966_v57 = vpop.permute.xlu0 %1469 }
 0x2ba   : > { %v7968_v52 = vpop.permute.xlu1 %1511 }
 0x2bd   : > { %v7970_v38 = vpop.permute.xlu0 %1473 }
 0x2be   : > { %v1476_v27 = vpop.permute.xlu1 %1475  ;;  %v1577_v4 = vcombine.low %v7954_v21, %v7970_v38 }
 0x2bf   : > { %v1849_v6 = vcombine.low %v7956_v9, %v1476_v27 }
 0x2c1   : > { %v7977_v40 = vpop.permute.xlu0 %1509  ;;  %v1857_v41 = vrot.slane %v1849_v6, %v7974_v24  ;;  %v1713_v6 = vcombine.low %v7946_v47, %v7962_v25 }
 0x2c2   : > { %v1480_v35 = vpop.permute.xlu1 %1479  ;;  %v1729_v48 = vcombine.low %v7958_v54, %v7977_v40 }
 0x2c3   : > { %v1865_v16 = vcombine.low %v7960_v26, %v1480_v35  ;;  %v1866_v43 = vcombine.high %v7960_v26, %v1480_v35  ;;  %v1721_v33 = vrot.slane %v1713_v6, %v7974_v24  ;;  %v8026_v26 = vrot.slane %v1834_v34, %v7974_v24 }
 0x2c4   : > { %v1737_v51 = vrot.slane %v1729_v48, %v7974_v24  ;;  %v1850_v48 = vcombine.high %v7956_v9, %v1476_v27  ;;  %v1730_v6 = vcombine.high %v7958_v54, %v7977_v40  ;;  %v8048_v40 = vrot.slane %v1577_v4, %v7974_v24 }
 0x2c5   : > { %v1873_v36 = vrot.slane %v1865_v16, %v7974_v24  ;;  %v7985_v0 = vpop.permute.xlu0 %1477  ;;  %v1880_v27 = vrot.slane %v1866_v43, %v7974_v24  ;;  %v1896_v43 = vrot.slane %v1882_v1, %v7990_v20  ;;  %v1714_v1 = vcombine.high %v7946_v47, %v7962_v25 }
 0x2c6   : > { %v7987_v8 = vpop.permute.xlu1 %1483  ;;  %v1593_v35 = vcombine.low %v7966_v57, %v7985_v0  ;;  %v8057_v34 = vrot.slane %v1545_v49, %v7974_v24  ;;  %v1744_v47 = vrot.slane %v1730_v6, %v7974_v24 }
 0x2c7   : > { %v1913_v28 = vcombine.low %v1857_v41, %v1873_v36 }
 0x2c9   : > { %v1486_v2 = vpop.permute.xlu0 %1485  ;;  %v1921_v16 = vrot.slane %v1913_v28, %v7990_v20  ;;  %v1914_v28 = vcombine.high %v1857_v41, %v1873_v36 }
 0x2ca   : > { %v2746_v22 = vpop.permute.xlu1 %2745  ;;  %v1697_v18 = vcombine.low %v1486_v2, %v7942_v37 }
 0x2cb   : > { %v2840_v5 = vadd.f32 %v2746_v22, %v2648_v15  ;;  %v1945_v53 = vcombine.low %v1889_v11, %v1921_v16  ;;  %v1561_v15 = vcombine.low %v7935_v32, %v7950_v10  ;;  %v1777_v22 = vcombine.low %v1721_v33, %v1737_v51 }
 0x2cc   : > { %v1705_v36 = vrot.slane %v1697_v18, %v7974_v24  ;;  %v1946_v39 = vcombine.high %v1889_v11, %v1921_v16  ;;  %v1928_v9 = vrot.slane %v1914_v28, %v7990_v20  ;;  %v1864_v18 = vrot.slane %v1850_v48, %v7974_v24 }
 0x2cd   : > { %v1482_v55 = vpop.permute.xlu0 %1481  ;;  %2147 = vrot.lane.b32.xlu0 %v1945_v53, %s6839_s26  ;;  %2905 = vrot.lane.b32.xlu1 %v2840_v5, %s6843_s28  ;;  %v8033_v5 = vrot.slane %v1593_v35, %v7974_v24  ;;  %v1778_v16 = vcombine.high %v1721_v33, %v1737_v51  ;;  %v1698_v11 = vcombine.high %v1486_v2, %v7942_v37 }
 0x2ce   : > { %v1681_v7 = vcombine.low %v1482_v55, %v7930_v59  ;;  %v1682_v60 = vcombine.high %v1482_v55, %v7930_v59  ;;  %v8042_v59 = vrot.slane %v1777_v22, %v7990_v20  ;;  %v8045_v54 = vrot.slane %v1561_v15, %v7974_v24 }
 0x2cf   : > { %v1929_v28 = vcombine.low %v1864_v18, %v1880_v27  ;;  %v1947_v53 = vcombine.low %v1896_v43, %v1928_v9  ;;  %v1897_v33 = vcombine.low %v8006_v46, %v8026_v26  ;;  %v1712_v25 = vrot.slane %v1698_v11, %v7974_v24 }
 0x2d0   : > { %v1689_v62 = vrot.slane %v1681_v7, %v7974_v24  ;;  %v1696_v51 = vrot.slane %v1682_v60, %v7974_v24  ;;  %v1641_v7 = vcombine.low %v8048_v40, %v8033_v5  ;;  %v1792_v48 = vrot.slane %v1778_v16, %v7990_v20 }
 0x2d1   : > { %2155 = vrot.lane.b32.xlu0 %v1946_v39, %s6844_s29  ;;  %v1609_v49 = vcombine.low %v8057_v34, %v8045_v54  ;;  %v1948_v35 = vcombine.high %v1896_v43, %v1928_v9  ;;  %v1937_v15 = vrot.slane %v1929_v28, %v7990_v20  ;;  %v1728_v22 = vrot.slane %v1714_v1, %v7974_v24 }
 0x2d2   : > { %v1745_v41 = vcombine.low %v1689_v62, %v1705_v36  ;;  %v1746_v50 = vcombine.high %v1689_v62, %v1705_v36  ;;  %v1761_v36 = vcombine.low %v1696_v51, %v1712_v25  ;;  %v1905_v4 = vrot.slane %v1897_v33, %v7990_v20  ;;  %v8094_v33 = vpop.permute.xlu0 %2743 }
 0x2d3   : > { %v8075_v39 = vrot.slane %v1641_v7, %v7990_v20  ;;  %v1793_v60 = vcombine.low %v1728_v22, %v1744_v47  ;;  %v8079_v9 = vrot.slane %v1609_v49, %v7990_v20  ;;  %v1898_v11 = vcombine.high %v8006_v46, %v8026_v26 }
 0x2d4   : > { %v8039_v55 = vrot.slane %v1745_v41, %v7990_v20  ;;  %v1760_v2 = vrot.slane %v1746_v50, %v7990_v20  ;;  %v1930_v41 = vcombine.high %v1864_v18, %v1880_v27  ;;  %v1949_v50 = vcombine.low %v1905_v4, %v1937_v15 }
 0x2d5   : > { %2163 = vrot.lane.b32.xlu0 %v1947_v53, %s6845_s30  ;;  %v1769_v16 = vrot.slane %v1761_v36, %v7990_v20  ;;  %v1673_v28 = vcombine.low %v8079_v9, %v8075_v39  ;;  %v1801_v27 = vrot.slane %v1793_v60, %v7990_v20  ;;  %v1950_v18 = vcombine.high %v1905_v4, %v1937_v15 }
 0x2d6   : > { %v1810_v37 = vcombine.high %v8039_v55, %v8042_v59  ;;  %v1811_v62 = vcombine.low %v1760_v2, %v1792_v48  ;;  %v1809_v6 = vcombine.low %v8039_v55, %v8042_v59  ;;  %v1812_v43 = vcombine.high %v1760_v2, %v1792_v48  ;;  %v8116_v60 = vpop.permute.xlu0 %2747 }
 0x2d7   : > { %v1944_v53 = vrot.slane %v1930_v41, %v7990_v20  ;;  %v1953_v1 = vcombine.low %v7987_v8, %v7932_v23  ;;  %v1813_v2 = vcombine.low %v1769_v16, %v1801_v27  ;;  %v1912_v46 = vrot.slane %v1898_v11, %v7990_v20 }
 0x2d8   : > { %2093 = vrot.lane.b32.xlu1 %v1810_v37, %s6846_s4  ;;  %v1762_v37 = vcombine.high %v1696_v51, %v1712_v25  ;;  %v1969_v26 = vcombine.low %v7913_v31, %v7937_v12  ;;  %v2001_v7 = vcombine.low %v7952_v17, %v7968_v52  ;;  %v1794_v48 = vcombine.high %v1728_v22, %v1744_v47 }
 0x2d9   : > { %2171 = vrot.lane.b32.xlu0 %v1948_v35, %s6840_s27  ;;  %v1951_v49 = vcombine.low %v1912_v46, %v1944_v53  ;;  %v1985_v51 = vcombine.low %v7948_v45, %v7964_v63  ;;  %v1961_v25 = vrot.slane %v1953_v1, %v7974_v24  ;;  %v1814_v35 = vcombine.high %v1769_v16, %v1801_v27 }
 0x2da   : > { %v1776_v15 = vrot.slane %v1762_v37, %v7990_v20  ;;  %v1977_v36 = vrot.slane %v1969_v26, %v7974_v24  ;;  %v1808_v47 = vrot.slane %v1794_v48, %v7990_v20  ;;  %v1594_v22 = vcombine.high %v7966_v57, %v7985_v0 }
 0x2db   : > { %v1642_v4 = vcombine.high %v8048_v40, %v8033_v5  ;;  %v1952_v41 = vcombine.high %v1912_v46, %v1944_v53  ;;  %v1562_v11 = vcombine.high %v7935_v32, %v7950_v10  ;;  %v1610_v27 = vcombine.high %v8057_v34, %v8045_v54  ;;  %v8133_v54 = vpop.permute.xlu1 %2749  ;;  %v8138_v53 = vpop.permute.xlu0 %2751 }
 0x2dc   : > { %2101 = vrot.lane.b32.xlu1 %v1811_v62, %s6847_s5  ;;  %v2009_v62 = vrot.slane %v2001_v7, %v7974_v24  ;;  %v1815_v16 = vcombine.low %v1776_v15, %v1808_v47  ;;  %v1546_v0 = vcombine.high %v7923_v13, %v7940_v44  ;;  %v1608_v5 = vrot.slane %v1594_v22, %v7974_v24 }
 0x2dd   : > { %2179 = vrot.lane.b32.xlu0 %v1949_v50, %s6843_s28  ;;  %v1993_v50 = vrot.slane %v1985_v51, %v7974_v24  ;;  %v1674_v32 = vcombine.high %v8079_v9, %v8075_v39  ;;  %v1656_v10 = vrot.slane %v1642_v4, %v7990_v20  ;;  %v1816_v40 = vcombine.high %v1776_v15, %v1808_v47 }
 0x2de   : > { %v1624_v13 = vrot.slane %v1610_v27, %v7990_v20  ;;  %v1560_v1 = vrot.slane %v1546_v0, %v7974_v24  ;;  %v1954_v46 = vcombine.high %v7987_v8, %v7932_v23  ;;  %v2018_v26 = vcombine.high %v1961_v25, %v1977_v36 }
 0x2df   : > { %v2049_v57 = vcombine.low %v1993_v50, %v2009_v62  ;;  %v2002_v51 = vcombine.high %v7952_v17, %v7968_v52  ;;  %v8152_v15 = vpop.permute.xlu1 %2753  ;;  %v8155_v47 = vpop.permute.xlu0 %2755  ;;  %v1986_v23 = vcombine.high %v7948_v45, %v7964_v63 }
 0x2e0   : > { %2109 = vrot.lane.b32.xlu1 %v1812_v43, %s6848_s6  ;;  %v2017_v43 = vcombine.low %v1961_v25, %v1977_v36  ;;  %v1676_v22 = vcombine.high %v1624_v13, %v1656_v10  ;;  %v1968_v25 = vrot.slane %v1954_v46, %v7974_v24 }
 0x2e1   : > { %2187 = vrot.lane.b32.xlu0 %v1950_v18, %s6849_s7  ;;  %v1578_v18 = vcombine.high %v7954_v21, %v7970_v38  ;;  %v1576_v21 = vrot.slane %v1562_v11, %v7974_v24  ;;  %v2057_v44 = vrot.slane %v2049_v57, %v7990_v20  ;;  %v2016_v17 = vrot.slane %v2002_v51, %v7974_v24  ;;  %v10406_v51 = vld [vmem:[#allocation20_spill] sm:$0xff] }
 0x2e2   : > { %v2025_v38 = vrot.slane %v2017_v43, %v7990_v20  ;;  %v2000_v45 = vrot.slane %v1986_v23, %v7974_v24 }
 0x2e3   : > { %v1592_v34 = vrot.slane %v1578_v18, %v7974_v24  ;;  %v1625_v48 = vcombine.low %v1560_v1, %v1576_v21  ;;  %v8171_v11 = vpop.permute.xlu0 %2759 }
 0x2e4   : > { %2117 = vrot.lane.b32.xlu1 %v1813_v2, %s6850_s8  ;;  %v1675_v2 = vcombine.low %v1624_v13, %v1656_v10  ;;  %v2081_v7 = vcombine.low %v2025_v38, %v2057_v44  ;;  %v2082_v36 = vcombine.high %v2025_v38, %v2057_v44  ;;  %v2065_v27 = vcombine.low %v2000_v45, %v2016_v17  ;;  %v6782_v44 = vld [vmem:[#allocation2 + $0x1a] sm:$0xff] }
 0x2e5   : > { %2195 = vrot.lane.b32.xlu0 %v1951_v49, %s6838_s25  ;;  %v1657_v37 = vcombine.low %v1592_v34, %v1608_v5  ;;  %v1970_v49 = vcombine.high %v7913_v31, %v7937_v12  ;;  %v2032_v31 = vrot.slane %v2018_v26, %v7990_v20  ;;  %v1633_v52 = vrot.slane %v1625_v48, %v7990_v20 }
 0x2e6   : > { %v1658_v4 = vcombine.high %v1592_v34, %v1608_v5 }
 0x2e7   : > { %v1665_v8 = vrot.slane %v1657_v37, %v7990_v20  ;;  %v1984_v12 = vrot.slane %v1970_v49, %v7974_v24  ;;  %v8183_v38 = vpop.permute.xlu0 %2763  ;;  %v6783_v49 = vld [vmem:[#allocation2 + $0x32] sm:$0xff] }
 0x2e8   : > { %2125 = vrot.lane.b32.xlu1 %v1814_v35, %s6851_s9  ;;  %v2050_v35 = vcombine.high %v1993_v50, %v2009_v62  ;;  %v8169_v50 = vpop.permute.xlu1 %2757  ;;  %v1672_v57 = vrot.slane %v1658_v4, %v7990_v20 }
 0x2e9   : > { %2203 = vrot.lane.b32.xlu0 %v1952_v41, %s6852_s10  ;;  %v1677_v41 = vcombine.low %v1633_v52, %v1665_v8  ;;  %v2033_v63 = vcombine.low %v1968_v25, %v1984_v12  ;;  %v1678_v18 = vcombine.high %v1633_v52, %v1665_v8  ;;  %v2034_v34 = vcombine.high %v1968_v25, %v1984_v12  ;;  %v10408_v52 = vld [vmem:[#allocation17_spill] sm:$0xff] }
 0x2ea   : > { %v2064_v62 = vrot.slane %v2050_v35, %v7990_v20  ;;  %v2457_v35 = vadd.f32 %v6783_v49, %v10406_v51  ;;  %v6789_v49 = vld [vmem:[#allocation2 + $0x6a] sm:$0xff]  ;;  %v10415_v51 = vld [vmem:[#allocation61_spill] sm:$0xff] }
 0x2eb   : > { %v2041_v5 = vrot.slane %v2033_v63, %v7990_v20  ;;  %v2048_v48 = vrot.slane %v2034_v34, %v7990_v20  ;;  %v8193_v23 = vpop.permute.xlu0 %2767  ;;  %v10410_v63 = vld [vmem:[#allocation39_spill] sm:$0xff] }
 0x2ec   : > { %2133 = vrot.lane.b32.xlu1 %v1815_v16, %s6837_s24  ;;  %v2083_v43 = vcombine.low %v2032_v31, %v2064_v62  ;;  %v1626_v16 = vcombine.high %v1560_v1, %v1576_v21  ;;  %v2084_v0 = vcombine.high %v2032_v31, %v2064_v62  ;;  %v8179_v10 = vpop.permute.xlu1 %2761  ;;  %v10405_v1 = vld [vmem:[#allocation15_spill] sm:$0xff]  ;;  %v2649_v12 = vadd.f32 %v10408_v52, %v2457_v35 }
 0x2ed   : > { %2091 = vrot.lane.b32.xlu0 %v1674_v32, %s6846_s4  ;;  %v2455_v37 = vadd.f32 %v6782_v44, %v10405_v1  ;;  %v10409_v62 = vld [vmem:[#allocation27_spill] sm:$0xff]  ;;  %v2462_v35 = vadd.f32 %v6789_v49, %v10415_v51  ;;  %v10426_v49 = vld [vmem:[#allocation58_spill] sm:$0xff] }
 0x2ee   : > { %v1640_v32 = vrot.slane %v1626_v16, %v7990_v20  ;;  %v2841_v16 = vadd.f32 %v8116_v60, %v2649_v12  ;;  %v6787_v34 = vld [vmem:[#allocation2 + $0x52] sm:$0xff] }
 0x2ef   : > { %v10416_v52 = vld [vmem:[#allocation71_spill] sm:$0xff] }
 0x2f0   : > { %2141 = vrot.lane.b32.xlu1 %v1816_v40, %s6853_s11  ;;  %v2073_v40 = vrot.slane %v2065_v27, %v7990_v20  ;;  %v1679_v21 = vcombine.low %v1640_v32, %v1672_v57  ;;  %v1680_v46 = vcombine.high %v1640_v32, %v1672_v57  ;;  %v8188_v26 = vpop.permute.xlu1 %2765  ;;  %v8207_v27 = vpop.permute.xlu0 %2771  ;;  %v10411_v57 = vld [vmem:[#allocation13_spill] sm:$0xff]  ;;  %v10412_v32 = vld [vmem:[#allocation48_spill] sm:$0xff] }
 0x2f1   : > { %2099 = vrot.lane.b32.xlu0 %v1675_v2, %s6847_s5  ;;  %v2066_v2 = vcombine.high %v2000_v45, %v2016_v17  ;;  %v6784_v17 = vld [vmem:[#allocation2 + $0x3a] sm:$0xff]  ;;  %v6785_v45 = vld [vmem:[#allocation2 + $0x4a] sm:$0xff] }
 0x2f2   : > { %v2085_v13 = vcombine.low %v2041_v5, %v2073_v40  ;;  %v2458_v4 = vadd.f32 %v6784_v17, %v10409_v62  ;;  %v6792_v17 = vld [vmem:[#allocation2 + $0xaa] sm:$0xff] }
 0x2f3   : > { %v2080_v25 = vrot.slane %v2066_v2, %v7990_v20  ;;  %v2467_v62 = vadd.f32 %v6792_v17, %v7755_v61 }
 0x2f4   : > { %2149 = vrot.lane.b32.xlu1 %v2081_v7, %s6839_s26  ;;  %v2086_v7 = vcombine.high %v2041_v5, %v2073_v40  ;;  %v6786_v5 = vld [vmem:[#allocation2 + $0x62] sm:$0xff] }
 0x2f5   : > { %2107 = vrot.lane.b32.xlu0 %v1676_v22, %s6848_s6  ;;  %v10407_v22 = vld [vmem:[#allocation5_spill] sm:$0xff]  ;;  %v2087_v31 = vcombine.low %v2048_v48, %v2080_v25  ;;  %v2461_v40 = vadd.f32 %v6786_v5, %v10412_v32  ;;  %v10421_v5 = vld [vmem:[#allocation31_spill] sm:$0xff] }
 0x2f6   : > { %v2647_v8 = vadd.f32 %v10407_v22, %v2455_v37  ;;  %v2776_v37 = vpop.permute.xlu0 %2775 }
 0x2f8   : > { %2157 = vrot.lane.b32.xlu1 %v2082_v36, %s6844_s29  ;;  %v2839_v36 = vadd.f32 %v8094_v33, %v2647_v8  ;;  %v2088_v33 = vcombine.high %v2048_v48, %v2080_v25 }
 0x2f9   : > { %2115 = vrot.lane.b32.xlu0 %v1677_v41, %s6850_s8  ;;  %v8202_v41 = vpop.permute.xlu1 %2769 }
 0x2fc   : > { %2165 = vrot.lane.b32.xlu1 %v2083_v43, %s6845_s30  ;;  %v2459_v43 = vadd.f32 %v6785_v45, %v10410_v63 }
 0x2fd   : > { %2123 = vrot.lane.b32.xlu0 %v1678_v18, %s6851_s9  ;;  %v8217_v1 = vpop.permute.xlu1 %2773 }
 0x2fe   : > { %v2651_v18 = vadd.f32 %v7830_v58, %v2459_v43  ;;  %v2653_v58 = vadd.f32 %v7836_v3, %v2461_v40  ;;  %v2654_v3 = vadd.f32 %v7826_v14, %v2462_v35  ;;  %v10422_v40 = vld [vmem:[#allocation14_spill] sm:$0xff] }
 0x2ff   : > { %v10427_v35 = vld [vmem:[#allocation26_spill] sm:$0xff] }
 0x300   : > { %2173 = vrot.lane.b32.xlu1 %v2084_v0, %s6840_s27  ;;  %v2650_v0 = vadd.f32 %v10411_v57, %v2458_v4  ;;  %v10417_v4 = vld [vmem:[#allocation78_spill] sm:$0xff]  ;;  %v10420_v57 = vld [vmem:[#allocation16_spill] sm:$0xff] }
 0x301   : > { %2131 = vrot.lane.b32.xlu0 %v1679_v21, %s6837_s24  ;;  %v2843_v21 = vadd.f32 %v8138_v53, %v2651_v18  ;;  %v2845_v53 = vadd.f32 %v8155_v47, %v2653_v58  ;;  %v8230_v8 = vpop.permute.xlu1 %2777  ;;  %v6794_v18 = vld [vmem:[#allocation2 + $0xc2] sm:$0xff] }
 0x302   : > { %v2842_v60 = vadd.f32 %v8133_v54, %v2650_v0  ;;  %v2469_v61 = vadd.f32 %v6794_v18, %v10420_v57  ;;  %v6795_v0 = vld [vmem:[#allocation2 + $0xb2] sm:$0xff]  ;;  %v10424_v58 = vld [vmem:[#allocation54_spill] sm:$0xff] }
 0x303   : > { %v2468_v32 = vadd.f32 %v6795_v0, %v10421_v5  ;;  %v6802_v57 = vld [vmem:[#allocation2 + $0x122] sm:$0xff] }
 0x304   : > { %2181 = vrot.lane.b32.xlu1 %v2085_v13, %s6843_s28  ;;  %v10413_v13 = vld [vmem:[#allocation38_spill] sm:$0xff] }
 0x305   : > { %2139 = vrot.lane.b32.xlu0 %v1680_v46, %s6853_s11  ;;  %v2460_v44 = vadd.f32 %v6787_v34, %v10413_v13  ;;  %v6788_v46 = vld [vmem:[#allocation2 + $0x7a] sm:$0xff]  ;;  %v2782_v43 = vpop.permute.xlu1 %2781 }
 0x306   : > { %v10423_v34 = vld [vmem:[#allocation37_spill] sm:$0xff] }
 0x307   : > { %v2652_v2 = vadd.f32 %v7807_v30, %v2460_v44  ;;  %v6790_v30 = vld [vmem:[#allocation2 + $0x92] sm:$0xff]  ;;  %v2660_v13 = vadd.f32 %v10423_v34, %v2468_v32  ;;  %v10437_v32 = vld [vmem:[#allocation22_spill] sm:$0xff] }
 0x308   : > { %2189 = vrot.lane.b32.xlu1 %v2086_v7, %s6849_s7  ;;  %v10414_v7 = vld [vmem:[#allocation72_spill] sm:$0xff]  ;;  %v2465_v25 = vadd.f32 %v6790_v30, %v7661_v56  ;;  %v10439_v34 = vld [vmem:[#allocation11_spill] sm:$0xff] }
 0x309   : > { %2903 = vrot.lane.b32.xlu0 %v2839_v36, %s6843_s28  ;;  %v2463_v48 = vadd.f32 %v6788_v46, %v10414_v7  ;;  %v2844_v54 = vadd.f32 %v8152_v15, %v2652_v2  ;;  %v2780_v36 = vpop.permute.xlu0 %2779  ;;  %v2846_v15 = vadd.f32 %v8169_v50, %v2654_v3  ;;  %v10418_v50 = vld [vmem:[#allocation47_spill] sm:$0xff]  ;;  %v2786_v44 = vpop.permute.xlu1 %2785  ;;  %v10428_v3 = vld [vmem:[#allocation9_spill] sm:$0xff] }
 0x30a   : > { %v6797_v7 = vld [vmem:[#allocation2 + $0xca] sm:$0xff] }
 0x30b   : > { %v2655_v22 = vadd.f32 %v7842_v42, %v2463_v48  ;;  %v2657_v42 = vadd.f32 %v7848_v29, %v2465_v25  ;;  %v10425_v48 = vld [vmem:[#allocation28_spill] sm:$0xff] }
 0x30c   : > { %2197 = vrot.lane.b32.xlu1 %v2087_v31, %s6838_s25  ;;  %v6791_v31 = vld [vmem:[#allocation2 + $0x82] sm:$0xff] }
 0x30d   : > { %2907 = vrot.lane.b32.xlu0 %v2841_v16, %s6843_s28  ;;  %v2847_v47 = vadd.f32 %v8171_v11, %v2655_v22  ;;  %v2464_v12 = vadd.f32 %v6791_v31, %v10416_v52  ;;  %v2849_v56 = vadd.f32 %v8183_v38, %v2657_v42  ;;  %v6793_v11 = vld [vmem:[#allocation2 + $0x9a] sm:$0xff]  ;;  %v2659_v16 = vadd.f32 %v10418_v50, %v2467_v62  ;;  %v2784_v29 = vpop.permute.xlu0 %2783  ;;  %v6798_v22 = vld [vmem:[#allocation2 + $0xf2] sm:$0xff]  ;;  %v6800_v62 = vld [vmem:[#allocation2 + $0x10a] sm:$0xff] }
 0x30e   : > { %v2466_v45 = vadd.f32 %v6793_v11, %v10417_v4  ;;  %v2473_v30 = vadd.f32 %v6798_v22, %v10428_v3  ;;  %v6806_v22 = vld [vmem:[#allocation2 + $0x152] sm:$0xff] }
 0x30f   : > { %v2656_v14 = vadd.f32 %v7832_v19, %v2464_v12  ;;  %v2851_v38 = vadd.f32 %v8193_v23, %v2659_v16  ;;  %v2790_v12 = vpop.permute.xlu1 %2789  ;;  %v10444_v3 = vld [vmem:[#allocation64_spill] sm:$0xff] }
 0x310   : > { %2205 = vrot.lane.b32.xlu1 %v2088_v33, %s6852_s10  ;;  %v10419_v33 = vld [vmem:[#allocation18_spill] sm:$0xff] }
 0x311   : > { %2911 = vrot.lane.b32.xlu0 %v2843_v21, %s6843_s28  ;;  %v2848_v63 = vadd.f32 %v8179_v10, %v2656_v14  ;;  %v2658_v19 = vadd.f32 %v10419_v33, %v2466_v45  ;;  %v2661_v21 = vadd.f32 %v10422_v40, %v2469_v61  ;;  %v2788_v23 = vpop.permute.xlu0 %2787  ;;  %v10431_v14 = vld [vmem:[#allocation63_spill] sm:$0xff]  ;;  %v10433_v45 = vld [vmem:[#allocation12_spill] sm:$0xff]  ;;  %v10436_v61 = vld [vmem:[#allocation30_spill] sm:$0xff] }
 0x312   : > { %v10435_v33 = vld [vmem:[#allocation43_spill] sm:$0xff] }
 0x313   : > { %v2850_v10 = vadd.f32 %v8188_v26, %v2658_v19  ;;  %v2853_v46 = vadd.f32 %v8207_v27, %v2661_v21  ;;  %v2852_v26 = vadd.f32 %v8202_v41, %v2660_v13  ;;  %v10429_v27 = vld [vmem:[#allocation6_spill] sm:$0xff]  ;;  %v2794_v18 = vpop.permute.xlu1 %2793 }
 0x314   : > { %2909 = vrot.lane.b32.xlu1 %v2842_v60, %s6843_s28  ;;  %v6796_v60 = vld [vmem:[#allocation2 + $0xda] sm:$0xff]  ;;  %v10438_v21 = vld [vmem:[#allocation46_spill] sm:$0xff] }
 0x315   : > { %2915 = vrot.lane.b32.xlu0 %v2845_v53, %s6843_s28  ;;  %v2471_v2 = vadd.f32 %v6796_v60, %v10424_v58  ;;  %v2470_v53 = vadd.f32 %v6797_v7, %v10425_v48  ;;  %v2792_v42 = vpop.permute.xlu0 %2791  ;;  %v6804_v60 = vld [vmem:[#allocation2 + $0x13a] sm:$0xff]  ;;  %v6805_v7 = vld [vmem:[#allocation2 + $0x12a] sm:$0xff] }
 0x316   : > { %v10440_v58 = vld [vmem:[#allocation52_spill] sm:$0xff] }
 0x317   : > { %v2663_v51 = vadd.f32 %v10426_v49, %v2471_v2  ;;  %v2479_v2 = vadd.f32 %v6804_v60, %v10440_v58  ;;  %v10441_v48 = vld [vmem:[#allocation40_spill] sm:$0xff]  ;;  %v10456_v58 = vld [vmem:[#allocation55_spill] sm:$0xff] }
 0x318   : > { %2913 = vrot.lane.b32.xlu1 %v2844_v54, %s6843_s28  ;;  %v2662_v54 = vadd.f32 %v10427_v35, %v2470_v53  ;;  %v10442_v49 = vld [vmem:[#allocation44_spill] sm:$0xff]  ;;  %v10443_v35 = vld [vmem:[#allocation49_spill] sm:$0xff] }
 0x319   : > { %2919 = vrot.lane.b32.xlu0 %v2847_v47, %s6843_s28  ;;  %v2855_v25 = vadd.f32 %v2776_v37, %v2663_v51  ;;  %v6799_v47 = vld [vmem:[#allocation2 + $0xe2] sm:$0xff]  ;;  %v6801_v37 = vld [vmem:[#allocation2 + $0xfa] sm:$0xff]  ;;  %v2796_v5 = vpop.permute.xlu0 %2795  ;;  %v2671_v51 = vadd.f32 %v10442_v49, %v2479_v2 }
 0x31a   : > { %v2472_v31 = vadd.f32 %v6799_v47, %v10429_v27  ;;  %v2854_v52 = vadd.f32 %v8217_v1, %v2662_v54  ;;  %v10434_v1 = vld [vmem:[#allocation59_spill] sm:$0xff]  ;;  %v6807_v47 = vld [vmem:[#allocation2 + $0x142] sm:$0xff] }
 0x31c   : > { %2917 = vrot.lane.b32.xlu1 %v2846_v15, %s6843_s28  ;;  %v10430_v15 = vld [vmem:[#allocation25_spill] sm:$0xff]  ;;  %v2664_v17 = vadd.f32 %v10431_v14, %v2472_v31 }
 0x31d   : > { %2923 = vrot.lane.b32.xlu0 %v2849_v56, %s6843_s28  ;;  %v2665_v41 = vadd.f32 %v10430_v15, %v2473_v30  ;;  %v10432_v56 = vld [vmem:[#allocation21_spill] sm:$0xff]  ;;  %v2481_v30 = vadd.f32 %v6806_v22, %v10444_v3 }
 0x31e   : > { %v2475_v11 = vadd.f32 %v6800_v62, %v10432_v56  ;;  %v2856_v50 = vadd.f32 %v8230_v8, %v2664_v17  ;;  %v10447_v15 = vld [vmem:[#allocation29_spill] sm:$0xff]  ;;  %v6808_v17 = vld [vmem:[#allocation2 + $0x16a] sm:$0xff]  ;;  %v10448_v62 = vld [vmem:[#allocation76_spill] sm:$0xff] }
 0x31f   : > { %v2857_v4 = vadd.f32 %v2780_v36, %v2665_v41  ;;  %v6803_v36 = vld [vmem:[#allocation2 + $0x112] sm:$0xff]  ;;  %v2483_v56 = vadd.f32 %v6808_v17, %v10448_v62 }
 0x320   : > { %2921 = vrot.lane.b32.xlu1 %v2848_v63, %s6843_s28  ;;  %v2474_v63 = vadd.f32 %v6801_v37, %v10433_v45  ;;  %v2667_v16 = vadd.f32 %v10434_v1, %v2475_v11  ;;  %v6809_v37 = vld [vmem:[#allocation2 + $0x15a] sm:$0xff]  ;;  %v2293_v1 = vld [vmem:[#allocation2 + $0x182] sm:$0xff] }
 0x321   : > { %2927 = vrot.lane.b32.xlu0 %v2851_v38, %s6843_s28  ;;  %v2477_v38 = vadd.f32 %v6802_v57, %v10436_v61 }
 0x322   : > { %v2666_v19 = vadd.f32 %v10435_v33, %v2474_v63  ;;  %v2859_v0 = vadd.f32 %v2784_v29, %v2667_v16  ;;  %v2478_v29 = vadd.f32 %v6805_v7, %v10441_v48  ;;  %v10451_v16 = vld [vmem:[#allocation45_spill] sm:$0xff] }
 0x323   : > { %v2669_v8 = vadd.f32 %v10438_v21, %v2477_v38  ;;  %v10455_v21 = vld [vmem:[#allocation66_spill] sm:$0xff]  ;;  %v10457_v48 = vld [vmem:[#allocation65_spill] sm:$0xff] }
 0x324   : > { %2925 = vrot.lane.b32.xlu1 %v2850_v10, %s6843_s28  ;;  %v2476_v10 = vadd.f32 %v6803_v36, %v10437_v32  ;;  %v2858_v40 = vadd.f32 %v2782_v43, %v2666_v19  ;;  %v2800_v43 = vpop.permute.xlu0 %2799  ;;  %v2670_v54 = vadd.f32 %v10443_v35, %v2478_v29  ;;  %v10452_v19 = vld [vmem:[#allocation34_spill] sm:$0xff] }
 0x325   : > { %2931 = vrot.lane.b32.xlu0 %v2853_v46, %s6843_s28  ;;  %v2861_v46 = vadd.f32 %v2788_v23, %v2669_v8  ;;  %v10445_v23 = vld [vmem:[#allocation53_spill] sm:$0xff]  ;;  %v2485_v57 = vadd.f32 %v10452_v19, %v2293_v1 }
 0x326   : > { %v2668_v13 = vadd.f32 %v10439_v34, %v2476_v10  ;;  %v2480_v27 = vadd.f32 %v6807_v47, %v10445_v23  ;;  %v2862_v31 = vadd.f32 %v2790_v12, %v2670_v54  ;;  %v2294_v34 = vld [vmem:[#allocation2 + $0x18a] sm:$0xff] }
 0x327   : > { %v2486_v2 = vadd.f32 %v10456_v58, %v2294_v34 }
 0x328   : > { %2929 = vrot.lane.b32.xlu1 %v2852_v26, %s6843_s28  ;;  %v2860_v53 = vadd.f32 %v2786_v44, %v2668_v13  ;;  %v2798_v26 = vpop.permute.xlu1 %2797  ;;  %v2672_v41 = vadd.f32 %v10447_v15, %v2480_v27 }
 0x329   : > { %2935 = vrot.lane.b32.xlu0 %v2855_v25, %s6843_s28  ;;  %v2863_v25 = vadd.f32 %v2792_v42, %v2671_v51  ;;  %v10449_v42 = vld [vmem:[#allocation73_spill] sm:$0xff]  ;;  %v2678_v29 = vadd.f32 %v10457_v48, %v2486_v2 }
 0x32a   : > { %v2482_v45 = vadd.f32 %v6809_v37, %v10449_v42  ;;  %v2864_v63 = vadd.f32 %v2794_v18, %v2672_v41  ;;  %v10454_v18 = vld [vmem:[#allocation33_spill] sm:$0xff] }
 0x32c   : > { %2933 = vrot.lane.b32.xlu1 %v2854_v52, %s6843_s28  ;;  %v10446_v52 = vld [vmem:[#allocation23_spill] sm:$0xff]  ;;  %v2802_v14 = vpop.permute.xlu1 %2801  ;;  %v2674_v33 = vadd.f32 %v10451_v16, %v2482_v45 }
 0x32d   : > { %2939 = vrot.lane.b32.xlu0 %v2857_v4, %s6843_s28  ;;  %v2673_v44 = vadd.f32 %v10446_v52, %v2481_v30  ;;  %v2804_v4 = vpop.permute.xlu0 %2803 }
 0x32e   : > { %v2866_v32 = vadd.f32 %v2798_v26, %v2674_v33 }
 0x32f   : > { %v2865_v11 = vadd.f32 %v2796_v5, %v2673_v44  ;;  %v10453_v5 = vld [vmem:[#allocation77_spill] sm:$0xff] }
 0x330   : > { %2937 = vrot.lane.b32.xlu1 %v2856_v50, %s6843_s28  ;;  %v10450_v50 = vld [vmem:[#allocation24_spill] sm:$0xff]  ;;  %v2806_v10 = vpop.permute.xlu1 %2805 }
 0x331   : > { %2943 = vrot.lane.b32.xlu0 %v2859_v0, %s6843_s28  ;;  %v2675_v12 = vadd.f32 %v10450_v50, %v2483_v56  ;;  %v6810_v0 = vld [vmem:[#allocation2 + $0x172] sm:$0xff]  ;;  %v2870_v26 = vadd.f32 %v2806_v10, %v2678_v29 }
 0x332   : > { %v2484_v36 = vadd.f32 %v6810_v0, %v10453_v5 }
 0x333   : > { %v2867_v61 = vadd.f32 %v2800_v43, %v2675_v12 }
 0x334   : > { %2941 = vrot.lane.b32.xlu1 %v2858_v40, %s6843_s28  ;;  %v2677_v40 = vadd.f32 %v10454_v18, %v2485_v57  ;;  %v2676_v8 = vadd.f32 %v10455_v21, %v2484_v36 }
 0x335   : > { %2947 = vrot.lane.b32.xlu0 %v2861_v46, %s6843_s28 }
 0x336   : > { %v2869_v13 = vadd.f32 %v2804_v4, %v2677_v40  ;;  %v2868_v46 = vadd.f32 %v2802_v14, %v2676_v8 }
 0x338   : > { %2945 = vrot.lane.b32.xlu1 %v2860_v53, %s6843_s28 }
 0x339   : > { %2951 = vrot.lane.b32.xlu0 %v2863_v25, %s6843_s28 }
 0x33c   : > { %2949 = vrot.lane.b32.xlu1 %v2862_v31, %s6843_s28 }
 0x33d   : > { %2955 = vrot.lane.b32.xlu0 %v2865_v11, %s6843_s28 }
 0x33f   : > { %v8304_v38 = vpop.permute.xlu0 %2147  ;;  %v8312_v7 = vpop.permute.xlu1 %2905 }
 0x340   : > { %2953 = vrot.lane.b32.xlu1 %v2864_v63, %s6843_s28 }
 0x341   : > { %2959 = vrot.lane.b32.xlu0 %v2867_v61, %s6843_s28 }
 0x343   : > { %v2156_v60 = vpop.permute.xlu0 %2155 }
 0x344   : > { %2957 = vrot.lane.b32.xlu1 %v2866_v32, %s6843_s28 }
 0x345   : > { %2963 = vrot.lane.b32.xlu0 %v2869_v13, %s6843_s28  ;;  %v8360_v13 = vld [vmem:[%s10182_s2] ss:$0 sm:$0xff] }
 0x347   : > { %v2164_v53 = vpop.permute.xlu0 %2163 }
 0x348   : > { %2961 = vrot.lane.b32.xlu1 %v2868_v46, %s6843_s28 }
 0x34a   : > { %v2094_v49 = vpop.permute.xlu1 %2093 }
 0x34b   : > { %v2172_v51 = vpop.permute.xlu0 %2171  ;;  %v2211_v4 = vsel %vm2209_vm1, %v1809_v6, %v2094_v49 }
 0x34c   : > { %2965 = vrot.lane.b32.xlu1 %v2870_v26, %s6843_s28 }
 0x34e   : > { %v2102_v43 = vpop.permute.xlu1 %2101 }
 0x34f   : > { %v2180_v35 = vpop.permute.xlu0 %2179  ;;  %v2213_v45 = vsel %vm255_vm0, %v2211_v4, %v2102_v43 }
 0x352   : > { %v2110_v54 = vpop.permute.xlu1 %2109 }
 0x353   : > { %v2188_v22 = vpop.permute.xlu0 %2187  ;;  %v2216_v12 = vsel %vm2214_vm2, %v2213_v45, %v2110_v54 }
 0x356   : > { %v2118_v3 = vpop.permute.xlu1 %2117 }
 0x357   : > { %v8318_v30 = vpop.permute.xlu0 %2195  ;;  %v2219_v9 = vsel %vm2217_vm3, %v2216_v12, %v2118_v3 }
 0x35a   : > { %v2126_v25 = vpop.permute.xlu1 %2125 }
 0x35b   : > { %v8320_v47 = vpop.permute.xlu0 %2203  ;;  %v2222_v59 = vsel %vm2220_vm4, %v2219_v9, %v2126_v25 }
 0x35e   : > { %v2134_v23 = vpop.permute.xlu1 %2133 }
 0x35f   : > { %v2092_v27 = vpop.permute.xlu0 %2091  ;;  %v2225_v1 = vsel %vm2223_vm5, %v2222_v59, %v2134_v23 }
 0x360   : > { %v2210_v11 = vsel %vm2209_vm1, %v1673_v28, %v2092_v27 }
 0x362   : > { %v2142_v31 = vpop.permute.xlu1 %2141 }
 0x363   : > { %v2100_v52 = vpop.permute.xlu0 %2099  ;;  %v2228_v19 = vsel %vm2226_vm6, %v2225_v1, %v2142_v31 }
 0x364   : > { %v2212_v37 = vsel %vm255_vm0, %v2210_v11, %v2100_v52 }
 0x366   : > { %v2150_v44 = vpop.permute.xlu1 %2149 }
 0x367   : > { %v2108_v15 = vpop.permute.xlu0 %2107  ;;  %v2231_v61 = vsel %vm2229_vm7, %v2228_v19, %v2150_v44 }
 0x368   : > { %v2215_v63 = vsel %vm2214_vm2, %v2212_v37, %v2108_v15 }
 0x36a   : > { %v2158_v41 = vpop.permute.xlu1 %2157 }
 0x36b   : > { %v2116_v14 = vpop.permute.xlu0 %2115  ;;  %v2234_v5 = vsel %vm2232_vm8, %v2231_v61, %v2158_v41 }
 0x36c   : > { %v2218_v39 = vsel %vm2217_vm3, %v2215_v63, %v2116_v14 }
 0x36e   : > { %v2166_v17 = vpop.permute.xlu1 %2165 }
 0x36f   : > { %v2124_v62 = vpop.permute.xlu0 %2123  ;;  %v2237_v10 = vsel %vm2235_vm9, %v2234_v5, %v2166_v17 }
 0x370   : > { %v2221_v55 = vsel %vm2220_vm4, %v2218_v39, %v2124_v62 }
 0x372   : > { %v2174_v56 = vpop.permute.xlu1 %2173 }
 0x373   : > { %v2132_v42 = vpop.permute.xlu0 %2131 }
 0x374   : > { %v2224_v6 = vsel %vm2223_vm5, %v2221_v55, %v2132_v42 }
 0x376   : > { %v2182_v50 = vpop.permute.xlu1 %2181 }
 0x377   : > { %v2140_v28 = vpop.permute.xlu0 %2139 }
 0x378   : > { %v2227_v33 = vsel %vm2226_vm6, %v2224_v6, %v2140_v28 }
 0x379   : > { %v2230_v57 = vsel %vm2229_vm7, %v2227_v33, %v8304_v38  ;;  %v2240_v38 = vsel %vm2238_vm10, %v2237_v10, %v2174_v56 }
 0x37a   : > { %v2190_v16 = vpop.permute.xlu1 %2189  ;;  %v2233_v0 = vsel %vm2232_vm8, %v2230_v57, %v2156_v60  ;;  %v2243_v8 = vsel %vm2241_vm11, %v2240_v38, %v2182_v50 }
 0x37b   : > { %v2236_v36 = vsel %vm2235_vm9, %v2233_v0, %v2164_v53  ;;  %v8348_v32 = vpop.permute.xlu0 %2903  ;;  %v2246_v60 = vsel %vm2244_vm12, %v2243_v8, %v2190_v16 }
 0x37c   : > { %v2239_v18 = vsel %vm2238_vm10, %v2236_v36, %v2172_v51 }
 0x37d   : > { %v2242_v21 = vsel %vm2241_vm11, %v2239_v18, %v2180_v35 }
 0x37e   : > { %v2198_v40 = vpop.permute.xlu1 %2197  ;;  %v2245_v34 = vsel %vm2244_vm12, %v2242_v21, %v2188_v22 }
 0x37f   : > { %v2248_v58 = vsel %vm2247_vm13, %v2245_v34, %v8318_v30  ;;  %v2908_v2 = vpop.permute.xlu0 %2907  ;;  %v2249_v46 = vsel %vm2247_vm13, %v2246_v60, %v2198_v40 }
 0x380   : > { %v2251_v48 = vsel %vm2250_vm14, %v2248_v58, %v8320_v47 }
 0x381   : > { %v2259_v53 = vadd.f32 %v8360_v13, %v2251_v48 }
 0x382   : > { %v2206_v29 = vpop.permute.xlu1 %2205 }
 0x383   : > { %v2252_v26 = vsel %vm2250_vm14, %v2249_v46, %v2206_v29  ;;  %2261 = vst [vmem:[%s8369_s20] sm:$0xff] %v2259_v53  ;;  %v2912_v51 = vpop.permute.xlu0 %2911 }
 0x384   : > { %v2260_v49 = vadd.f32 %v8360_v13, %v2252_v26  ;;  %v2999_v27 = vcombine.low %v8348_v32, %v2912_v51  ;;  %v3000_v6 = vcombine.high %v8348_v32, %v2912_v51 }
 0x386   : > { %2262 = vst [vmem:[%s8369_s20 + $0x20] sm:$0xff] %v2260_v49  ;;  %v8378_v43 = vpop.permute.xlu1 %2909  ;;  %v3007_v41 = vrot.slane %v2999_v27, %v7974_v24  ;;  %v3014_v36 = vrot.slane %v3000_v6, %v7974_v24 }
 0x387   : > { %v2916_v35 = vpop.permute.xlu0 %2915 }
 0x388   : > { %v3015_v47 = vcombine.low %v2908_v2, %v2916_v35  ;;  %v3016_v50 = vcombine.high %v2908_v2, %v2916_v35 }
 0x38a   : > { %v8380_v54 = vpop.permute.xlu1 %2913  ;;  %v3023_v52 = vrot.slane %v3015_v47, %v7974_v24  ;;  %v3030_v19 = vrot.slane %v3016_v50, %v7974_v24 }
 0x38b   : > { %v2920_v22 = vpop.permute.xlu0 %2919  ;;  %v3271_v51 = vcombine.low %v8312_v7, %v8380_v54 }
 0x38c   : > { %v3063_v62 = vcombine.low %v3007_v41, %v3023_v52  ;;  %v3064_v12 = vcombine.high %v3007_v41, %v3023_v52  ;;  %v3079_v40 = vcombine.low %v3014_v36, %v3030_v19  ;;  %v3080_v29 = vcombine.high %v3014_v36, %v3030_v19 }
 0x38d   : > { %v3279_v41 = vrot.slane %v3271_v51, %v7974_v24 }
 0x38e   : > { %v8382_v3 = vpop.permute.xlu1 %2917  ;;  %v8400_v9 = vrot.slane %v3063_v62, %v7990_v20  ;;  %v3078_v61 = vrot.slane %v3064_v12, %v7990_v20  ;;  %v3087_v34 = vrot.slane %v3079_v40, %v7990_v20 }
 0x38f   : > { %v2924_v30 = vpop.permute.xlu0 %2923  ;;  %v3287_v53 = vcombine.low %v8378_v43, %v8382_v3 }
 0x392   : > { %v8384_v25 = vpop.permute.xlu1 %2921 }
 0x393   : > { %v2928_v23 = vpop.permute.xlu0 %2927 }
 0x394   : > { %v3031_v44 = vcombine.low %v2920_v22, %v2928_v23  ;;  %v3032_v39 = vcombine.high %v2920_v22, %v2928_v23  ;;  %v3295_v23 = vrot.slane %v3287_v53, %v7974_v24 }
 0x396   : > { %v8387_v31 = vpop.permute.xlu1 %2925  ;;  %v3039_v56 = vrot.slane %v3031_v44, %v7974_v24  ;;  %v3046_v57 = vrot.slane %v3032_v39, %v7974_v24  ;;  %v3094_v44 = vrot.slane %v3080_v29, %v7990_v20 }
 0x397   : > { %v2932_v15 = vpop.permute.xlu0 %2931 }
 0x398   : > { %v3047_v17 = vcombine.low %v2924_v30, %v2932_v15  ;;  %v3048_v37 = vcombine.high %v2924_v30, %v2932_v15 }
 0x39a   : > { %v8391_v14 = vpop.permute.xlu1 %2929  ;;  %v3055_v11 = vrot.slane %v3047_v17, %v7974_v24  ;;  %v3062_v28 = vrot.slane %v3048_v37, %v7974_v24 }
 0x39b   : > { %v8395_v4 = vpop.permute.xlu0 %2935  ;;  %v3303_v26 = vcombine.low %v8384_v25, %v8391_v14 }
 0x39c   : > { %v3095_v42 = vcombine.low %v3039_v56, %v3055_v11  ;;  %v3096_v45 = vcombine.high %v3039_v56, %v3055_v11  ;;  %v3111_v32 = vcombine.low %v3046_v57, %v3062_v28  ;;  %v3112_v2 = vcombine.high %v3046_v57, %v3062_v28 }
 0x39d   : > { %v3311_v27 = vrot.slane %v3303_v26, %v7974_v24  ;;  %v3335_v11 = vcombine.low %v3279_v41, %v3295_v23 }
 0x39e   : > { %v8397_v63 = vpop.permute.xlu1 %2933  ;;  %v8403_v55 = vrot.slane %v3095_v42, %v7990_v20  ;;  %v3110_v33 = vrot.slane %v3096_v45, %v7990_v20  ;;  %v3119_v8 = vrot.slane %v3111_v32, %v7990_v20  ;;  %v3126_v30 = vrot.slane %v3112_v2, %v7990_v20 }
 0x39f   : > { %v8405_v59 = vpop.permute.xlu0 %2939  ;;  %v3319_v46 = vcombine.low %v8387_v31, %v8397_v63  ;;  %v3343_v57 = vrot.slane %v3335_v11, %v7990_v20  ;;  %v3304_v2 = vcombine.high %v8384_v25, %v8391_v14 }
 0x3a0   : > { %v3128_v16 = vcombine.high %v8400_v9, %v8403_v55  ;;  %v3127_v0 = vcombine.low %v8400_v9, %v8403_v55  ;;  %v3129_v10 = vcombine.low %v3078_v61, %v3110_v33  ;;  %v3130_v21 = vcombine.high %v3078_v61, %v3110_v33 }
 0x3a1   : > { %v3131_v48 = vcombine.low %v3087_v34, %v3119_v8  ;;  %v3327_v35 = vrot.slane %v3319_v46, %v7974_v24  ;;  %v3132_v22 = vcombine.high %v3087_v34, %v3119_v8  ;;  %v3133_v56 = vcombine.low %v3094_v44, %v3126_v30 }
 0x3a2   : > { %v8409_v1 = vpop.permute.xlu1 %2937  ;;  %3545 = vrot.lane.b32.xlu0 %v3128_v16, %s6846_s4  ;;  %v3134_v6 = vcombine.high %v3094_v44, %v3126_v30  ;;  %v3320_v61 = vcombine.high %v8387_v31, %v8397_v63  ;;  %v3288_v8 = vcombine.high %v8378_v43, %v8382_v3  ;;  %v3336_v34 = vcombine.high %v3279_v41, %v3295_v23 }
 0x3a3   : > { %v8420_v5 = vpop.permute.xlu0 %2943  ;;  %v3367_v17 = vcombine.low %v3311_v27, %v3327_v35  ;;  %v3368_v36 = vcombine.high %v3311_v27, %v3327_v35  ;;  %v3272_v43 = vcombine.high %v8312_v7, %v8380_v54  ;;  %v3318_v51 = vrot.slane %v3304_v2, %v7974_v24 }
 0x3a4   : > { %v3135_v62 = vcombine.low %v8395_v4, %v8420_v5  ;;  %v3334_v3 = vrot.slane %v3320_v61, %v7974_v24  ;;  %v3136_v25 = vcombine.high %v8395_v4, %v8420_v5  ;;  %v3350_v7 = vrot.slane %v3336_v34, %v7990_v20 }
 0x3a5   : > { %v3375_v28 = vrot.slane %v3367_v17, %v7990_v20  ;;  %v3382_v14 = vrot.slane %v3368_v36, %v7990_v20  ;;  %v3286_v35 = vrot.slane %v3272_v43, %v7974_v24 }
 0x3a6   : > { %v8423_v18 = vpop.permute.xlu1 %2941  ;;  %3553 = vrot.lane.b32.xlu0 %v3129_v10, %s6847_s5  ;;  %v3143_v12 = vrot.slane %v3135_v62, %v7974_v24  ;;  %v3150_v27 = vrot.slane %v3136_v25, %v7974_v24 }
 0x3a7   : > { %v8426_v38 = vpop.permute.xlu0 %2947  ;;  %v3401_v23 = vcombine.low %v3350_v7, %v3382_v14 }
 0x3a8   : > { %v3151_v52 = vcombine.low %v8405_v59, %v8426_v38  ;;  %v3152_v46 = vcombine.high %v8405_v59, %v8426_v38 }
 0x3aa   : > { %3561 = vrot.lane.b32.xlu0 %v3130_v21, %s6848_s6  ;;  %v8431_v60 = vpop.permute.xlu1 %2945  ;;  %v3159_v37 = vrot.slane %v3151_v52, %v7974_v24  ;;  %v3399_v21 = vcombine.low %v3343_v57, %v3375_v28  ;;  %v3166_v54 = vrot.slane %v3152_v46, %v7974_v24 }
 0x3ab   : > { %v8433_v58 = vpop.permute.xlu0 %2951 }
 0x3ac   : > { %v3199_v16 = vcombine.low %v3143_v12, %v3159_v37  ;;  %v3200_v29 = vcombine.high %v3143_v12, %v3159_v37  ;;  %v3215_v17 = vcombine.low %v3150_v27, %v3166_v54 }
 0x3ae   : > { %3569 = vrot.lane.b32.xlu0 %v3131_v48, %s6850_s8  ;;  %v8446_v47 = vpop.permute.xlu1 %2949  ;;  %v8481_v63 = vrot.slane %v3199_v16, %v7990_v20  ;;  %v3214_v5 = vrot.slane %v3200_v29, %v7990_v20 }
 0x3af   : > { %v2956_v49 = vpop.permute.xlu0 %2955  ;;  %v3423_v61 = vcombine.low %v8423_v18, %v8446_v47 }
 0x3b1   : > { %v3431_v46 = vrot.slane %v3423_v61, %v7974_v24 }
 0x3b2   : > { %3577 = vrot.lane.b32.xlu0 %v3132_v22, %s6851_s9  ;;  %v8460_v45 = vpop.permute.xlu1 %2953  ;;  %v3383_v22 = vcombine.low %v3318_v51, %v3334_v3 }
 0x3b3   : > { %v2960_v15 = vpop.permute.xlu0 %2959 }
 0x3b4   : > { %v3167_v42 = vcombine.low %v8433_v58, %v2960_v15  ;;  %v3168_v31 = vcombine.high %v8433_v58, %v2960_v15  ;;  %v3400_v58 = vcombine.high %v3343_v57, %v3375_v28  ;;  %v3391_v37 = vrot.slane %v3383_v22, %v7990_v20 }
 0x3b5   : > { %v3216_v57 = vcombine.high %v3150_v27, %v3166_v54 }
 0x3b6   : > { %3585 = vrot.lane.b32.xlu0 %v3133_v56, %s6837_s24  ;;  %v3175_v33 = vrot.slane %v3167_v42, %v7974_v24  ;;  %v8476_v48 = vpop.permute.xlu1 %2957  ;;  %v3182_v4 = vrot.slane %v3168_v31, %v7974_v24  ;;  %v3402_v56 = vcombine.high %v3350_v7, %v3382_v14 }
 0x3b7   : > { %v2964_v50 = vpop.permute.xlu0 %2963  ;;  %v3230_v31 = vrot.slane %v3216_v57, %v7990_v20  ;;  %v8590_v57 = vld [vmem:[#allocation2 + $0xc0] sm:$0xff] }
 0x3b8   : > { %v3183_v39 = vcombine.low %v2956_v49, %v2964_v50  ;;  %v3184_v32 = vcombine.high %v2956_v49, %v2964_v50  ;;  %v3302_v49 = vrot.slane %v3288_v8, %v7974_v24  ;;  %v3223_v50 = vrot.slane %v3215_v17, %v7990_v20 }
 0x3ba   : > { %v3191_v19 = vrot.slane %v3183_v39, %v7974_v24  ;;  %3593 = vrot.lane.b32.xlu0 %v3134_v6, %s6853_s11  ;;  %v3198_v59 = vrot.slane %v3184_v32, %v7974_v24  ;;  %v8505_v30 = vpop.permute.xlu1 %2961  ;;  %v3351_v41 = vcombine.low %v3286_v35, %v3302_v49  ;;  %v3384_v39 = vcombine.high %v3318_v51, %v3334_v3 }
 0x3bb   : > { %v3439_v36 = vcombine.low %v8460_v45, %v8505_v30  ;;  %v3440_v22 = vcombine.high %v8460_v45, %v8505_v30 }
 0x3bc   : > { %v3231_v10 = vcombine.low %v3175_v33, %v3191_v19  ;;  %v3232_v40 = vcombine.high %v3175_v33, %v3191_v19  ;;  %v3247_v52 = vcombine.low %v3182_v4, %v3198_v59  ;;  %v3359_v12 = vrot.slane %v3351_v41, %v7990_v20  ;;  %v8566_v41 = vld [vmem:[#allocation2 + $0x60] sm:$0xff] }
 0x3bd   : > { %v3248_v6 = vcombine.high %v3182_v4, %v3198_v59  ;;  %v3352_v19 = vcombine.high %v3286_v35, %v3302_v49  ;;  %v3447_v29 = vrot.slane %v3439_v36, %v7974_v24  ;;  %v8544_v4 = vld [vmem:[#allocation2 + $0x30] sm:$0xff]  ;;  %v8595_v36 = vld [vmem:[#allocation2 + $0xd8] sm:$0xff] }
 0x3be   : > { %3601 = vrot.lane.b32.xlu0 %v3399_v21, %s6839_s26  ;;  %v8484_v53 = vrot.slane %v3231_v10, %v7990_v20  ;;  %v3246_v26 = vrot.slane %v3232_v40, %v7990_v20  ;;  %v3255_v11 = vrot.slane %v3247_v52, %v7990_v20  ;;  %v2966_v42 = vpop.permute.xlu1 %2965  ;;  %v3403_v33 = vcombine.low %v3359_v12, %v3391_v37 }
 0x3bf   : > { %v3455_v28 = vcombine.low %v8476_v48, %v2966_v42  ;;  %v3404_v32 = vcombine.high %v3359_v12, %v3391_v37  ;;  %v3398_v10 = vrot.slane %v3384_v39, %v7990_v20  ;;  %v3407_v40 = vcombine.low %v8409_v1, %v8431_v60  ;;  %v8578_v12 = vld [vmem:[#allocation2 + $0x90] sm:$0xff] }
 0x3c0   : > { %v3264_v38 = vcombine.high %v8481_v63, %v8484_v53  ;;  %v3265_v44 = vcombine.low %v3214_v5, %v3246_v26  ;;  %v3266_v62 = vcombine.high %v3214_v5, %v3246_v26  ;;  %v3267_v16 = vcombine.low %v3223_v50, %v3255_v11 }
 0x3c1   : > { %v3463_v21 = vrot.slane %v3455_v28, %v7974_v24  ;;  %v3268_v8 = vcombine.high %v3223_v50, %v3255_v11  ;;  %v3262_v34 = vrot.slane %v3248_v6, %v7990_v20  ;;  %v3366_v2 = vrot.slane %v3352_v19, %v7990_v20  ;;  %v8572_v11 = vld [vmem:[#allocation2 + $0x78] sm:$0xff] }
 0x3c2   : > { %3547 = vrot.lane.b32.xlu1 %v3264_v38, %s6846_s4  ;;  %3609 = vrot.lane.b32.xlu0 %v3400_v58, %s6844_s29  ;;  %v3415_v43 = vrot.slane %v3407_v40, %v7974_v24  ;;  %v3456_v51 = vcombine.high %v8476_v48, %v2966_v42  ;;  %v3424_v5 = vcombine.high %v8423_v18, %v8446_v47  ;;  %v8608_v40 = vld [vmem:[#allocation2 + $0x108] sm:$0xff] }
 0x3c3   : > { %v3503_v3 = vcombine.low %v3447_v29, %v3463_v21  ;;  %v3269_v25 = vcombine.low %v3230_v31, %v3262_v34  ;;  %v3405_v14 = vcombine.low %v3366_v2, %v3398_v10  ;;  %v3270_v38 = vcombine.high %v3230_v31, %v3262_v34  ;;  %v8618_v34 = vld [vmem:[#allocation2 + $0x68] sm:$0xff]  ;;  %v8634_v31 = vld [vmem:[#allocation2 + $0x98] sm:$0xff] }
 0x3c4   : > { %v3471_v59 = vcombine.low %v3415_v43, %v3431_v46  ;;  %v3406_v58 = vcombine.high %v3366_v2, %v3398_v10  ;;  %v3504_v7 = vcombine.high %v3447_v29, %v3463_v21  ;;  %v3472_v35 = vcombine.high %v3415_v43, %v3431_v46  ;;  %v8602_v10 = vld [vmem:[#allocation2 + $0x38] sm:$0xff]  ;;  %v8610_v21 = vld [vmem:[#allocation2 + $0x50] sm:$0xff]  ;;  %v8626_v46 = vld [vmem:[#allocation2 + $0x80] sm:$0xff] }
 0x3c5   : > { %v3511_v26 = vrot.slane %v3503_v3, %v7990_v20  ;;  %v3470_v48 = vrot.slane %v3456_v51, %v7974_v24  ;;  %v3438_v18 = vrot.slane %v3424_v5, %v7974_v24  ;;  %v3454_v47 = vrot.slane %v3440_v22, %v7974_v24  ;;  %v8624_v2 = vld [vmem:[#allocation2 + $0x138] sm:$0xff]  ;;  %v8632_v29 = vld [vmem:[#allocation2 + $0x150] sm:$0xff]  ;;  %v8640_v43 = vld [vmem:[#allocation2 + $0x168] sm:$0xff] }
 0x3c6   : > { %3555 = vrot.lane.b32.xlu1 %v3265_v44, %s6847_s5  ;;  %3617 = vrot.lane.b32.xlu0 %v3401_v23, %s6845_s30  ;;  %v3479_v49 = vrot.slane %v3471_v59, %v7990_v20  ;;  %v3408_v23 = vcombine.high %v8409_v1, %v8431_v60  ;;  %v3518_v52 = vrot.slane %v3504_v7, %v7990_v20  ;;  %v8557_v44 = vld [vmem:[#allocation2 + $0x48] sm:$0xff]  ;;  %v8642_v3 = vld [vmem:[#allocation2 + $0xb0] sm:$0xff]  ;;  %v3922_v51 = vld [vmem:[#allocation2 + $0x19] sm:$0xff] }
 0x3c7   : > { %v3486_v45 = vrot.slane %v3472_v35, %v7990_v20  ;;  %v3519_v60 = vcombine.low %v3454_v47, %v3470_v48  ;;  %v3520_v42 = vcombine.high %v3454_v47, %v3470_v48  ;;  %v8650_v59 = vld [vmem:[#allocation2 + $0xc8] sm:$0xff]  ;;  %v8661_v7 = vld [vmem:[#allocation2 + $0xf8] sm:$0xff]  ;;  %v8668_v35 = vld [vmem:[#allocation2 + $0x110] sm:$0xff] }
 0x3c8   : > { %v3535_v54 = vcombine.low %v3479_v49, %v3511_v26  ;;  %v3536_v27 = vcombine.high %v3479_v49, %v3511_v26  ;;  %v3422_v1 = vrot.slane %v3408_v23, %v7974_v24  ;;  %v8656_v26 = vld [vmem:[#allocation2 + $0xe0] sm:$0xff]  ;;  %v8666_v5 = vld [vmem:[#allocation2 + $0x31] sm:$0xff]  ;;  %v8674_v23 = vld [vmem:[#allocation2 + $0x49] sm:$0xff] }
 0x3c9   : > { %v3537_v30 = vcombine.low %v3486_v45, %v3518_v52  ;;  %v3534_v28 = vrot.slane %v3520_v42, %v7990_v20  ;;  %v8676_v48 = vld [vmem:[#allocation2 + $0x128] sm:$0xff] }
 0x3ca   : > { %3563 = vrot.lane.b32.xlu1 %v3266_v62, %s6848_s6  ;;  %3625 = vrot.lane.b32.xlu0 %v3402_v56, %s6840_s27  ;;  %v3487_v17 = vcombine.low %v3422_v1, %v3438_v18  ;;  %v3538_v62 = vcombine.high %v3486_v45, %v3518_v52  ;;  %v3527_v56 = vrot.slane %v3519_v60, %v7990_v20  ;;  %v8682_v52 = vld [vmem:[#allocation2 + $0x61] sm:$0xff]  ;;  %v8690_v45 = vld [vmem:[#allocation2 + $0x79] sm:$0xff] }
 0x3cb   : > { %v3488_v39 = vcombine.high %v3422_v1, %v3438_v18  ;;  %v8684_v18 = vld [vmem:[#allocation2 + $0x140] sm:$0xff]  ;;  %v8692_v1 = vld [vmem:[#allocation2 + $0x158] sm:$0xff]  ;;  %v8710_v42 = vld [vmem:[#allocation2 + $0x188] sm:$0xff] }
 0x3cc   : > { %v3495_v37 = vrot.slane %v3487_v17, %v7990_v20  ;;  %v8700_v17 = vld [vmem:[#allocation2 + $0x170] sm:$0xff] }
 0x3ce   : > { %3571 = vrot.lane.b32.xlu1 %v3267_v16, %s6850_s8  ;;  %3633 = vrot.lane.b32.xlu0 %v3403_v33, %s6843_s28  ;;  %v3539_v50 = vcombine.low %v3495_v37, %v3527_v56  ;;  %v3540_v6 = vcombine.high %v3495_v37, %v3527_v56  ;;  %v8584_v16 = vld [vmem:[#allocation2 + $0xa8] sm:$0xff]  ;;  %v3502_v33 = vrot.slane %v3488_v39, %v7990_v20 }
 0x3cf   : > { %v8708_v37 = vld [vmem:[#allocation2 + $0xa9] sm:$0xff] }
 0x3d0   : > { %v3541_v19 = vcombine.low %v3502_v33, %v3534_v28  ;;  %v3542_v61 = vcombine.high %v3502_v33, %v3534_v28  ;;  %10458 = vst [vmem:[#allocation60_spill] sm:$0xff] %v8708_v37  ;;  %v3761_v28 = vld [vmem:[#allocation2 + $0x1a0] sm:$0xff] }
 0x3d2   : > { %3579 = vrot.lane.b32.xlu1 %v3268_v8, %s6851_s9  ;;  %3641 = vrot.lane.b32.xlu0 %v3404_v32, %s6849_s7  ;;  %v8600_v32 = vld [vmem:[#allocation2 + $0xf0] sm:$0xff]  ;;  %v8616_v8 = vld [vmem:[#allocation2 + $0x120] sm:$0xff] }
 0x3d6   : > { %3587 = vrot.lane.b32.xlu1 %v3269_v25, %s6837_s24  ;;  %3649 = vrot.lane.b32.xlu0 %v3405_v14, %s6838_s25  ;;  %v8648_v14 = vld [vmem:[#allocation2 + $0x180] sm:$0xff] }
 0x3da   : > { %3595 = vrot.lane.b32.xlu1 %v3270_v38, %s6853_s11  ;;  %3657 = vrot.lane.b32.xlu0 %v3406_v58, %s6852_s10  ;;  %v3760_v58 = vld [vmem:[#allocation2 + $0x198] sm:$0xff] }
 0x3de   : > { %3794 = vrot.lane.b32.xlu0 %v8544_v4, %s6838_s25  ;;  %3603 = vrot.lane.b32.xlu1 %v3535_v54, %s6839_s26 }
 0x3e2   : > { %3798 = vrot.lane.b32.xlu0 %v8557_v44, %s6838_s25  ;;  %3611 = vrot.lane.b32.xlu1 %v3536_v27, %s6844_s29 }
 0x3e6   : > { %3802 = vrot.lane.b32.xlu0 %v8566_v41, %s6838_s25  ;;  %3619 = vrot.lane.b32.xlu1 %v3537_v30, %s6845_s30  ;;  %v8698_v30 = vld [vmem:[#allocation2 + $0x91] sm:$0xff] }
 0x3ea   : > { %3806 = vrot.lane.b32.xlu0 %v8572_v11, %s6838_s25  ;;  %3627 = vrot.lane.b32.xlu1 %v3538_v62, %s6840_s27 }
 0x3ee   : > { %3810 = vrot.lane.b32.xlu0 %v8578_v12, %s6838_s25  ;;  %3635 = vrot.lane.b32.xlu1 %v3539_v50, %s6843_s28 }
 0x3f2   : > { %3814 = vrot.lane.b32.xlu0 %v8584_v16, %s6838_s25  ;;  %3643 = vrot.lane.b32.xlu1 %v3540_v6, %s6849_s7  ;;  %v8718_v6 = vld [vmem:[#allocation2 + $0xc1] sm:$0xff] }
 0x3f3   : > { %10459 = vst [vmem:[#allocation69_spill] sm:$0xff] %v8718_v6 }
 0x3f6   : > { %3818 = vrot.lane.b32.xlu0 %v8590_v57, %s6838_s25  ;;  %3651 = vrot.lane.b32.xlu1 %v3541_v19, %s6838_s25 }
 0x3fa   : > { %3822 = vrot.lane.b32.xlu0 %v8595_v36, %s6838_s25  ;;  %3659 = vrot.lane.b32.xlu1 %v3542_v61, %s6852_s10  ;;  %v8725_v61 = vld [vmem:[#allocation2 + $0xd9] sm:$0xff] }
 0x3fb   : > { %10460 = vst [vmem:[#allocation67_spill] sm:$0xff] %v8725_v61 }
 0x3fe   : > { %3826 = vrot.lane.b32.xlu0 %v8600_v32, %s6838_s25  ;;  %3796 = vrot.lane.b32.xlu1 %v8602_v10, %s6838_s25 }
 0x402   : > { %3830 = vrot.lane.b32.xlu0 %v8608_v40, %s6838_s25  ;;  %3800 = vrot.lane.b32.xlu1 %v8610_v21, %s6838_s25 }
 0x406   : > { %3834 = vrot.lane.b32.xlu0 %v8616_v8, %s6838_s25  ;;  %3804 = vrot.lane.b32.xlu1 %v8618_v34, %s6838_s25 }
 0x40a   : > { %3838 = vrot.lane.b32.xlu0 %v8624_v2, %s6838_s25  ;;  %3808 = vrot.lane.b32.xlu1 %v8626_v46, %s6838_s25 }
 0x40e   : > { %3842 = vrot.lane.b32.xlu0 %v8632_v29, %s6838_s25  ;;  %3812 = vrot.lane.b32.xlu1 %v8634_v31, %s6838_s25 }
 0x412   : > { %3846 = vrot.lane.b32.xlu0 %v8640_v43, %s6838_s25  ;;  %3816 = vrot.lane.b32.xlu1 %v8642_v3, %s6838_s25 }
 0x414   : > { %v3546_v25 = vpop.permute.xlu0 %3545 }
 0x416   : > { %3850 = vrot.lane.b32.xlu0 %v8648_v14, %s6838_s25  ;;  %3820 = vrot.lane.b32.xlu1 %v8650_v59, %s6838_s25 }
 0x418   : > { %v3554_v38 = vpop.permute.xlu0 %3553 }
 0x41a   : > { %3854 = vrot.lane.b32.xlu0 %v3760_v58, %s6838_s25  ;;  %3824 = vrot.lane.b32.xlu1 %v8656_v26, %s6838_s25  ;;  %v3923_v58 = vld [vmem:[#allocation2 + $0x21] sm:$0xff] }
 0x41c   : > { %v3562_v49 = vpop.permute.xlu0 %3561 }
 0x41e   : > { %3986 = vrot.lane.b32.xlu0 %v3922_v51, %s6839_s26  ;;  %3828 = vrot.lane.b32.xlu1 %v8661_v7, %s6838_s25  ;;  %v3663_v51 = vsel %vm2209_vm1, %v3127_v0, %v3546_v25 }
 0x41f   : > { %v3665_v15 = vsel %vm255_vm0, %v3663_v51, %v3554_v38  ;;  %v8750_v38 = vld [vmem:[#allocation2 + $0x109] sm:$0xff] }
 0x420   : > { %v3570_v54 = vpop.permute.xlu0 %3569  ;;  %v3667_v24 = vsel %vm2214_vm2, %v3665_v15, %v3562_v49  ;;  %10461 = vst [vmem:[#allocation42_spill] sm:$0xff] %v8750_v38  ;;  %v8752_v49 = vld [vmem:[#allocation2 + $0x51] sm:$0xff]  ;;  %v8764_v51 = vld [vmem:[#allocation2 + $0x69] sm:$0xff] }
 0x421   : > { %10462 = vst [vmem:[#allocation70_spill] sm:$0xff] %v8752_v49  ;;  %10464 = vst [vmem:[#allocation62_spill] sm:$0xff] %v8764_v51 }
 0x422   : > { %3990 = vrot.lane.b32.xlu0 %v8666_v5, %s6839_s26  ;;  %3832 = vrot.lane.b32.xlu1 %v8668_v35, %s6838_s25 }
 0x424   : > { %v3578_v22 = vpop.permute.xlu0 %3577 }
 0x426   : > { %3994 = vrot.lane.b32.xlu0 %v8674_v23, %s6839_s26  ;;  %3836 = vrot.lane.b32.xlu1 %v8676_v48, %s6838_s25 }
 0x428   : > { %v3586_v27 = vpop.permute.xlu0 %3585 }
 0x42a   : > { %3998 = vrot.lane.b32.xlu0 %v8682_v52, %s6839_s26  ;;  %3840 = vrot.lane.b32.xlu1 %v8684_v18, %s6838_s25 }
 0x42c   : > { %v3594_v47 = vpop.permute.xlu0 %3593 }
 0x42e   : > { %4002 = vrot.lane.b32.xlu0 %v8690_v45, %s6839_s26  ;;  %3844 = vrot.lane.b32.xlu1 %v8692_v1, %s6838_s25 }
 0x430   : > { %v3602_v60 = vpop.permute.xlu0 %3601 }
 0x432   : > { %4006 = vrot.lane.b32.xlu0 %v8698_v30, %s6839_s26  ;;  %3848 = vrot.lane.b32.xlu1 %v8700_v17, %s6838_s25 }
 0x434   : > { %v3610_v62 = vpop.permute.xlu0 %3609  ;;  %v8706_v56 = vpop.permute.xlu1 %3547 }
 0x436   : > { %4010 = vrot.lane.b32.xlu0 %v8708_v37, %s6839_s26  ;;  %3852 = vrot.lane.b32.xlu1 %v8710_v42, %s6838_s25  ;;  %v8740_v37 = vld [vmem:[#allocation2 + $0x39] sm:$0xff] }
 0x438   : > { %v3618_v50 = vpop.permute.xlu0 %3617  ;;  %v8716_v39 = vpop.permute.xlu1 %3555 }
 0x43a   : > { %4014 = vrot.lane.b32.xlu0 %v8718_v6, %s6839_s26  ;;  %3856 = vrot.lane.b32.xlu1 %v3761_v28, %s6838_s25  ;;  %v8738_v6 = vld [vmem:[#allocation2 + $0xf1] sm:$0xff] }
 0x43c   : > { %v3626_v33 = vpop.permute.xlu0 %3625  ;;  %v8723_v19 = vpop.permute.xlu1 %3563 }
 0x43e   : > { %4018 = vrot.lane.b32.xlu0 %v8725_v61, %s6839_s26  ;;  %3988 = vrot.lane.b32.xlu1 %v3923_v58, %s6839_s26  ;;  %v3669_v61 = vsel %vm2217_vm3, %v3667_v24, %v3570_v54  ;;  %v8762_v58 = vld [vmem:[#allocation2 + $0x121] sm:$0xff] }
 0x43f   : > { %v3671_v9 = vsel %vm2220_vm4, %v3669_v61, %v3578_v22  ;;  %10463 = vst [vmem:[#allocation35_spill] sm:$0xff] %v8762_v58 }
 0x440   : > { %v3634_v20 = vpop.permute.xlu0 %3633  ;;  %v8735_v28 = vpop.permute.xlu1 %3571  ;;  %v3673_v55 = vsel %vm2223_vm5, %v3671_v9, %v3586_v27 }
 0x441   : > { %v3675_v15 = vsel %vm2226_vm6, %v3673_v55, %v3594_v47 }
 0x442   : > { %4022 = vrot.lane.b32.xlu0 %v8738_v6, %s6839_s26  ;;  %3992 = vrot.lane.b32.xlu1 %v8740_v37, %s6839_s26  ;;  %v3677_v24 = vsel %vm2229_vm7, %v3675_v15, %v3602_v60  ;;  %v8774_v15 = vld [vmem:[#allocation2 + $0x139] sm:$0xff] }
 0x443   : > { %v3679_v54 = vsel %vm2232_vm8, %v3677_v24, %v3610_v62  ;;  %10465 = vst [vmem:[#allocation57_spill] sm:$0xff] %v8774_v15  ;;  %v8776_v24 = vld [vmem:[#allocation2 + $0x81] sm:$0xff] }
 0x444   : > { %v3642_v0 = vpop.permute.xlu0 %3641  ;;  %v3580_v25 = vpop.permute.xlu1 %3579  ;;  %v3681_v22 = vsel %vm2235_vm9, %v3679_v54, %v3618_v50  ;;  %10466 = vst [vmem:[#allocation36_spill] sm:$0xff] %v8776_v24 }
 0x445   : > { %v3683_v47 = vsel %vm2238_vm10, %v3681_v22, %v3626_v33  ;;  %v8786_v22 = vld [vmem:[#allocation2 + $0x151] sm:$0xff] }
 0x446   : > { %4026 = vrot.lane.b32.xlu0 %v8750_v38, %s6839_s26  ;;  %3996 = vrot.lane.b32.xlu1 %v8752_v49, %s6839_s26  ;;  %v3685_v60 = vsel %vm2241_vm11, %v3683_v47, %v3634_v20  ;;  %10467 = vst [vmem:[#allocation56_spill] sm:$0xff] %v8786_v22  ;;  %v8832_v38 = vld [vmem:[#allocation2 + $0xf9] sm:$0xff] }
 0x447   : > { %v3687_v62 = vsel %vm2244_vm12, %v3685_v60, %v3642_v0  ;;  %10475 = vst [vmem:[#allocation7_spill] sm:$0xff] %v8832_v38 }
 0x448   : > { %v3650_v27 = vpop.permute.xlu0 %3649  ;;  %v3588_v61 = vpop.permute.xlu1 %3587 }
 0x449   : > { %v3689_v50 = vsel %vm2247_vm13, %v3687_v62, %v3650_v27  ;;  %v8788_v27 = vld [vmem:[#allocation2 + $0x99] sm:$0xff]  ;;  %v8796_v62 = vld [vmem:[#allocation2 + $0x169] sm:$0xff] }
 0x44a   : > { %4030 = vrot.lane.b32.xlu0 %v8762_v58, %s6839_s26  ;;  %4000 = vrot.lane.b32.xlu1 %v8764_v51, %s6839_s26  ;;  %10468 = vst [vmem:[#allocation32_spill] sm:$0xff] %v8788_v27  ;;  %10469 = vst [vmem:[#allocation51_spill] sm:$0xff] %v8796_v62 }
 0x44c   : > { %v3658_v9 = vpop.permute.xlu0 %3657  ;;  %v3596_v55 = vpop.permute.xlu1 %3595 }
 0x44d   : > { %v3691_v33 = vsel %vm2250_vm14, %v3689_v50, %v3658_v9  ;;  %v8798_v50 = vld [vmem:[#allocation2 + $0xb1] sm:$0xff] }
 0x44e   : > { %v3693_v20 = vadd.f32 %v8360_v13, %v3691_v33  ;;  %4034 = vrot.lane.b32.xlu0 %v8774_v15, %s6839_s26  ;;  %4004 = vrot.lane.b32.xlu1 %v8776_v24, %s6839_s26  ;;  %10470 = vst [vmem:[#allocation75_spill] sm:$0xff] %v8798_v50  ;;  %v8816_v15 = vld [vmem:[#allocation2 + $0xe1] sm:$0xff] }
 0x44f   : > { %10473 = vst [vmem:[#allocation68_spill] sm:$0xff] %v8816_v15 }
 0x450   : > { %3695 = vst [vmem:[%s8369_s20 + $0x8] sm:$0xff] %v3693_v20  ;;  %v8784_v0 = vpop.permute.xlu0 %3794  ;;  %v3604_v54 = vpop.permute.xlu1 %3603  ;;  %v8806_v20 = vld [vmem:[#allocation2 + $0x181] sm:$0xff] }
 0x451   : > { %10471 = vst [vmem:[#allocation41_spill] sm:$0xff] %v8806_v20 }
 0x452   : > { %4038 = vrot.lane.b32.xlu0 %v8786_v22, %s6839_s26  ;;  %4008 = vrot.lane.b32.xlu1 %v8788_v27, %s6839_s26  ;;  %v8808_v22 = vld [vmem:[#allocation2 + $0xc9] sm:$0xff] }
 0x453   : > { %10472 = vst [vmem:[#allocation4_spill] sm:$0xff] %v8808_v22 }
 0x454   : > { %v8794_v47 = vpop.permute.xlu0 %3798  ;;  %v3612_v60 = vpop.permute.xlu1 %3611 }
 0x456   : > { %4042 = vrot.lane.b32.xlu0 %v8796_v62, %s6839_s26  ;;  %4012 = vrot.lane.b32.xlu1 %v8798_v50, %s6839_s26  ;;  %v4114_v62 = vld [vmem:[#allocation2 + $0x18] sm:$0xff]  ;;  %v10474_v50 = vcombine.low %v8481_v63, %v8484_v53 }
 0x458   : > { %v8804_v9 = vpop.permute.xlu0 %3802  ;;  %v3620_v33 = vpop.permute.xlu1 %3619 }
 0x45a   : > { %4046 = vrot.lane.b32.xlu0 %v8806_v20, %s6839_s26  ;;  %4016 = vrot.lane.b32.xlu1 %v8808_v22, %s6839_s26  ;;  %v3664_v20 = vsel %vm2209_vm1, %v10474_v50, %v8706_v56 }
 0x45b   : > { %v3666_v22 = vsel %vm255_vm0, %v3664_v20, %v8716_v39 }
 0x45c   : > { %v8814_v27 = vpop.permute.xlu0 %3806  ;;  %v3628_v24 = vpop.permute.xlu1 %3627  ;;  %v3668_v49 = vsel %vm2214_vm2, %v3666_v22, %v8723_v19  ;;  %v8845_v22 = vld [vmem:[#allocation2 + $0x111] sm:$0xff] }
 0x45d   : > { %10476 = vst [vmem:[#allocation3_spill] sm:$0xff] %v8845_v22 }
 0x45e   : > { %4178 = vrot.lane.b32.xlu0 %v4114_v62, %s6837_s24  ;;  %4020 = vrot.lane.b32.xlu1 %v8816_v15, %s6839_s26  ;;  %v3670_v62 = vsel %vm2217_vm3, %v3668_v49, %v8735_v28 }
 0x45f   : > { %v3672_v63 = vsel %vm2220_vm4, %v3670_v62, %v3580_v25 }
 0x460   : > { %v8828_v51 = vpop.permute.xlu0 %3810  ;;  %v3636_v58 = vpop.permute.xlu1 %3635  ;;  %v3674_v53 = vsel %vm2223_vm5, %v3672_v63, %v3588_v61 }
 0x461   : > { %v3676_v19 = vsel %vm2226_vm6, %v3674_v53, %v3596_v55  ;;  %v8857_v55 = vld [vmem:[#allocation2 + $0x129] sm:$0xff]  ;;  %v8881_v53 = vld [vmem:[#allocation2 + $0x159] sm:$0xff] }
 0x462   : > { %4182 = vrot.lane.b32.xlu0 %v8544_v4, %s6837_s24  ;;  %4024 = vrot.lane.b32.xlu1 %v8832_v38, %s6839_s26  ;;  %v3678_v50 = vsel %vm2229_vm7, %v3676_v19, %v3604_v54  ;;  %10477 = vst [vmem:[#allocation50_spill] sm:$0xff] %v8857_v55  ;;  %10479 = vst [vmem:[#allocation8_spill] sm:$0xff] %v8881_v53 }
 0x463   : > { %v3680_v4 = vsel %vm2232_vm8, %v3678_v50, %v3612_v60 }
 0x464   : > { %v8842_v56 = vpop.permute.xlu0 %3814  ;;  %v3644_v39 = vpop.permute.xlu1 %3643  ;;  %v3682_v28 = vsel %vm2235_vm9, %v3680_v4, %v3620_v33 }
 0x465   : > { %v3684_v61 = vsel %vm2238_vm10, %v3682_v28, %v3628_v24  ;;  %v8869_v24 = vld [vmem:[#allocation2 + $0x141] sm:$0xff] }
 0x466   : > { %4186 = vrot.lane.b32.xlu0 %v8557_v44, %s6837_s24  ;;  %4028 = vrot.lane.b32.xlu1 %v8845_v22, %s6839_s26  ;;  %v3686_v54 = vsel %vm2241_vm11, %v3684_v61, %v3636_v58  ;;  %10478 = vst [vmem:[#allocation10_spill] sm:$0xff] %v8869_v24  ;;  %v3892_v22 = vadd.f32 %v8674_v23, %v8794_v47 }
 0x467   : > { %v3688_v44 = vsel %vm2244_vm12, %v3686_v54, %v3644_v39  ;;  %v3896_v23 = vadd.f32 %v8690_v45, %v8814_v27 }
 0x468   : > { %v8854_v25 = vpop.permute.xlu0 %3818  ;;  %v3652_v49 = vpop.permute.xlu1 %3651 }
 0x469   : > { %v3690_v60 = vsel %vm2247_vm13, %v3688_v44, %v3652_v49 }
 0x46a   : > { %4190 = vrot.lane.b32.xlu0 %v8566_v41, %s6837_s24  ;;  %4032 = vrot.lane.b32.xlu1 %v8857_v55, %s6839_s26 }
 0x46c   : > { %v8866_v33 = vpop.permute.xlu0 %3822  ;;  %v3660_v20 = vpop.permute.xlu1 %3659 }
 0x46d   : > { %v3692_v62 = vsel %vm2250_vm14, %v3690_v60, %v3660_v20 }
 0x46e   : > { %v3694_v63 = vadd.f32 %v8360_v13, %v3692_v62  ;;  %4194 = vrot.lane.b32.xlu0 %v8572_v11, %s6837_s24  ;;  %4036 = vrot.lane.b32.xlu1 %v8869_v24, %s6839_s26  ;;  %v8891_v11 = vld [vmem:[#allocation2 + $0x171] sm:$0xff] }
 0x46f   : > { %10480 = vst [vmem:[#allocation15_spill] sm:$0xff] %v8891_v11 }
 0x470   : > { %3696 = vst [vmem:[%s8369_s20 + $0x28] sm:$0xff] %v3694_v63  ;;  %v8877_v41 = vpop.permute.xlu0 %3826  ;;  %v8879_v58 = vpop.permute.xlu1 %3796 }
 0x472   : > { %4198 = vrot.lane.b32.xlu0 %v8578_v12, %s6837_s24  ;;  %4040 = vrot.lane.b32.xlu1 %v8881_v53, %s6839_s26  ;;  %v8901_v12 = vld [vmem:[#allocation2 + $0x189] sm:$0xff] }
 0x473   : > { %10481 = vst [vmem:[#allocation20_spill] sm:$0xff] %v8901_v12 }
 0x474   : > { %v8887_v13 = vpop.permute.xlu0 %3830  ;;  %v8889_v39 = vpop.permute.xlu1 %3800 }
 0x476   : > { %4202 = vrot.lane.b32.xlu0 %v8584_v16, %s6837_s24  ;;  %4044 = vrot.lane.b32.xlu1 %v8891_v11, %s6839_s26  ;;  %v4115_v16 = vld [vmem:[#allocation2 + $0x20] sm:$0xff] }
 0x478   : > { %v8897_v19 = vpop.permute.xlu0 %3834  ;;  %v8899_v50 = vpop.permute.xlu1 %3804 }
 0x47a   : > { %4206 = vrot.lane.b32.xlu0 %v8590_v57, %s6837_s24  ;;  %4048 = vrot.lane.b32.xlu1 %v8901_v12, %s6839_s26 }
 0x47c   : > { %v8907_v4 = vpop.permute.xlu0 %3838  ;;  %v8909_v28 = vpop.permute.xlu1 %3808 }
 0x47e   : > { %4210 = vrot.lane.b32.xlu0 %v8595_v36, %s6837_s24  ;;  %4180 = vrot.lane.b32.xlu1 %v4115_v16, %s6837_s24 }
 0x480   : > { %v8914_v49 = vpop.permute.xlu0 %3842  ;;  %v8916_v61 = vpop.permute.xlu1 %3812 }
 0x482   : > { %4214 = vrot.lane.b32.xlu0 %v8600_v32, %s6837_s24  ;;  %4184 = vrot.lane.b32.xlu1 %v8602_v10, %s6837_s24 }
 0x484   : > { %v8922_v57 = vpop.permute.xlu0 %3846  ;;  %v8924_v54 = vpop.permute.xlu1 %3816 }
 0x486   : > { %4218 = vrot.lane.b32.xlu0 %v8608_v40, %s6837_s24  ;;  %4188 = vrot.lane.b32.xlu1 %v8610_v21, %s6837_s24 }
 0x488   : > { %v8930_v36 = vpop.permute.xlu0 %3850  ;;  %v8932_v44 = vpop.permute.xlu1 %3820 }
 0x48a   : > { %4222 = vrot.lane.b32.xlu0 %v8616_v8, %s6837_s24  ;;  %4192 = vrot.lane.b32.xlu1 %v8618_v34, %s6837_s24 }
 0x48c   : > { %v8938_v32 = vpop.permute.xlu0 %3854  ;;  %v8940_v10 = vpop.permute.xlu1 %3824 }
 0x48d   : > { %10482 = vst [vmem:[#allocation5_spill] sm:$0xff] %v8940_v10 }
 0x48e   : > { %4226 = vrot.lane.b32.xlu0 %v8624_v2, %s6837_s24  ;;  %4196 = vrot.lane.b32.xlu1 %v8626_v46, %s6837_s24 }
 0x490   : > { %v3987_v40 = vpop.permute.xlu0 %3986  ;;  %v8946_v21 = vpop.permute.xlu1 %3828 }
 0x491   : > { %10483 = vst [vmem:[#allocation17_spill] sm:$0xff] %v8946_v21 }
 0x492   : > { %4230 = vrot.lane.b32.xlu0 %v8632_v29, %s6837_s24  ;;  %4200 = vrot.lane.b32.xlu1 %v8634_v31, %s6837_s24 }
 0x494   : > { %v3991_v8 = vpop.permute.xlu0 %3990  ;;  %v8952_v34 = vpop.permute.xlu1 %3832 }
 0x495   : > { %10484 = vst [vmem:[#allocation27_spill] sm:$0xff] %v8952_v34  ;;  %v4084_v38 = vadd.f32 %v3991_v8, %v3892_v22  ;;  %v10493_v8 = vld [vmem:[#allocation60_spill] sm:$0xff] }
 0x496   : > { %4234 = vrot.lane.b32.xlu0 %v8640_v43, %s6837_s24  ;;  %4204 = vrot.lane.b32.xlu1 %v8642_v3, %s6837_s24  ;;  %v3900_v45 = vadd.f32 %v10493_v8, %v8842_v56 }
 0x498   : > { %v3995_v2 = vpop.permute.xlu0 %3994  ;;  %v8958_v46 = vpop.permute.xlu1 %3836 }
 0x499   : > { %10485 = vst [vmem:[#allocation39_spill] sm:$0xff] %v8958_v46 }
 0x49a   : > { %4238 = vrot.lane.b32.xlu0 %v8648_v14, %s6837_s24  ;;  %4208 = vrot.lane.b32.xlu1 %v8650_v59, %s6837_s24 }
 0x49c   : > { %v3999_v29 = vpop.permute.xlu0 %3998  ;;  %v8964_v31 = vpop.permute.xlu1 %3840 }
 0x49d   : > { %10486 = vst [vmem:[#allocation13_spill] sm:$0xff] %v8964_v31  ;;  %v4088_v22 = vadd.f32 %v3999_v29, %v3896_v23  ;;  %v10494_v29 = vld [vmem:[#allocation69_spill] sm:$0xff] }
 0x49e   : > { %4212 = vrot.lane.b32.xlu1 %v8656_v26, %s6837_s24 }
 0x4a0   : > { %v4003_v60 = vpop.permute.xlu0 %4002  ;;  %v8968_v43 = vpop.permute.xlu1 %3844 }
 0x4a1   : > { %10487 = vst [vmem:[#allocation48_spill] sm:$0xff] %v8968_v43 }
 0x4a2   : > { %4216 = vrot.lane.b32.xlu1 %v8661_v7, %s6837_s24 }
 0x4a4   : > { %v4007_v3 = vpop.permute.xlu0 %4006  ;;  %v8972_v20 = vpop.permute.xlu1 %3848 }
 0x4a5   : > { %10488 = vst [vmem:[#allocation38_spill] sm:$0xff] %v8972_v20 }
 0x4a6   : > { %4220 = vrot.lane.b32.xlu1 %v8668_v35, %s6837_s24 }
 0x4a8   : > { %v4011_v14 = vpop.permute.xlu0 %4010  ;;  %v8976_v59 = vpop.permute.xlu1 %3852 }
 0x4a9   : > { %10489 = vst [vmem:[#allocation72_spill] sm:$0xff] %v8976_v59 }
 0x4aa   : > { %4224 = vrot.lane.b32.xlu1 %v8676_v48, %s6837_s24 }
 0x4ac   : > { %v8980_v62 = vpop.permute.xlu0 %4014  ;;  %v8982_v26 = vpop.permute.xlu1 %3856 }
 0x4ad   : > { %10490 = vst [vmem:[#allocation61_spill] sm:$0xff] %v8982_v26 }
 0x4ae   : > { %4228 = vrot.lane.b32.xlu1 %v8684_v18, %s6837_s24 }
 0x4b0   : > { %v8986_v7 = vpop.permute.xlu0 %4018  ;;  %v8988_v63 = vpop.permute.xlu1 %3988 }
 0x4b2   : > { %4232 = vrot.lane.b32.xlu1 %v8692_v1, %s6837_s24 }
 0x4b4   : > { %v8992_v35 = vpop.permute.xlu0 %4022  ;;  %v8994_v16 = vpop.permute.xlu1 %3992 }
 0x4b6   : > { %4236 = vrot.lane.b32.xlu1 %v8700_v17, %s6837_s24 }
 0x4b8   : > { %v8998_v48 = vpop.permute.xlu0 %4026  ;;  %v9000_v26 = vpop.permute.xlu1 %3996 }
 0x4ba   : > { %4240 = vrot.lane.b32.xlu1 %v8710_v42, %s6837_s24  ;;  %v3890_v42 = vadd.f32 %v8666_v5, %v8784_v0 }
 0x4bc   : > { %v9004_v18 = vpop.permute.xlu0 %4030  ;;  %v9006_v12 = vpop.permute.xlu1 %4000  ;;  %v4082_v31 = vadd.f32 %v3987_v40, %v3890_v42  ;;  %v10495_v42 = vld [vmem:[#allocation67_spill] sm:$0xff] }
 0x4bd   : > { %v3904_v56 = vadd.f32 %v10495_v42, %v8866_v33 }
 0x4c0   : > { %v9008_v59 = vpop.permute.xlu0 %4034  ;;  %v9010_v1 = vpop.permute.xlu1 %4004 }
 0x4c4   : > { %v9012_v11 = vpop.permute.xlu0 %4038  ;;  %v9014_v20 = vpop.permute.xlu1 %4008 }
 0x4c8   : > { %v9016_v17 = vpop.permute.xlu0 %4042  ;;  %v9018_v53 = vpop.permute.xlu1 %4012 }
 0x4cc   : > { %v9020_v43 = vpop.permute.xlu0 %4046  ;;  %v9022_v24 = vpop.permute.xlu1 %4016 }
 0x4cd   : > { %10491 = vst [vmem:[#allocation71_spill] sm:$0xff] %v9020_v43  ;;  %10492 = vst [vmem:[#allocation78_spill] sm:$0xff] %v9022_v24  ;;  %v3894_v24 = vadd.f32 %v8682_v52, %v8804_v9  ;;  %v3898_v52 = vadd.f32 %v8698_v30, %v8828_v51  ;;  %v3902_v30 = vadd.f32 %v10494_v29, %v8854_v25 }
 0x4ce   : > { %v3906_v25 = vadd.f32 %v8738_v6, %v8877_v41 }
 0x4cf   : > { %v4086_v10 = vadd.f32 %v3995_v2, %v3894_v24  ;;  %v4090_v9 = vadd.f32 %v4003_v60, %v3898_v52 }
 0x4d0   : > { %v4179_v55 = vpop.permute.xlu0 %4178  ;;  %v9026_v46 = vpop.permute.xlu1 %4020 }
 0x4d1   : > { %v4274_v34 = vadd.f32 %v4179_v55, %v4082_v31  ;;  %v4094_v31 = vadd.f32 %v4011_v14, %v3902_v30  ;;  %v3891_v14 = vadd.f32 %v8740_v37, %v8879_v58 }
 0x4d3   : > { %4338 = vrot.lane.b32.xlu0 %v4274_v34, %s6852_s10  ;;  %v4083_v52 = vadd.f32 %v8988_v63, %v3891_v14  ;;  %v10498_v63 = vld [vmem:[#allocation35_spill] sm:$0xff] }
 0x4d4   : > { %v4183_v21 = vpop.permute.xlu0 %4182  ;;  %v9031_v15 = vpop.permute.xlu1 %4024 }
 0x4d5   : > { %v4276_v43 = vadd.f32 %v4183_v21, %v4084_v38 }
 0x4d7   : > { %4342 = vrot.lane.b32.xlu0 %v4276_v43, %s6852_s10 }
 0x4d8   : > { %v4187_v5 = vpop.permute.xlu0 %4186  ;;  %v9036_v0 = vpop.permute.xlu1 %4028 }
 0x4d9   : > { %v4278_v47 = vadd.f32 %v4187_v5, %v4086_v10  ;;  %v4092_v10 = vadd.f32 %v4007_v3, %v3900_v45  ;;  %v4096_v3 = vadd.f32 %v8980_v62, %v3904_v56 }
 0x4db   : > { %4346 = vrot.lane.b32.xlu0 %v4278_v47, %s6852_s10 }
 0x4dc   : > { %v4191_v55 = vpop.permute.xlu0 %4190  ;;  %v9041_v40 = vpop.permute.xlu1 %4032 }
 0x4dd   : > { %v4280_v38 = vadd.f32 %v4191_v55, %v4088_v22  ;;  %v4098_v55 = vadd.f32 %v8986_v7, %v3906_v25 }
 0x4df   : > { %4350 = vrot.lane.b32.xlu0 %v4280_v38, %s6852_s10  ;;  %v10496_v38 = vld [vmem:[#allocation42_spill] sm:$0xff] }
 0x4e0   : > { %v4195_v24 = vpop.permute.xlu0 %4194  ;;  %v9046_v21 = vpop.permute.xlu1 %4036 }
 0x4e1   : > { %v4282_v27 = vadd.f32 %v4195_v24, %v4090_v9  ;;  %v3908_v9 = vadd.f32 %v10496_v38, %v8887_v13  ;;  %v10497_v24 = vld [vmem:[#allocation70_spill] sm:$0xff] }
 0x4e2   : > { %v3893_v8 = vadd.f32 %v10497_v24, %v8889_v39  ;;  %v10499_v13 = vld [vmem:[#allocation62_spill] sm:$0xff] }
 0x4e3   : > { %4354 = vrot.lane.b32.xlu0 %v4282_v27, %s6852_s10  ;;  %v4100_v41 = vadd.f32 %v8992_v35, %v3908_v9  ;;  %v3910_v27 = vadd.f32 %v10498_v63, %v8897_v19  ;;  %v10501_v19 = vld [vmem:[#allocation36_spill] sm:$0xff]  ;;  %v10508_v63 = vld [vmem:[#allocation5_spill] sm:$0xff] }
 0x4e4   : > { %v4199_v34 = vpop.permute.xlu0 %4198  ;;  %v9051_v2 = vpop.permute.xlu1 %4040  ;;  %v4085_v37 = vadd.f32 %v8994_v16, %v3893_v8  ;;  %v10506_v8 = vld [vmem:[#allocation41_spill] sm:$0xff] }
 0x4e5   : > { %v4284_v51 = vadd.f32 %v4199_v34, %v4092_v10  ;;  %v3895_v10 = vadd.f32 %v10499_v13, %v8899_v50  ;;  %v4102_v29 = vadd.f32 %v8998_v48, %v3910_v27  ;;  %v10509_v27 = vld [vmem:[#allocation68_spill] sm:$0xff] }
 0x4e7   : > { %4358 = vrot.lane.b32.xlu0 %v4284_v51, %s6852_s10  ;;  %v4087_v35 = vadd.f32 %v9000_v26, %v3895_v10  ;;  %v10500_v51 = vld [vmem:[#allocation57_spill] sm:$0xff] }
 0x4e8   : > { %v4203_v60 = vpop.permute.xlu0 %4202  ;;  %v9056_v43 = vpop.permute.xlu1 %4044 }
 0x4e9   : > { %v4286_v5 = vadd.f32 %v4203_v60, %v4094_v31  ;;  %v3912_v31 = vadd.f32 %v10500_v51, %v8907_v4  ;;  %v3897_v60 = vadd.f32 %v10501_v19, %v8909_v28  ;;  %v10503_v4 = vld [vmem:[#allocation32_spill] sm:$0xff] }
 0x4ea   : > { %v3899_v25 = vadd.f32 %v10503_v4, %v8916_v61 }
 0x4eb   : > { %4362 = vrot.lane.b32.xlu0 %v4286_v5, %s6852_s10  ;;  %v4104_v56 = vadd.f32 %v9004_v18, %v3912_v31  ;;  %v4089_v48 = vadd.f32 %v9006_v12, %v3897_v60 }
 0x4ec   : > { %v4207_v23 = vpop.permute.xlu0 %4206  ;;  %v9062_v47 = vpop.permute.xlu1 %4048  ;;  %v4091_v18 = vadd.f32 %v9010_v1, %v3899_v25 }
 0x4ed   : > { %v4288_v22 = vadd.f32 %v4207_v23, %v4096_v3  ;;  %v10502_v3 = vld [vmem:[#allocation56_spill] sm:$0xff] }
 0x4ee   : > { %v3914_v23 = vadd.f32 %v10502_v3, %v8914_v49  ;;  %v10505_v49 = vld [vmem:[#allocation75_spill] sm:$0xff] }
 0x4ef   : > { %4366 = vrot.lane.b32.xlu0 %v4288_v22, %s6852_s10  ;;  %v10516_v3 = vld [vmem:[#allocation39_spill] sm:$0xff] }
 0x4f0   : > { %v4211_v33 = vpop.permute.xlu0 %4210  ;;  %v4181_v62 = vpop.permute.xlu1 %4180  ;;  %v4106_v22 = vadd.f32 %v9008_v59, %v3914_v23  ;;  %v10517_v23 = vld [vmem:[#allocation50_spill] sm:$0xff] }
 0x4f1   : > { %v4290_v45 = vadd.f32 %v4211_v33, %v4098_v55  ;;  %v4275_v6 = vadd.f32 %v4181_v62, %v4083_v52  ;;  %v10504_v52 = vld [vmem:[#allocation51_spill] sm:$0xff]  ;;  %v3901_v62 = vadd.f32 %v10505_v49, %v8924_v54  ;;  %v3911_v4 = vadd.f32 %v10517_v23, %v10516_v3 }
 0x4f2   : > { %v3916_v33 = vadd.f32 %v10504_v52, %v8922_v57  ;;  %v10507_v57 = vld [vmem:[#allocation4_spill] sm:$0xff]  ;;  %v10528_v3 = vld [vmem:[#allocation19_spill] sm:$0xff] }
 0x4f3   : > { %4370 = vrot.lane.b32.xlu0 %v4290_v45, %s6852_s10  ;;  %4340 = vrot.lane.b32.xlu1 %v4275_v6, %s6852_s10  ;;  %v4093_v59 = vadd.f32 %v9014_v20, %v3901_v62  ;;  %v3918_v45 = vadd.f32 %v10506_v8, %v8930_v36  ;;  %v3903_v6 = vadd.f32 %v10507_v57, %v8932_v44  ;;  %v9119_v20 = vld [vmem:[#allocation2 + $0x199] sm:$0xff] }
 0x4f4   : > { %v4215_v58 = vpop.permute.xlu0 %4214  ;;  %v4185_v7 = vpop.permute.xlu1 %4184  ;;  %v4108_v9 = vadd.f32 %v9012_v11, %v3916_v33  ;;  %v3920_v36 = vadd.f32 %v8938_v32, %v9119_v20  ;;  %v3905_v44 = vadd.f32 %v10509_v27, %v10508_v63  ;;  %v10520_v52 = vld [vmem:[#allocation48_spill] sm:$0xff] }
 0x4f5   : > { %v4292_v34 = vadd.f32 %v4215_v58, %v4100_v41  ;;  %v4277_v39 = vadd.f32 %v4185_v7, %v4085_v37  ;;  %v4110_v37 = vadd.f32 %v9016_v17, %v3918_v45  ;;  %v4095_v11 = vadd.f32 %v9018_v53, %v3903_v6  ;;  %v10521_v33 = vld [vmem:[#allocation8_spill] sm:$0xff] }
 0x4f6   : > { %v3915_v49 = vadd.f32 %v10521_v33, %v10520_v52  ;;  %v10524_v8 = vld [vmem:[#allocation72_spill] sm:$0xff] }
 0x4f7   : > { %4374 = vrot.lane.b32.xlu0 %v4292_v34, %s6852_s10  ;;  %4344 = vrot.lane.b32.xlu1 %v4277_v39, %s6852_s10  ;;  %v10510_v34 = vld [vmem:[#allocation71_spill] sm:$0xff]  ;;  %v10511_v39 = vld [vmem:[#allocation78_spill] sm:$0xff]  ;;  %v10525_v45 = vld [vmem:[#allocation20_spill] sm:$0xff] }
 0x4f8   : > { %v4219_v16 = vpop.permute.xlu0 %4218  ;;  %v4189_v30 = vpop.permute.xlu1 %4188  ;;  %v4112_v17 = vadd.f32 %v10510_v34, %v3920_v36  ;;  %v4097_v53 = vadd.f32 %v10511_v39, %v3905_v44  ;;  %v3919_v57 = vadd.f32 %v10525_v45, %v10524_v8 }
 0x4f9   : > { %v4294_v42 = vadd.f32 %v4219_v16, %v4102_v29  ;;  %v4279_v50 = vadd.f32 %v4189_v30, %v4087_v35  ;;  %v10512_v16 = vld [vmem:[#allocation17_spill] sm:$0xff]  ;;  %v10513_v30 = vld [vmem:[#allocation7_spill] sm:$0xff] }
 0x4fa   : > { %v3907_v51 = vadd.f32 %v10513_v30, %v10512_v16 }
 0x4fb   : > { %4378 = vrot.lane.b32.xlu0 %v4294_v42, %s6852_s10  ;;  %4348 = vrot.lane.b32.xlu1 %v4279_v50, %s6852_s10  ;;  %v10514_v42 = vld [vmem:[#allocation27_spill] sm:$0xff] }
 0x4fc   : > { %v4223_v26 = vpop.permute.xlu0 %4222  ;;  %v4193_v5 = vpop.permute.xlu1 %4192  ;;  %v4099_v19 = vadd.f32 %v9026_v46, %v3907_v51  ;;  %v10515_v50 = vld [vmem:[#allocation3_spill] sm:$0xff]  ;;  %v4103_v46 = vadd.f32 %v9036_v0, %v3911_v4 }
 0x4fd   : > { %v4296_v14 = vadd.f32 %v4223_v26, %v4104_v56  ;;  %v4281_v28 = vadd.f32 %v4193_v5, %v4089_v48  ;;  %v3909_v56 = vadd.f32 %v10515_v50, %v10514_v42 }
 0x4ff   : > { %4382 = vrot.lane.b32.xlu0 %v4296_v14, %s6852_s10  ;;  %4352 = vrot.lane.b32.xlu1 %v4281_v28, %s6852_s10  ;;  %v4101_v26 = vadd.f32 %v9031_v15, %v3909_v56  ;;  %v10518_v28 = vld [vmem:[#allocation13_spill] sm:$0xff] }
 0x500   : > { %v4227_v12 = vpop.permute.xlu0 %4226  ;;  %v4197_v55 = vpop.permute.xlu1 %4196 }
 0x501   : > { %v4298_v38 = vadd.f32 %v4227_v12, %v4106_v22  ;;  %v4283_v61 = vadd.f32 %v4197_v55, %v4091_v18  ;;  %v10519_v22 = vld [vmem:[#allocation10_spill] sm:$0xff] }
 0x502   : > { %v3913_v18 = vadd.f32 %v10519_v22, %v10518_v28 }
 0x503   : > { %4386 = vrot.lane.b32.xlu0 %v4298_v38, %s6852_s10  ;;  %4356 = vrot.lane.b32.xlu1 %v4283_v61, %s6852_s10  ;;  %v4107_v38 = vadd.f32 %v9046_v21, %v3915_v49  ;;  %v10522_v61 = vld [vmem:[#allocation38_spill] sm:$0xff] }
 0x504   : > { %v4231_v1 = vpop.permute.xlu0 %4230  ;;  %v4201_v24 = vpop.permute.xlu1 %4200  ;;  %v4105_v55 = vadd.f32 %v9041_v40, %v3913_v18  ;;  %v9158_v21 = vld [vmem:[#allocation2 + $0x1a1] sm:$0xff] }
 0x505   : > { %v4300_v41 = vadd.f32 %v4231_v1, %v4108_v9  ;;  %v4285_v54 = vadd.f32 %v4201_v24, %v4093_v59  ;;  %v10523_v9 = vld [vmem:[#allocation15_spill] sm:$0xff] }
 0x506   : > { %v3917_v59 = vadd.f32 %v10523_v9, %v10522_v61 }
 0x507   : > { %4390 = vrot.lane.b32.xlu0 %v4300_v41, %s6852_s10  ;;  %4360 = vrot.lane.b32.xlu1 %v4285_v54, %s6852_s10  ;;  %v4111_v41 = vadd.f32 %v9056_v43, %v3919_v57 }
 0x508   : > { %v4235_v58 = vpop.permute.xlu0 %4234  ;;  %v4205_v7 = vpop.permute.xlu1 %4204  ;;  %v4109_v24 = vadd.f32 %v9051_v2, %v3917_v59 }
 0x509   : > { %v4302_v13 = vadd.f32 %v4235_v58, %v4110_v37  ;;  %v4287_v10 = vadd.f32 %v4205_v7, %v4095_v11  ;;  %v10526_v37 = vld [vmem:[#allocation61_spill] sm:$0xff] }
 0x50a   : > { %v3921_v11 = vadd.f32 %v10526_v37, %v9158_v21 }
 0x50b   : > { %4394 = vrot.lane.b32.xlu0 %v4302_v13, %s6852_s10  ;;  %4364 = vrot.lane.b32.xlu1 %v4287_v10, %s6852_s10 }
 0x50c   : > { %v4239_v29 = vpop.permute.xlu0 %4238  ;;  %v4209_v35 = vpop.permute.xlu1 %4208  ;;  %v4113_v2 = vadd.f32 %v9062_v47, %v3921_v11 }
 0x50d   : > { %v4304_v31 = vadd.f32 %v4239_v29, %v4112_v17  ;;  %v4289_v32 = vadd.f32 %v4209_v35, %v4097_v53  ;;  %v10527_v53 = vld [vmem:[#allocation74_spill] sm:$0xff] }
 0x50f   : > { %4398 = vrot.lane.b32.xlu0 %v4304_v31, %s6852_s10  ;;  %4368 = vrot.lane.b32.xlu1 %v4289_v32, %s6852_s10 }
 0x510   : > { %v4213_v60 = vpop.permute.xlu1 %4212 }
 0x511   : > { %v4291_v48 = vadd.f32 %v4213_v60, %v4099_v19 }
 0x513   : > { %4372 = vrot.lane.b32.xlu1 %v4291_v48, %s6852_s10 }
 0x514   : > { %v4217_v5 = vpop.permute.xlu1 %4216 }
 0x515   : > { %v4293_v25 = vadd.f32 %v4217_v5, %v4101_v26 }
 0x517   : > { %4376 = vrot.lane.b32.xlu1 %v4293_v25, %s6852_s10 }
 0x518   : > { %v4221_v14 = vpop.permute.xlu1 %4220 }
 0x519   : > { %v4295_v12 = vadd.f32 %v4221_v14, %v4103_v46 }
 0x51b   : > { %4380 = vrot.lane.b32.xlu1 %v4295_v12, %s6852_s10 }
 0x51c   : > { %v4225_v15 = vpop.permute.xlu1 %4224 }
 0x51d   : > { %v4297_v62 = vadd.f32 %v4225_v15, %v4105_v55 }
 0x51f   : > { %4384 = vrot.lane.b32.xlu1 %v4297_v62, %s6852_s10 }
 0x520   : > { %v4229_v0 = vpop.permute.xlu1 %4228 }
 0x521   : > { %v4299_v1 = vadd.f32 %v4229_v0, %v4107_v38 }
 0x523   : > { %4388 = vrot.lane.b32.xlu1 %v4299_v1, %s6852_s10 }
 0x524   : > { %v4233_v40 = vpop.permute.xlu1 %4232 }
 0x525   : > { %v4301_v6 = vadd.f32 %v4233_v40, %v4109_v24 }
 0x527   : > { %4392 = vrot.lane.b32.xlu1 %v4301_v6, %s6852_s10 }
 0x528   : > { %v4237_v54 = vpop.permute.xlu1 %4236 }
 0x529   : > { %v4303_v58 = vadd.f32 %v4237_v54, %v4111_v41 }
 0x52b   : > { %4396 = vrot.lane.b32.xlu1 %v4303_v58, %s6852_s10 }
 0x52c   : > { %v4241_v7 = vpop.permute.xlu1 %4240 }
 0x52d   : > { %v4305_v36 = vadd.f32 %v4241_v7, %v4113_v2 }
 0x52f   : > { %4400 = vrot.lane.b32.xlu1 %v4305_v36, %s6852_s10 }
 0x545   : > { %v4339_v63 = vpop.permute.xlu0 %4338 }
 0x549   : > { %v4343_v27 = vpop.permute.xlu0 %4342 }
 0x54d   : > { %v4347_v43 = vpop.permute.xlu0 %4346 }
 0x54e   : > { %v4434_v39 = vcombine.low %v4339_v63, %v4347_v43  ;;  %v4435_v14 = vcombine.high %v4339_v63, %v4347_v43 }
 0x550   : > { %v4442_v47 = vrot.slane %v4434_v39, %v10527_v53  ;;  %v4449_v62 = vrot.slane %v4435_v14, %v10527_v53 }
 0x551   : > { %v4351_v44 = vpop.permute.xlu0 %4350 }
 0x552   : > { %v4450_v34 = vcombine.low %v4343_v27, %v4351_v44  ;;  %v4451_v48 = vcombine.high %v4343_v27, %v4351_v44 }
 0x554   : > { %v4458_v29 = vrot.slane %v4450_v34, %v10527_v53  ;;  %v4465_v55 = vrot.slane %v4451_v48, %v10527_v53 }
 0x555   : > { %v4355_v13 = vpop.permute.xlu0 %4354 }
 0x556   : > { %v4498_v51 = vcombine.low %v4442_v47, %v4458_v29  ;;  %v4499_v26 = vcombine.high %v4442_v47, %v4458_v29  ;;  %v4514_v61 = vcombine.low %v4449_v62, %v4465_v55  ;;  %v4515_v41 = vcombine.high %v4449_v62, %v4465_v55 }
 0x558   : > { %v9174_v23 = vrot.slane %v4498_v51, %v10528_v3  ;;  %v4513_v52 = vrot.slane %v4499_v26, %v10528_v3  ;;  %v4522_v40 = vrot.slane %v4514_v61, %v10528_v3  ;;  %v4529_v7 = vrot.slane %v4515_v41, %v10528_v3 }
 0x559   : > { %v4359_v10 = vpop.permute.xlu0 %4358 }
 0x55d   : > { %v4363_v17 = vpop.permute.xlu0 %4362 }
 0x55e   : > { %v4466_v35 = vcombine.low %v4355_v13, %v4363_v17  ;;  %v4467_v5 = vcombine.high %v4355_v13, %v4363_v17 }
 0x560   : > { %v4474_v31 = vrot.slane %v4466_v35, %v10527_v53  ;;  %v4481_v15 = vrot.slane %v4467_v5, %v10527_v53 }
 0x561   : > { %v4367_v16 = vpop.permute.xlu0 %4366 }
 0x562   : > { %v4482_v30 = vcombine.low %v4359_v10, %v4367_v16  ;;  %v4483_v42 = vcombine.high %v4359_v10, %v4367_v16 }
 0x564   : > { %v4490_v32 = vrot.slane %v4482_v30, %v10527_v53  ;;  %v4497_v28 = vrot.slane %v4483_v42, %v10527_v53 }
 0x565   : > { %v9169_v19 = vpop.permute.xlu0 %4370  ;;  %v9171_v60 = vpop.permute.xlu1 %4340 }
 0x566   : > { %v4530_v50 = vcombine.low %v4474_v31, %v4490_v32  ;;  %v4531_v56 = vcombine.high %v4474_v31, %v4490_v32  ;;  %v4546_v38 = vcombine.low %v4481_v15, %v4497_v28  ;;  %v4547_v57 = vcombine.high %v4481_v15, %v4497_v28 }
 0x568   : > { %v9177_v4 = vrot.slane %v4530_v50, %v10528_v3  ;;  %v4545_v18 = vrot.slane %v4531_v56, %v10528_v3  ;;  %v4554_v24 = vrot.slane %v4546_v38, %v10528_v3  ;;  %v4561_v58 = vrot.slane %v4547_v57, %v10528_v3 }
 0x569   : > { %v9179_v25 = vpop.permute.xlu0 %4374  ;;  %v9181_v46 = vpop.permute.xlu1 %4344 }
 0x56a   : > { %v4563_v22 = vcombine.high %v9174_v23, %v9177_v4  ;;  %v4562_v12 = vcombine.low %v9174_v23, %v9177_v4  ;;  %v4564_v0 = vcombine.low %v4513_v52, %v4545_v18  ;;  %v4565_v1 = vcombine.high %v4513_v52, %v4545_v18 }
 0x56b   : > { %v4566_v6 = vcombine.low %v4522_v40, %v4554_v24  ;;  %v4567_v11 = vcombine.high %v4522_v40, %v4554_v24  ;;  %v4568_v44 = vcombine.low %v4529_v7, %v4561_v58  ;;  %v4569_v51 = vcombine.high %v4529_v7, %v4561_v58 }
 0x56c   : > { %4980 = vrot.lane.b32.xlu0 %v4563_v22, %s6846_s4 }
 0x56d   : > { %v9193_v33 = vpop.permute.xlu0 %4378  ;;  %v9195_v49 = vpop.permute.xlu1 %4348 }
 0x56e   : > { %v4570_v43 = vcombine.low %v9169_v19, %v9193_v33  ;;  %v4706_v13 = vcombine.low %v9171_v60, %v9195_v49  ;;  %v4571_v24 = vcombine.high %v9169_v19, %v9193_v33 }
 0x570   : > { %4988 = vrot.lane.b32.xlu0 %v4564_v0, %s6847_s5  ;;  %v4578_v16 = vrot.slane %v4570_v43, %v10527_v53  ;;  %v4714_v31 = vrot.slane %v4706_v13, %v10527_v53  ;;  %v4585_v7 = vrot.slane %v4571_v24, %v10527_v53  ;;  %v4707_v43 = vcombine.high %v9171_v60, %v9195_v49 }
 0x571   : > { %v9199_v9 = vpop.permute.xlu0 %4382  ;;  %v9201_v59 = vpop.permute.xlu1 %4352 }
 0x572   : > { %v4586_v2 = vcombine.low %v9179_v25, %v9199_v9  ;;  %v4722_v36 = vcombine.low %v9181_v46, %v9201_v59  ;;  %v4587_v18 = vcombine.high %v9179_v25, %v9199_v9  ;;  %v4723_v19 = vcombine.high %v9181_v46, %v9201_v59 }
 0x573   : > { %v4721_v49 = vrot.slane %v4707_v43, %v10527_v53 }
 0x574   : > { %4996 = vrot.lane.b32.xlu0 %v4565_v1, %s6848_s6  ;;  %v4594_v10 = vrot.slane %v4586_v2, %v10527_v53  ;;  %v4730_v17 = vrot.slane %v4722_v36, %v10527_v53  ;;  %v4601_v41 = vrot.slane %v4587_v18, %v10527_v53 }
 0x575   : > { %v4387_v8 = vpop.permute.xlu0 %4386  ;;  %v9206_v45 = vpop.permute.xlu1 %4356 }
 0x576   : > { %v4634_v32 = vcombine.low %v4578_v16, %v4594_v10  ;;  %v4770_v48 = vcombine.low %v4714_v31, %v4730_v17  ;;  %v4635_v15 = vcombine.high %v4578_v16, %v4594_v10  ;;  %v4771_v33 = vcombine.high %v4714_v31, %v4730_v17 }
 0x578   : > { %5004 = vrot.lane.b32.xlu0 %v4566_v6, %s6850_s8  ;;  %v9242_v62 = vrot.slane %v4634_v32, %v10528_v3  ;;  %v4778_v61 = vrot.slane %v4770_v48, %v10528_v3 }
 0x579   : > { %v4391_v54 = vpop.permute.xlu0 %4390  ;;  %v9209_v37 = vpop.permute.xlu1 %4360 }
 0x57c   : > { %5012 = vrot.lane.b32.xlu0 %v4567_v11, %s6851_s9  ;;  %v4649_v11 = vrot.slane %v4635_v15, %v10528_v3 }
 0x57d   : > { %v4395_v63 = vpop.permute.xlu0 %4394  ;;  %v9218_v27 = vpop.permute.xlu1 %4364 }
 0x57e   : > { %v4602_v34 = vcombine.low %v4387_v8, %v4395_v63  ;;  %v4738_v39 = vcombine.low %v9206_v45, %v9218_v27  ;;  %v4603_v52 = vcombine.high %v4387_v8, %v4395_v63  ;;  %v4739_v58 = vcombine.high %v9206_v45, %v9218_v27 }
 0x57f   : > { %v4650_v45 = vcombine.low %v4585_v7, %v4601_v41  ;;  %v4737_v27 = vrot.slane %v4723_v19, %v10527_v53 }
 0x580   : > { %5020 = vrot.lane.b32.xlu0 %v4568_v44, %s6837_s24  ;;  %v4610_v42 = vrot.slane %v4602_v34, %v10527_v53  ;;  %v4746_v26 = vrot.slane %v4738_v39, %v10527_v53  ;;  %v4753_v13 = vrot.slane %v4739_v58, %v10527_v53  ;;  %v4785_v34 = vrot.slane %v4771_v33, %v10528_v3 }
 0x581   : > { %v4399_v29 = vpop.permute.xlu0 %4398  ;;  %v4369_v35 = vpop.permute.xlu1 %4368  ;;  %v4786_v16 = vcombine.low %v4721_v49, %v4737_v27 }
 0x582   : > { %v4618_v47 = vcombine.low %v4391_v54, %v4399_v29  ;;  %v4754_v30 = vcombine.low %v9209_v37, %v4369_v35  ;;  %v4619_v14 = vcombine.high %v4391_v54, %v4399_v29  ;;  %v4755_v8 = vcombine.high %v9209_v37, %v4369_v35 }
 0x583   : > { %v4617_v54 = vrot.slane %v4603_v52, %v10527_v53  ;;  %v4658_v35 = vrot.slane %v4650_v45, %v10528_v3 }
 0x584   : > { %v4626_v50 = vrot.slane %v4618_v47, %v10527_v53  ;;  %v4762_v56 = vrot.slane %v4754_v30, %v10527_v53  ;;  %5028 = vrot.lane.b32.xlu0 %v4569_v51, %s6853_s11  ;;  %v4633_v25 = vrot.slane %v4619_v14, %v10527_v53  ;;  %v4769_v46 = vrot.slane %v4755_v8, %v10527_v53 }
 0x585   : > { %v9237_v5 = vpop.permute.xlu1 %4372 }
 0x586   : > { %v4666_v28 = vcombine.low %v4610_v42, %v4626_v50  ;;  %v4667_v22 = vcombine.high %v4610_v42, %v4626_v50  ;;  %v4802_v55 = vcombine.low %v4746_v26, %v4762_v56  ;;  %v4803_v57 = vcombine.high %v4746_v26, %v4762_v56 }
 0x587   : > { %v4682_v36 = vcombine.low %v4617_v54, %v4633_v25  ;;  %v4818_v39 = vcombine.low %v4753_v13, %v4769_v46  ;;  %v4683_v30 = vcombine.high %v4617_v54, %v4633_v25  ;;  %v4651_v42 = vcombine.high %v4585_v7, %v4601_v41 }
 0x588   : > { %v9245_v38 = vrot.slane %v4666_v28, %v10528_v3  ;;  %v4810_v1 = vrot.slane %v4802_v55, %v10528_v3  ;;  %v4681_v40 = vrot.slane %v4667_v22, %v10528_v3  ;;  %v4817_v44 = vrot.slane %v4803_v57, %v10528_v3 }
 0x589   : > { %v9247_v0 = vpop.permute.xlu1 %4376  ;;  %v4690_v60 = vrot.slane %v4682_v36, %v10528_v3  ;;  %v4826_v32 = vrot.slane %v4818_v39, %v10528_v3  ;;  %v4794_v56 = vrot.slane %v4786_v16, %v10528_v3  ;;  %v4697_v26 = vrot.slane %v4683_v30, %v10528_v3 }
 0x58a   : > { %v4699_v9 = vcombine.high %v9242_v62, %v9245_v38  ;;  %v4834_v6 = vcombine.low %v4778_v61, %v4810_v1  ;;  %v4700_v63 = vcombine.low %v4649_v11, %v4681_v40  ;;  %v4835_v59 = vcombine.high %v4778_v61, %v4810_v1 }
 0x58b   : > { %v4701_v17 = vcombine.high %v4649_v11, %v4681_v40  ;;  %v4836_v29 = vcombine.low %v4785_v34, %v4817_v44  ;;  %v4702_v51 = vcombine.low %v4658_v35, %v4690_v60  ;;  %v4837_v31 = vcombine.high %v4785_v34, %v4817_v44 }
 0x58c   : > { %4982 = vrot.lane.b32.xlu1 %v4699_v9, %s6846_s4  ;;  %5036 = vrot.lane.b32.xlu0 %v4834_v6, %s6839_s26  ;;  %v4703_v48 = vcombine.high %v4658_v35, %v4690_v60  ;;  %v4819_v14 = vcombine.high %v4753_v13, %v4769_v46  ;;  %v4838_v28 = vcombine.low %v4794_v56, %v4826_v32  ;;  %v9315_v13 = vld [vmem:[#allocation2 + $0x31] sm:$0xff] }
 0x58d   : > { %v9267_v37 = vpop.permute.xlu1 %4380  ;;  %v4665_v18 = vrot.slane %v4651_v42, %v10528_v3  ;;  %v4787_v55 = vcombine.high %v4721_v49, %v4737_v27  ;;  %v4839_v1 = vcombine.high %v4794_v56, %v4826_v32 }
 0x58e   : > { %v4842_v52 = vcombine.low %v9237_v5, %v9267_v37  ;;  %v4833_v24 = vrot.slane %v4819_v14, %v10528_v3  ;;  %v4843_v34 = vcombine.high %v9237_v5, %v9267_v37 }
 0x58f   : > { %v4704_v61 = vcombine.low %v4665_v18, %v4697_v26  ;;  %v4801_v8 = vrot.slane %v4787_v55, %v10528_v3  ;;  %v4705_v41 = vcombine.high %v4665_v18, %v4697_v26  ;;  %v9357_v55 = vld [vmem:[#allocation2 + $0xc1] sm:$0xff] }
 0x590   : > { %4990 = vrot.lane.b32.xlu1 %v4700_v63, %s6847_s5  ;;  %5044 = vrot.lane.b32.xlu0 %v4835_v59, %s6844_s29  ;;  %v4850_v57 = vrot.slane %v4842_v52, %v10527_v53  ;;  %v4857_v5 = vrot.slane %v4843_v34, %v10527_v53  ;;  %v9362_v52 = vld [vmem:[#allocation2 + $0xd9] sm:$0xff]  ;;  %v9444_v34 = vld [vmem:[#allocation2 + $0x4a] sm:$0xff] }
 0x591   : > { %v9280_v10 = vpop.permute.xlu1 %4384  ;;  %v4840_v54 = vcombine.low %v4801_v8, %v4833_v24  ;;  %v4841_v7 = vcombine.high %v4801_v8, %v4833_v24  ;;  %v9375_v24 = vld [vmem:[#allocation2 + $0x51] sm:$0xff]  ;;  %v9391_v8 = vld [vmem:[#allocation2 + $0x81] sm:$0xff]  ;;  %10529 = vst [vmem:[#allocation47_spill] sm:$0xff] %v9444_v34 }
 0x592   : > { %v4858_v22 = vcombine.low %v9247_v0, %v9280_v10  ;;  %v4859_v44 = vcombine.high %v9247_v0, %v9280_v10  ;;  %v9326_v10 = vld [vmem:[#allocation2 + $0x49] sm:$0xff] }
 0x594   : > { %4998 = vrot.lane.b32.xlu1 %v4701_v17, %s6848_s6  ;;  %5052 = vrot.lane.b32.xlu0 %v4836_v29, %s6845_s30  ;;  %v4866_v25 = vrot.slane %v4858_v22, %v10527_v53  ;;  %v4873_v39 = vrot.slane %v4859_v44, %v10527_v53 }
 0x595   : > { %v4389_v47 = vpop.permute.xlu1 %4388 }
 0x596   : > { %v4906_v11 = vcombine.low %v4850_v57, %v4866_v25  ;;  %v4907_v45 = vcombine.high %v4850_v57, %v4866_v25  ;;  %v4922_v16 = vcombine.low %v4857_v5, %v4873_v39  ;;  %v4923_v56 = vcombine.high %v4857_v5, %v4873_v39  ;;  %v9377_v25 = vld [vmem:[#allocation2 + $0x109] sm:$0xff]  ;;  %v9393_v57 = vld [vmem:[#allocation2 + $0x139] sm:$0xff] }
 0x598   : > { %5006 = vrot.lane.b32.xlu1 %v4702_v51, %s6850_s8  ;;  %5060 = vrot.lane.b32.xlu0 %v4837_v31, %s6840_s27  ;;  %v4914_v36 = vrot.slane %v4906_v11, %v10528_v3  ;;  %v4921_v29 = vrot.slane %v4907_v45, %v10528_v3  ;;  %v9339_v31 = vld [vmem:[#allocation2 + $0x79] sm:$0xff]  ;;  %v4930_v32 = vrot.slane %v4922_v16, %v10528_v3  ;;  %v9407_v11 = vld [vmem:[#allocation2 + $0xb1] sm:$0xff] }
 0x599   : > { %v4393_v50 = vpop.permute.xlu1 %4392  ;;  %v4937_v22 = vrot.slane %v4923_v56, %v10528_v3  ;;  %v9434_v45 = vld [vmem:[#allocation2 + $0x111] sm:$0xff] }
 0x59a   : > { %v9470_v16 = vld [vmem:[#allocation2 + $0x92] sm:$0xff] }
 0x59c   : > { %5014 = vrot.lane.b32.xlu1 %v4703_v48, %s6851_s9  ;;  %5068 = vrot.lane.b32.xlu0 %v4838_v28, %s6843_s28  ;;  %v9345_v48 = vld [vmem:[#allocation2 + $0x91] sm:$0xff]  ;;  %v9351_v28 = vld [vmem:[#allocation2 + $0xa9] sm:$0xff] }
 0x59d   : > { %v4397_v15 = vpop.permute.xlu1 %4396 }
 0x59e   : > { %v4874_v9 = vcombine.low %v4389_v47, %v4397_v15  ;;  %v4875_v27 = vcombine.high %v4389_v47, %v4397_v15  ;;  %v9333_v47 = vld [vmem:[#allocation2 + $0x61] sm:$0xff] }
 0x5a0   : > { %5022 = vrot.lane.b32.xlu1 %v4704_v61, %s6837_s24  ;;  %5076 = vrot.lane.b32.xlu0 %v4839_v1, %s6849_s7  ;;  %v4882_v19 = vrot.slane %v4874_v9, %v10527_v53  ;;  %v4889_v0 = vrot.slane %v4875_v27, %v10527_v53  ;;  %v9367_v61 = vld [vmem:[#allocation2 + $0x39] sm:$0xff]  ;;  %v9369_v1 = vld [vmem:[#allocation2 + $0xf1] sm:$0xff]  ;;  %v9383_v9 = vld [vmem:[#allocation2 + $0x69] sm:$0xff] }
 0x5a1   : > { %v4401_v40 = vpop.permute.xlu1 %4400  ;;  %v9436_v27 = vld [vmem:[#allocation2 + $0x32] sm:$0xff] }
 0x5a2   : > { %v4890_v6 = vcombine.low %v4393_v50, %v4401_v40  ;;  %v4891_v43 = vcombine.high %v4393_v50, %v4401_v40  ;;  %v9385_v40 = vld [vmem:[#allocation2 + $0x121] sm:$0xff] }
 0x5a4   : > { %v4898_v33 = vrot.slane %v4890_v6, %v10527_v53  ;;  %5030 = vrot.lane.b32.xlu1 %v4705_v41, %s6853_s11  ;;  %5084 = vrot.lane.b32.xlu0 %v4840_v54, %s6838_s25  ;;  %v4905_v17 = vrot.slane %v4891_v43, %v10527_v53  ;;  %v9399_v6 = vld [vmem:[#allocation2 + $0x99] sm:$0xff]  ;;  %v9401_v41 = vld [vmem:[#allocation2 + $0x151] sm:$0xff] }
 0x5a6   : > { %v4938_v58 = vcombine.low %v4882_v19, %v4898_v33  ;;  %v4939_v46 = vcombine.high %v4882_v19, %v4898_v33  ;;  %v4954_v37 = vcombine.low %v4889_v0, %v4905_v17  ;;  %v4955_v42 = vcombine.high %v4889_v0, %v4905_v17  ;;  %v9409_v19 = vld [vmem:[#allocation2 + $0x169] sm:$0xff]  ;;  %v9458_v0 = vld [vmem:[#allocation2 + $0x159] sm:$0xff] }
 0x5a8   : > { %v4946_v63 = vrot.slane %v4938_v58, %v10528_v3  ;;  %5092 = vrot.lane.b32.xlu0 %v4841_v7, %s6852_s10  ;;  %v4953_v49 = vrot.slane %v4939_v46, %v10528_v3  ;;  %v4962_v51 = vrot.slane %v4954_v37, %v10528_v3  ;;  %v4969_v14 = vrot.slane %v4955_v42, %v10528_v3  ;;  %v9415_v58 = vld [vmem:[#allocation2 + $0xc9] sm:$0xff]  ;;  %v9417_v7 = vld [vmem:[#allocation2 + $0x181] sm:$0xff]  ;;  %v9429_v46 = vld [vmem:[#allocation2 + $0xf9] sm:$0xff] }
 0x5a9   : > { %v9480_v42 = vld [vmem:[#allocation2 + $0xaa] sm:$0xff] }
 0x5aa   : > { %v4970_v59 = vcombine.low %v4914_v36, %v4946_v63  ;;  %v4971_v60 = vcombine.high %v4914_v36, %v4946_v63  ;;  %v4972_v35 = vcombine.low %v4921_v29, %v4953_v49  ;;  %v4973_v30 = vcombine.high %v4921_v29, %v4953_v49  ;;  %v9423_v63 = vld [vmem:[#allocation2 + $0xe1] sm:$0xff]  ;;  %10531 = vst [vmem:[#allocation16_spill] sm:$0xff] %v9480_v42 }
 0x5ab   : > { %v4974_v50 = vcombine.low %v4930_v32, %v4962_v51  ;;  %v4975_v26 = vcombine.high %v4930_v32, %v4962_v51  ;;  %v4976_v18 = vcombine.low %v4937_v22, %v4969_v14  ;;  %v4977_v15 = vcombine.high %v4937_v22, %v4969_v14  ;;  %v9452_v49 = vld [vmem:[#allocation2 + $0x62] sm:$0xff]  ;;  %v9460_v29 = vld [vmem:[#allocation2 + $0x7a] sm:$0xff] }
 0x5ac   : > { %5038 = vrot.lane.b32.xlu1 %v4970_v59, %s6839_s26  ;;  %5228 = vrot.lane.b32.xlu0 %v9315_v13, %s6838_s25  ;;  %v5356_v59 = vld [vmem:[#allocation2 + $0x1a] sm:$0xff]  ;;  %10530 = vst [vmem:[#allocation18_spill] sm:$0xff] %v9460_v29  ;;  %v9478_v32 = vld [vmem:[#allocation2 + $0x189] sm:$0xff] }
 0x5b0   : > { %5046 = vrot.lane.b32.xlu1 %v4971_v60, %s6844_s29  ;;  %5232 = vrot.lane.b32.xlu0 %v9326_v10, %s6838_s25  ;;  %v9450_v60 = vld [vmem:[#allocation2 + $0x141] sm:$0xff] }
 0x5b4   : > { %5054 = vrot.lane.b32.xlu1 %v4972_v35, %s6845_s30  ;;  %5236 = vrot.lane.b32.xlu0 %v9333_v47, %s6838_s25  ;;  %v9468_v35 = vld [vmem:[#allocation2 + $0x171] sm:$0xff] }
 0x5b8   : > { %5062 = vrot.lane.b32.xlu1 %v4973_v30, %s6840_s27  ;;  %5240 = vrot.lane.b32.xlu0 %v9339_v31, %s6838_s25 }
 0x5bc   : > { %5070 = vrot.lane.b32.xlu1 %v4974_v50, %s6843_s28  ;;  %5244 = vrot.lane.b32.xlu0 %v9345_v48, %s6838_s25 }
 0x5c0   : > { %5078 = vrot.lane.b32.xlu1 %v4975_v26, %s6849_s7  ;;  %5248 = vrot.lane.b32.xlu0 %v9351_v28, %s6838_s25  ;;  %v9488_v26 = vld [vmem:[#allocation2 + $0xc2] sm:$0xff] }
 0x5c4   : > { %5086 = vrot.lane.b32.xlu1 %v4976_v18, %s6838_s25  ;;  %5252 = vrot.lane.b32.xlu0 %v9357_v55, %s6838_s25  ;;  %v5357_v18 = vld [vmem:[#allocation2 + $0x22] sm:$0xff] }
 0x5c8   : > { %5094 = vrot.lane.b32.xlu1 %v4977_v15, %s6852_s10  ;;  %5256 = vrot.lane.b32.xlu0 %v9362_v52, %s6838_s25  ;;  %v9496_v15 = vld [vmem:[#allocation2 + $0xda] sm:$0xff] }
 0x5c9   : > { %10532 = vst [vmem:[#allocation31_spill] sm:$0xff] %v9496_v15 }
 0x5cc   : > { %5230 = vrot.lane.b32.xlu1 %v9367_v61, %s6838_s25  ;;  %5260 = vrot.lane.b32.xlu0 %v9369_v1, %s6838_s25 }
 0x5d0   : > { %5234 = vrot.lane.b32.xlu1 %v9375_v24, %s6838_s25  ;;  %5264 = vrot.lane.b32.xlu0 %v9377_v25, %s6838_s25 }
 0x5d4   : > { %5238 = vrot.lane.b32.xlu1 %v9383_v9, %s6838_s25  ;;  %5268 = vrot.lane.b32.xlu0 %v9385_v40, %s6838_s25 }
 0x5d8   : > { %5242 = vrot.lane.b32.xlu1 %v9391_v8, %s6838_s25  ;;  %5272 = vrot.lane.b32.xlu0 %v9393_v57, %s6838_s25 }
 0x5dc   : > { %5246 = vrot.lane.b32.xlu1 %v9399_v6, %s6838_s25  ;;  %5276 = vrot.lane.b32.xlu0 %v9401_v41, %s6838_s25 }
 0x5de   : > { %v4981_v54 = vpop.permute.xlu0 %4980 }
 0x5e0   : > { %5250 = vrot.lane.b32.xlu1 %v9407_v11, %s6838_s25  ;;  %5280 = vrot.lane.b32.xlu0 %v9409_v19, %s6838_s25 }
 0x5e2   : > { %v4989_v33 = vpop.permute.xlu0 %4988 }
 0x5e4   : > { %5254 = vrot.lane.b32.xlu1 %v9415_v58, %s6838_s25  ;;  %5284 = vrot.lane.b32.xlu0 %v9417_v7, %s6838_s25 }
 0x5e6   : > { %v4997_v36 = vpop.permute.xlu0 %4996 }
 0x5e8   : > { %5258 = vrot.lane.b32.xlu1 %v9423_v63, %s6838_s25  ;;  %5288 = vrot.lane.b32.xlu0 %v9119_v20, %s6838_s25  ;;  %v9442_v20 = vld [vmem:[#allocation2 + $0x129] sm:$0xff] }
 0x5ea   : > { %v5005_v43 = vpop.permute.xlu0 %5004 }
 0x5ec   : > { %5262 = vrot.lane.b32.xlu1 %v9429_v46, %s6838_s25  ;;  %5420 = vrot.lane.b32.xlu0 %v5356_v59, %s6839_s26  ;;  %v5098_v59 = vsel %vm2209_vm1, %v4562_v12, %v4981_v54  ;;  %v9520_v54 = vld [vmem:[#allocation2 + $0x52] sm:$0xff] }
 0x5ed   : > { %v5100_v2 = vsel %vm255_vm0, %v5098_v59, %v4989_v33  ;;  %v9532_v59 = vld [vmem:[#allocation2 + $0x6a] sm:$0xff] }
 0x5ee   : > { %v5013_v44 = vpop.permute.xlu0 %5012  ;;  %v5102_v53 = vsel %vm2214_vm2, %v5100_v2, %v4997_v36  ;;  %v9523_v36 = vld [vmem:[#allocation2 + $0x10a] sm:$0xff] }
 0x5ef   : > { %10534 = vst [vmem:[#allocation37_spill] sm:$0xff] %v9523_v36 }
 0x5f0   : > { %5266 = vrot.lane.b32.xlu1 %v9434_v45, %s6838_s25  ;;  %5424 = vrot.lane.b32.xlu0 %v9436_v27, %s6839_s26 }
 0x5f2   : > { %v5021_v17 = vpop.permute.xlu0 %5020 }
 0x5f4   : > { %5270 = vrot.lane.b32.xlu1 %v9442_v20, %s6838_s25  ;;  %5428 = vrot.lane.b32.xlu0 %v9444_v34, %s6839_s26 }
 0x5f6   : > { %v5029_v39 = vpop.permute.xlu0 %5028 }
 0x5f8   : > { %5274 = vrot.lane.b32.xlu1 %v9450_v60, %s6838_s25  ;;  %5432 = vrot.lane.b32.xlu0 %v9452_v49, %s6839_s26 }
 0x5fc   : > { %5278 = vrot.lane.b32.xlu1 %v9458_v0, %s6838_s25  ;;  %5436 = vrot.lane.b32.xlu0 %v9460_v29, %s6839_s26  ;;  %v9511_v29 = vld [vmem:[#allocation2 + $0xf2] sm:$0xff] }
 0x5fd   : > { %10533 = vst [vmem:[#allocation14_spill] sm:$0xff] %v9511_v29 }
 0x5fe   : > { %v9466_v5 = vpop.permute.xlu1 %4982  ;;  %v5037_v37 = vpop.permute.xlu0 %5036 }
 0x600   : > { %5282 = vrot.lane.b32.xlu1 %v9468_v35, %s6838_s25  ;;  %5440 = vrot.lane.b32.xlu0 %v9470_v16, %s6839_s26 }
 0x602   : > { %v9476_v30 = vpop.permute.xlu1 %4990  ;;  %v5045_v51 = vpop.permute.xlu0 %5044 }
 0x604   : > { %5286 = vrot.lane.b32.xlu1 %v9478_v32, %s6838_s25  ;;  %5444 = vrot.lane.b32.xlu0 %v9480_v42, %s6839_s26  ;;  %v9508_v42 = vld [vmem:[#allocation2 + $0x3a] sm:$0xff] }
 0x606   : > { %v9486_v50 = vpop.permute.xlu1 %4998  ;;  %v5053_v56 = vpop.permute.xlu0 %5052 }
 0x608   : > { %5290 = vrot.lane.b32.xlu1 %v9158_v21, %s6838_s25  ;;  %5448 = vrot.lane.b32.xlu0 %v9488_v26, %s6839_s26 }
 0x60a   : > { %v9494_v14 = vpop.permute.xlu1 %5006  ;;  %v5061_v22 = vpop.permute.xlu0 %5060 }
 0x60c   : > { %5422 = vrot.lane.b32.xlu1 %v5357_v18, %s6839_s26  ;;  %5452 = vrot.lane.b32.xlu0 %v9496_v15, %s6839_s26  ;;  %v5104_v18 = vsel %vm2217_vm3, %v5102_v53, %v5005_v43 }
 0x60d   : > { %v5106_v23 = vsel %vm2220_vm4, %v5104_v18, %v5013_v44  ;;  %v9535_v18 = vld [vmem:[#allocation2 + $0x13a] sm:$0xff] }
 0x60e   : > { %v9505_v21 = vpop.permute.xlu1 %5014  ;;  %v5069_v3 = vpop.permute.xlu0 %5068  ;;  %v5108_v4 = vsel %vm2223_vm5, %v5106_v23, %v5021_v17  ;;  %10535 = vst [vmem:[#allocation54_spill] sm:$0xff] %v9535_v18 }
 0x60f   : > { %v5110_v33 = vsel %vm2226_vm6, %v5108_v4, %v5029_v39 }
 0x610   : > { %5426 = vrot.lane.b32.xlu1 %v9508_v42, %s6839_s26  ;;  %5456 = vrot.lane.b32.xlu0 %v9511_v29, %s6839_s26  ;;  %v5112_v53 = vsel %vm2229_vm7, %v5110_v33, %v5037_v37  ;;  %v9544_v33 = vld [vmem:[#allocation2 + $0x82] sm:$0xff] }
 0x611   : > { %v5114_v43 = vsel %vm2232_vm8, %v5112_v53, %v5045_v51  ;;  %v9547_v53 = vld [vmem:[#allocation2 + $0x16a] sm:$0xff] }
 0x612   : > { %v5077_v12 = vpop.permute.xlu0 %5076  ;;  %v5023_v2 = vpop.permute.xlu1 %5022  ;;  %v5116_v44 = vsel %vm2235_vm9, %v5114_v43, %v5053_v56  ;;  %10536 = vst [vmem:[#allocation28_spill] sm:$0xff] %v9547_v53 }
 0x613   : > { %v5118_v39 = vsel %vm2238_vm10, %v5116_v44, %v5061_v22 }
 0x614   : > { %5430 = vrot.lane.b32.xlu1 %v9520_v54, %s6839_s26  ;;  %5460 = vrot.lane.b32.xlu0 %v9523_v36, %s6839_s26  ;;  %v5120_v37 = vsel %vm2241_vm11, %v5118_v39, %v5069_v3  ;;  %v6811_v3 = vld [vmem:[%s10182_s2] ss:$0 sm:$0xff] }
 0x615   : > { %v5122_v51 = vsel %vm2244_vm12, %v5120_v37, %v5077_v12  ;;  %v5548_v39 = vld [vmem:[#allocation2 + $0x19] sm:$0xff] }
 0x616   : > { %v5085_v17 = vpop.permute.xlu0 %5084  ;;  %v5031_v23 = vpop.permute.xlu1 %5030 }
 0x617   : > { %v5124_v56 = vsel %vm2247_vm13, %v5122_v51, %v5085_v17  ;;  %v9559_v17 = vld [vmem:[#allocation2 + $0x9a] sm:$0xff] }
 0x618   : > { %5434 = vrot.lane.b32.xlu1 %v9532_v59, %s6839_s26  ;;  %5468 = vrot.lane.b32.xlu0 %v9535_v18, %s6839_s26  ;;  %v9582_v18 = vld [vmem:[#allocation2 + $0xe2] sm:$0xff] }
 0x61a   : > { %v5093_v4 = vpop.permute.xlu0 %5092 }
 0x61b   : > { %v5126_v22 = vsel %vm2250_vm14, %v5124_v56, %v5093_v4  ;;  %v9566_v56 = vld [vmem:[#allocation2 + $0xb2] sm:$0xff] }
 0x61c   : > { %5438 = vrot.lane.b32.xlu1 %v9544_v33, %s6839_s26  ;;  %v5128_v43 = vadd.f32 %v6811_v3, %v5126_v22  ;;  %5476 = vrot.lane.b32.xlu0 %v9547_v53, %s6839_s26 }
 0x61e   : > { %v5039_v12 = vpop.permute.xlu1 %5038  ;;  %5130 = vst [vmem:[%s8369_s20 + $0x10] sm:$0xff] %v5128_v43  ;;  %v9557_v44 = vpop.permute.xlu0 %5228  ;;  %v9574_v43 = vld [vmem:[#allocation2 + $0xca] sm:$0xff] }
 0x620   : > { %5442 = vrot.lane.b32.xlu1 %v9559_v17, %s6839_s26  ;;  %5612 = vrot.lane.b32.xlu0 %v5548_v39, %s6837_s24 }
 0x622   : > { %v5047_v37 = vpop.permute.xlu1 %5046  ;;  %v9564_v51 = vpop.permute.xlu0 %5232 }
 0x623   : > { %10537 = vst [vmem:[#allocation58_spill] sm:$0xff] %v9564_v51  ;;  %v9599_v51 = vld [vmem:[#allocation2 + $0xfa] sm:$0xff] }
 0x624   : > { %5446 = vrot.lane.b32.xlu1 %v9566_v56, %s6839_s26  ;;  %5620 = vrot.lane.b32.xlu0 %v9326_v10, %s6837_s24  ;;  %v10539_v10 = vcombine.low %v9242_v62, %v9245_v38 }
 0x626   : > { %v5055_v4 = vpop.permute.xlu1 %5054  ;;  %v9572_v22 = vpop.permute.xlu0 %5236  ;;  %v5099_v36 = vsel %vm2209_vm1, %v10539_v10, %v9466_v5  ;;  %v5386_v10 = vld [vmem:[#allocation2 + $0x182] sm:$0xff] }
 0x628   : > { %5450 = vrot.lane.b32.xlu1 %v9574_v43, %s6839_s26  ;;  %5628 = vrot.lane.b32.xlu0 %v9339_v31, %s6837_s24  ;;  %v5101_v31 = vsel %vm255_vm0, %v5099_v36, %v9476_v30 }
 0x62a   : > { %v5063_v39 = vpop.permute.xlu1 %5062  ;;  %v9580_v53 = vpop.permute.xlu0 %5240 }
 0x62b   : > { %10538 = vst [vmem:[#allocation26_spill] sm:$0xff] %v9580_v53  ;;  %v5103_v53 = vsel %vm2214_vm2, %v5101_v31, %v9486_v50  ;;  %v9613_v50 = vld [vmem:[#allocation2 + $0x122] sm:$0xff] }
 0x62c   : > { %5454 = vrot.lane.b32.xlu1 %v9582_v18, %s6839_s26  ;;  %5636 = vrot.lane.b32.xlu0 %v9351_v28, %s6837_s24  ;;  %v5105_v29 = vsel %vm2217_vm3, %v5103_v53, %v9494_v14 }
 0x62d   : > { %v5107_v62 = vsel %vm2220_vm4, %v5105_v29, %v9505_v21 }
 0x62e   : > { %v5071_v15 = vpop.permute.xlu1 %5070  ;;  %v9597_v34 = vpop.permute.xlu0 %5244  ;;  %v5109_v38 = vsel %vm2223_vm5, %v5107_v62, %v5023_v2 }
 0x62f   : > { %v5111_v5 = vsel %vm2226_vm6, %v5109_v38, %v5031_v23  ;;  %v9625_v23 = vld [vmem:[#allocation2 + $0x152] sm:$0xff] }
 0x630   : > { %5458 = vrot.lane.b32.xlu1 %v9599_v51, %s6839_s26  ;;  %5644 = vrot.lane.b32.xlu0 %v9362_v52, %s6837_s24  ;;  %v5113_v14 = vsel %vm2229_vm7, %v5111_v5, %v5039_v12 }
 0x631   : > { %v5115_v36 = vsel %vm2232_vm8, %v5113_v14, %v5047_v37 }
 0x632   : > { %v5079_v28 = vpop.permute.xlu1 %5078  ;;  %v9611_v30 = vpop.permute.xlu0 %5248  ;;  %v5117_v52 = vsel %vm2235_vm9, %v5115_v36, %v5055_v4 }
 0x633   : > { %v5119_v21 = vsel %vm2238_vm10, %v5117_v52, %v5063_v39 }
 0x634   : > { %5464 = vrot.lane.b32.xlu1 %v9613_v50, %s6839_s26  ;;  %5652 = vrot.lane.b32.xlu0 %v9377_v25, %s6837_s24  ;;  %v5121_v53 = vsel %vm2241_vm11, %v5119_v21, %v5071_v15 }
 0x635   : > { %v5123_v12 = vsel %vm2244_vm12, %v5121_v53, %v5079_v28  ;;  %v9655_v28 = vld [vmem:[#allocation2 + $0x142] sm:$0xff] }
 0x636   : > { %v5087_v29 = vpop.permute.xlu1 %5086  ;;  %v9623_v2 = vpop.permute.xlu0 %5252  ;;  %10540 = vst [vmem:[#allocation9_spill] sm:$0xff] %v9655_v28 }
 0x637   : > { %v5125_v25 = vsel %vm2247_vm13, %v5123_v12, %v5087_v29 }
 0x638   : > { %5472 = vrot.lane.b32.xlu1 %v9625_v23, %s6839_s26  ;;  %5660 = vrot.lane.b32.xlu0 %v9393_v57, %s6837_s24  ;;  %v9645_v57 = vld [vmem:[#allocation2 + $0x112] sm:$0xff] }
 0x63a   : > { %v5095_v37 = vpop.permute.xlu1 %5094  ;;  %v9634_v4 = vpop.permute.xlu0 %5256 }
 0x63b   : > { %v5127_v39 = vsel %vm2250_vm14, %v5125_v25, %v5095_v37  ;;  %v9712_v25 = vld [vmem:[#allocation2 + $0x12a] sm:$0xff]  ;;  %v9722_v37 = vld [vmem:[#allocation2 + $0x15a] sm:$0xff] }
 0x63c   : > { %v5129_v31 = vadd.f32 %v6811_v3, %v5127_v39  ;;  %5480 = vrot.lane.b32.xlu1 %v5386_v10, %s6839_s26  ;;  %5668 = vrot.lane.b32.xlu0 %v9409_v19, %s6837_s24  ;;  %10542 = vst [vmem:[#allocation25_spill] sm:$0xff] %v9722_v37  ;;  %v5387_v39 = vld [vmem:[#allocation2 + $0x18a] sm:$0xff] }
 0x63e   : > { %5131 = vst [vmem:[%s8369_s20 + $0x30] sm:$0xff] %v5129_v31  ;;  %v9641_v15 = vpop.permute.xlu1 %5230  ;;  %v9643_v62 = vpop.permute.xlu0 %5260 }
 0x640   : > { %5616 = vrot.lane.b32.xlu1 %v9315_v13, %s6837_s24  ;;  %5462 = vrot.lane.b32.xlu0 %v9645_v57, %s6839_s26  ;;  %v9665_v13 = vld [vmem:[#allocation2 + $0x172] sm:$0xff] }
 0x641   : > { %10541 = vst [vmem:[#allocation6_spill] sm:$0xff] %v9665_v13 }
 0x642   : > { %v9651_v38 = vpop.permute.xlu1 %5234  ;;  %v9653_v3 = vpop.permute.xlu0 %5264 }
 0x644   : > { %5624 = vrot.lane.b32.xlu1 %v9333_v47, %s6837_s24  ;;  %5470 = vrot.lane.b32.xlu0 %v9655_v28, %s6839_s26  ;;  %v5549_v47 = vld [vmem:[#allocation2 + $0x21] sm:$0xff] }
 0x646   : > { %v9661_v19 = vpop.permute.xlu1 %5238  ;;  %v9663_v5 = vpop.permute.xlu0 %5268 }
 0x648   : > { %5632 = vrot.lane.b32.xlu1 %v9345_v48, %s6837_s24  ;;  %5478 = vrot.lane.b32.xlu0 %v9665_v13, %s6839_s26 }
 0x64a   : > { %v9671_v14 = vpop.permute.xlu1 %5242  ;;  %v9673_v36 = vpop.permute.xlu0 %5272 }
 0x64c   : > { %5640 = vrot.lane.b32.xlu1 %v9357_v55, %s6837_s24  ;;  %5614 = vrot.lane.b32.xlu0 %v5549_v47, %s6837_s24 }
 0x64e   : > { %v9678_v52 = vpop.permute.xlu1 %5246  ;;  %v9680_v29 = vpop.permute.xlu0 %5276 }
 0x650   : > { %5648 = vrot.lane.b32.xlu1 %v9369_v1, %s6837_s24  ;;  %5622 = vrot.lane.b32.xlu0 %v9375_v24, %s6837_s24 }
 0x652   : > { %v9686_v48 = vpop.permute.xlu1 %5250  ;;  %v9688_v21 = vpop.permute.xlu0 %5280 }
 0x654   : > { %5656 = vrot.lane.b32.xlu1 %v9385_v40, %s6837_s24  ;;  %5630 = vrot.lane.b32.xlu0 %v9391_v8, %s6837_s24 }
 0x656   : > { %v9694_v55 = vpop.permute.xlu1 %5254  ;;  %v5285_v53 = vpop.permute.xlu0 %5284 }
 0x657   : > { %v9696_v12 = vadd.f32 %v5386_v10, %v5285_v53 }
 0x658   : > { %5664 = vrot.lane.b32.xlu1 %v9401_v41, %s6837_s24  ;;  %5638 = vrot.lane.b32.xlu0 %v9407_v11, %s6837_s24 }
 0x65a   : > { %v9702_v1 = vpop.permute.xlu1 %5258  ;;  %v9704_v24 = vpop.permute.xlu0 %5288 }
 0x65c   : > { %5672 = vrot.lane.b32.xlu1 %v9417_v7, %s6837_s24  ;;  %5646 = vrot.lane.b32.xlu0 %v9423_v63, %s6837_s24 }
 0x65e   : > { %v9710_v40 = vpop.permute.xlu1 %5262  ;;  %v5421_v8 = vpop.permute.xlu0 %5420 }
 0x660   : > { %5466 = vrot.lane.b32.xlu1 %v9712_v25, %s6839_s26  ;;  %5654 = vrot.lane.b32.xlu0 %v9434_v45, %s6837_s24 }
 0x662   : > { %v9718_v41 = vpop.permute.xlu1 %5266  ;;  %v9720_v11 = vpop.permute.xlu0 %5424 }
 0x664   : > { %5474 = vrot.lane.b32.xlu1 %v9722_v37, %s6839_s26  ;;  %5662 = vrot.lane.b32.xlu0 %v9450_v60, %s6837_s24 }
 0x666   : > { %v9728_v7 = vpop.permute.xlu1 %5270  ;;  %v5429_v63 = vpop.permute.xlu0 %5428 }
 0x668   : > { %5482 = vrot.lane.b32.xlu1 %v5387_v39, %s6839_s26  ;;  %5670 = vrot.lane.b32.xlu0 %v9468_v35, %s6837_s24 }
 0x66a   : > { %v9733_v45 = vpop.permute.xlu1 %5274  ;;  %v9735_v10 = vpop.permute.xlu0 %5432 }
 0x66b   : > { %10543 = vst [vmem:[#allocation63_spill] sm:$0xff] %v9733_v45 }
 0x66c   : > { %5618 = vrot.lane.b32.xlu1 %v9367_v61, %s6837_s24 }
 0x66e   : > { %v9739_v31 = vpop.permute.xlu1 %5278  ;;  %v5437_v47 = vpop.permute.xlu0 %5436 }
 0x670   : > { %5626 = vrot.lane.b32.xlu1 %v9383_v9, %s6837_s24  ;;  %v5325_v9 = vadd.f32 %v9508_v42, %v9641_v15 }
 0x672   : > { %v9743_v60 = vpop.permute.xlu1 %5282  ;;  %v9745_v53 = vpop.permute.xlu0 %5440 }
 0x673   : > { %10544 = vst [vmem:[#allocation21_spill] sm:$0xff] %v9743_v60 }
 0x674   : > { %5634 = vrot.lane.b32.xlu1 %v9399_v6, %s6837_s24 }
 0x676   : > { %v5287_v35 = vpop.permute.xlu1 %5286  ;;  %v5445_v13 = vpop.permute.xlu0 %5444 }
 0x677   : > { %v9749_v28 = vadd.f32 %v5387_v39, %v5287_v35 }
 0x678   : > { %5642 = vrot.lane.b32.xlu1 %v9415_v58, %s6837_s24  ;;  %v5327_v58 = vadd.f32 %v9520_v54, %v9651_v38 }
 0x67a   : > { %v9753_v61 = vpop.permute.xlu1 %5290  ;;  %v9755_v45 = vpop.permute.xlu0 %5448 }
 0x67b   : > { %10545 = vst [vmem:[#allocation12_spill] sm:$0xff] %v9753_v61 }
 0x67c   : > { %5650 = vrot.lane.b32.xlu1 %v9429_v46, %s6837_s24  ;;  %v5329_v46 = vadd.f32 %v9532_v59, %v9661_v19  ;;  %v5335_v19 = vadd.f32 %v9566_v56, %v9686_v48 }
 0x67e   : > { %v5423_v60 = vpop.permute.xlu1 %5422  ;;  %v5453_v37 = vpop.permute.xlu0 %5452 }
 0x67f   : > { %v9761_v6 = vadd.f32 %v5423_v60, %v5325_v9 }
 0x680   : > { %5658 = vrot.lane.b32.xlu1 %v9442_v20, %s6837_s24  ;;  %v5331_v20 = vadd.f32 %v9544_v33, %v9671_v14  ;;  %v5324_v33 = vadd.f32 %v9436_v27, %v9557_v44  ;;  %v5328_v14 = vadd.f32 %v9452_v49, %v9572_v22  ;;  %v5332_v49 = vadd.f32 %v9470_v16, %v9597_v34 }
 0x681   : > { %v5336_v22 = vadd.f32 %v9488_v26, %v9623_v2 }
 0x682   : > { %v5427_v39 = vpop.permute.xlu1 %5426  ;;  %v9767_v35 = vpop.permute.xlu0 %5456 }
 0x683   : > { %v9769_v61 = vadd.f32 %v5427_v39, %v5327_v58 }
 0x684   : > { %5666 = vrot.lane.b32.xlu1 %v9458_v0, %s6837_s24  ;;  %v5333_v0 = vadd.f32 %v9559_v17, %v9678_v52  ;;  %v5337_v17 = vadd.f32 %v9574_v43, %v9694_v55  ;;  %v5516_v52 = vadd.f32 %v5421_v8, %v5324_v33  ;;  %v5341_v43 = vadd.f32 %v9599_v51, %v9710_v40 }
 0x685   : > { %v5524_v55 = vadd.f32 %v5437_v47, %v5332_v49  ;;  %v5528_v8 = vadd.f32 %v5445_v13, %v5336_v22  ;;  %v10548_v13 = vld [vmem:[#allocation14_spill] sm:$0xff]  ;;  %v5344_v47 = vadd.f32 %v9613_v50, %v9663_v5 }
 0x686   : > { %v5431_v42 = vpop.permute.xlu1 %5430  ;;  %v5461_v15 = vpop.permute.xlu0 %5460  ;;  %v5340_v40 = vadd.f32 %v10548_v13, %v9643_v62  ;;  %v5348_v62 = vadd.f32 %v9625_v23, %v9680_v29  ;;  %v10551_v29 = vld [vmem:[#allocation26_spill] sm:$0xff] }
 0x687   : > { %v9775_v60 = vadd.f32 %v5431_v42, %v5329_v46 }
 0x688   : > { %5674 = vrot.lane.b32.xlu1 %v9478_v32, %s6837_s24 }
 0x68a   : > { %v5435_v54 = vpop.permute.xlu1 %5434  ;;  %v5469_v38 = vpop.permute.xlu0 %5468 }
 0x68b   : > { %v9781_v9 = vadd.f32 %v5435_v54, %v5331_v20  ;;  %v5520_v20 = vadd.f32 %v5429_v63, %v5328_v14  ;;  %v5343_v14 = vadd.f32 %v9645_v57, %v9718_v41  ;;  %v5540_v50 = vadd.f32 %v5469_v38, %v5348_v62  ;;  %v10552_v38 = vld [vmem:[#allocation18_spill] sm:$0xff] }
 0x68d   : > { %10546 = vst [vmem:[#allocation59_spill] sm:$0xff] %v9781_v9 }
 0x68e   : > { %v5439_v58 = vpop.permute.xlu1 %5438  ;;  %v5477_v39 = vpop.permute.xlu0 %5476 }
 0x68f   : > { %v9785_v59 = vadd.f32 %v5439_v58, %v5333_v0  ;;  %v5544_v5 = vadd.f32 %v5477_v39, %v9696_v12  ;;  %v5330_v12 = vadd.f32 %v10552_v38, %v10551_v29 }
 0x692   : > { %v5443_v46 = vpop.permute.xlu1 %5442  ;;  %v5613_v42 = vpop.permute.xlu0 %5612 }
 0x693   : > { %v9789_v32 = vadd.f32 %v5443_v46, %v5335_v19  ;;  %v5708_v56 = vadd.f32 %v5613_v42, %v5516_v52  ;;  %v5339_v19 = vadd.f32 %v9582_v18, %v9702_v1  ;;  %v5536_v52 = vadd.f32 %v5461_v15, %v5344_v47 }
 0x695   : > { %10547 = vst [vmem:[#allocation43_spill] sm:$0xff] %v9789_v32 }
 0x696   : > { %v5447_v54 = vpop.permute.xlu1 %5446  ;;  %v5621_v0 = vpop.permute.xlu0 %5620 }
 0x697   : > { %v9797_v58 = vadd.f32 %v5447_v54, %v5337_v17  ;;  %v5712_v48 = vadd.f32 %v5621_v0, %v5520_v20  ;;  %v5532_v17 = vadd.f32 %v5453_v37, %v5340_v40 }
 0x699   : > { %v5740_v46 = vcombine.low %v5708_v56, %v5712_v48  ;;  %v5741_v32 = vcombine.high %v5708_v56, %v5712_v48 }
 0x69a   : > { %v5451_v27 = vpop.permute.xlu1 %5450  ;;  %v5629_v44 = vpop.permute.xlu0 %5628 }
 0x69b   : > { %v9801_v9 = vadd.f32 %v5451_v27, %v5339_v19  ;;  %v9811_v1 = vadd.f32 %v5629_v44, %v5524_v55  ;;  %v10549_v55 = vld [vmem:[#allocation58_spill] sm:$0xff] }
 0x69e   : > { %v5455_v63 = vpop.permute.xlu1 %5454  ;;  %v5637_v42 = vpop.permute.xlu0 %5636 }
 0x69f   : > { %v9809_v18 = vadd.f32 %v5455_v63, %v5341_v43  ;;  %v9813_v33 = vadd.f32 %v5637_v42, %v5528_v8  ;;  %v10550_v8 = vld [vmem:[#allocation47_spill] sm:$0xff]  ;;  %v5522_v42 = vadd.f32 %v9735_v10, %v5330_v12 }
 0x6a0   : > { %v5326_v23 = vadd.f32 %v10550_v8, %v10549_v55 }
 0x6a1   : > { %v5772_v34 = vcombine.low %v9811_v1, %v9813_v33  ;;  %v5773_v16 = vcombine.high %v9811_v1, %v9813_v33 }
 0x6a2   : > { %v5459_v26 = vpop.permute.xlu1 %5458  ;;  %v5645_v51 = vpop.permute.xlu0 %5644  ;;  %v5518_v63 = vadd.f32 %v9720_v11, %v5326_v23  ;;  %v10554_v11 = vld [vmem:[#allocation16_spill] sm:$0xff] }
 0x6a3   : > { %v9821_v2 = vadd.f32 %v5459_v26, %v5343_v14  ;;  %v9827_v41 = vadd.f32 %v5645_v51, %v5532_v17  ;;  %v5334_v10 = vadd.f32 %v10554_v11, %v9611_v30  ;;  %v10557_v30 = vld [vmem:[#allocation54_spill] sm:$0xff] }
 0x6a6   : > { %v5465_v20 = vpop.permute.xlu1 %5464  ;;  %v5653_v57 = vpop.permute.xlu0 %5652 }
 0x6a7   : > { %v9829_v54 = vadd.f32 %v5653_v57, %v5536_v52  ;;  %v10553_v52 = vld [vmem:[#allocation74_spill] sm:$0xff] }
 0x6a8   : > { %v5748_v57 = vrot.slane %v5740_v46, %v10553_v52  ;;  %v5526_v46 = vadd.f32 %v9745_v53, %v5334_v10 }
 0x6a9   : > { %v5876_v0 = vcombine.low %v9827_v41, %v9829_v54  ;;  %v5877_v56 = vcombine.high %v9827_v41, %v9829_v54 }
 0x6aa   : > { %v5473_v48 = vpop.permute.xlu1 %5472  ;;  %v5661_v19 = vpop.permute.xlu0 %5660 }
 0x6ab   : > { %v9840_v27 = vadd.f32 %v5661_v19, %v5540_v50  ;;  %v5755_v19 = vrot.slane %v5741_v32, %v10553_v52 }
 0x6ae   : > { %v9838_v37 = vpop.permute.xlu1 %5480  ;;  %v5669_v15 = vpop.permute.xlu0 %5668 }
 0x6af   : > { %v9842_v44 = vadd.f32 %v5669_v15, %v5544_v5  ;;  %v10555_v15 = vld [vmem:[#allocation31_spill] sm:$0xff] }
 0x6b1   : > { %v5908_v49 = vcombine.low %v9840_v27, %v9842_v44  ;;  %v5909_v22 = vcombine.high %v9840_v27, %v9842_v44 }
 0x6b2   : > { %v5617_v43 = vpop.permute.xlu1 %5616  ;;  %v9852_v39 = vpop.permute.xlu0 %5462 }
 0x6b3   : > { %v5710_v26 = vadd.f32 %v5617_v43, %v5518_v63  ;;  %v5338_v43 = vadd.f32 %v10555_v15, %v9634_v4  ;;  %v10558_v4 = vld [vmem:[#allocation28_spill] sm:$0xff]  ;;  %v10559_v15 = vld [vmem:[#allocation19_spill] sm:$0xff] }
 0x6b5   : > { %v5530_v32 = vadd.f32 %v9755_v45, %v5338_v43 }
 0x6b6   : > { %v5625_v14 = vpop.permute.xlu1 %5624  ;;  %v9856_v51 = vpop.permute.xlu0 %5470 }
 0x6b7   : > { %v5714_v13 = vadd.f32 %v5625_v14, %v5522_v42  ;;  %v10556_v14 = vld [vmem:[#allocation37_spill] sm:$0xff] }
 0x6b9   : > { %v5756_v40 = vcombine.low %v5710_v26, %v5714_v13  ;;  %v5757_v47 = vcombine.high %v5710_v26, %v5714_v13  ;;  %v5342_v26 = vadd.f32 %v10556_v14, %v9653_v3  ;;  %v5346_v13 = vadd.f32 %v10557_v30, %v9673_v36 }
 0x6ba   : > { %v5633_v17 = vpop.permute.xlu1 %5632  ;;  %v9862_v5 = vpop.permute.xlu0 %5478  ;;  %v5787_v3 = vrot.slane %v5773_v16, %v10553_v52 }
 0x6bb   : > { %v5764_v62 = vrot.slane %v5756_v40, %v10553_v52  ;;  %v5771_v50 = vrot.slane %v5757_v47, %v10553_v52  ;;  %v5718_v63 = vadd.f32 %v5633_v17, %v5526_v46  ;;  %v5162_v40 = vld [vmem:[#allocation2 + $0x19a] sm:$0xff]  ;;  %v5350_v47 = vadd.f32 %v10558_v4, %v9688_v21 }
 0x6bc   : > { %v5534_v45 = vadd.f32 %v9767_v35, %v5342_v26  ;;  %v5780_v17 = vrot.slane %v5772_v34, %v10553_v52  ;;  %v5538_v36 = vadd.f32 %v5465_v20, %v5346_v13  ;;  %v9892_v35 = vrot.slane %v5876_v0, %v10553_v52 }
 0x6bd   : > { %v5804_v55 = vcombine.low %v5748_v57, %v5764_v62  ;;  %v5805_v8 = vcombine.high %v5748_v57, %v5764_v62  ;;  %v5820_v23 = vcombine.low %v5755_v19, %v5771_v50  ;;  %v5821_v29 = vcombine.high %v5755_v19, %v5771_v50 }
 0x6be   : > { %v5641_v38 = vpop.permute.xlu1 %5640  ;;  %v5615_v12 = vpop.permute.xlu0 %5614  ;;  %v5354_v57 = vadd.f32 %v9704_v24, %v5162_v40  ;;  %v5542_v21 = vadd.f32 %v5473_v48, %v5350_v47 }
 0x6bf   : > { %v5722_v42 = vadd.f32 %v5641_v38, %v5530_v32  ;;  %v9895_v34 = vrot.slane %v5804_v55, %v10559_v15  ;;  %v5819_v43 = vrot.slane %v5805_v8, %v10559_v15  ;;  %v9899_v1 = vadd.f32 %v5615_v12, %v9761_v6 }
 0x6c0   : > { %v9922_v14 = vrot.slane %v5820_v23, %v10559_v15  ;;  %v9925_v26 = vrot.slane %v5821_v29, %v10559_v15 }
 0x6c1   : > { %v5788_v19 = vcombine.low %v5718_v63, %v5722_v42  ;;  %v5789_v53 = vcombine.high %v5718_v63, %v5722_v42  ;;  %v9919_v42 = vrot.slane %v5877_v56, %v10553_v52 }
 0x6c2   : > { %v5649_v62 = vpop.permute.xlu1 %5648  ;;  %v5623_v50 = vpop.permute.xlu0 %5622 }
 0x6c3   : > { %v5796_v24 = vrot.slane %v5788_v19, %v10553_v52  ;;  %v5803_v11 = vrot.slane %v5789_v53, %v10553_v52  ;;  %v9889_v10 = vadd.f32 %v5623_v50, %v9775_v60  ;;  %v5726_v32 = vadd.f32 %v5649_v62, %v5534_v45 }
 0x6c5   : > { %v5836_v33 = vcombine.low %v5780_v17, %v5796_v24  ;;  %v5837_v16 = vcombine.high %v5780_v17, %v5796_v24  ;;  %v5852_v20 = vcombine.low %v5787_v3, %v5803_v11  ;;  %v5853_v48 = vcombine.high %v5787_v3, %v5803_v11 }
 0x6c6   : > { %v5657_v46 = vpop.permute.xlu1 %5656  ;;  %v6012_v60 = vcombine.low %v9899_v1, %v9889_v10  ;;  %v6013_v0 = vcombine.high %v9899_v1, %v9889_v10  ;;  %v5631_v38 = vpop.permute.xlu0 %5630  ;;  %v5546_v17 = vadd.f32 %v9838_v37, %v5354_v57 }
 0x6c7   : > { %v5730_v55 = vadd.f32 %v5657_v46, %v5538_v36  ;;  %v9906_v63 = vrot.slane %v5836_v33, %v10559_v15  ;;  %v5851_v6 = vrot.slane %v5837_v16, %v10559_v15  ;;  %v9910_v8 = vrot.slane %v5852_v20, %v10559_v15 }
 0x6c8   : > { %v9913_v12 = vrot.slane %v5853_v48, %v10559_v15  ;;  %v9930_v53 = vadd.f32 %v5631_v38, %v9785_v59  ;;  %v5916_v38 = vrot.slane %v5908_v49, %v10553_v52 }
 0x6c9   : > { %v5892_v30 = vcombine.low %v5726_v32, %v5730_v55  ;;  %v5893_v13 = vcombine.high %v5726_v32, %v5730_v55  ;;  %v5869_v4 = vcombine.high %v9895_v34, %v9906_v63  ;;  %v5870_v47 = vcombine.low %v5819_v43, %v5851_v6 }
 0x6ca   : > { %v5665_v40 = vpop.permute.xlu1 %5664  ;;  %v5871_v19 = vcombine.high %v5819_v43, %v5851_v6  ;;  %v5639_v54 = vpop.permute.xlu0 %5638  ;;  %v5872_v56 = vcombine.low %v9922_v14, %v9910_v8  ;;  %v5873_v23 = vcombine.high %v9922_v14, %v9910_v8  ;;  %v5874_v59 = vcombine.low %v9925_v26, %v9913_v12  ;;  %v10560_v6 = vld [vmem:[#allocation25_spill] sm:$0xff] }
 0x6cb   : > { %v5900_v41 = vrot.slane %v5892_v30, %v10553_v52  ;;  %v5907_v29 = vrot.slane %v5893_v13, %v10553_v52  ;;  %v9939_v62 = vadd.f32 %v5639_v54, %v9797_v58  ;;  %6286 = vrot.lane.b32.xlu0 %v5869_v4, %s6846_s4  ;;  %v5875_v45 = vcombine.high %v9925_v26, %v9913_v12 }
 0x6cc   : > { %v5868_v50 = vcombine.low %v9895_v34, %v9906_v63  ;;  %v5734_v16 = vadd.f32 %v5665_v40, %v5542_v21  ;;  %v5923_v21 = vrot.slane %v5909_v22, %v10553_v52 }
 0x6cd   : > { %v5940_v3 = vcombine.low %v9892_v35, %v5900_v41  ;;  %v5941_v36 = vcombine.high %v9892_v35, %v5900_v41  ;;  %v5956_v58 = vcombine.low %v9919_v42, %v5907_v29  ;;  %v5957_v24 = vcombine.high %v9919_v42, %v5907_v29 }
 0x6ce   : > { %v6044_v11 = vcombine.low %v9930_v53, %v9939_v62  ;;  %v6045_v43 = vcombine.high %v9930_v53, %v9939_v62  ;;  %v5673_v33 = vpop.permute.xlu1 %5672  ;;  %v5647_v37 = vpop.permute.xlu0 %5646  ;;  %v5345_v35 = vadd.f32 %v9712_v25, %v9728_v7 }
 0x6cf   : > { %v5738_v57 = vadd.f32 %v5673_v33, %v5546_v17  ;;  %6294 = vrot.lane.b32.xlu0 %v5870_v47, %s6847_s5  ;;  %v9976_v42 = vrot.slane %v5940_v3, %v10559_v15  ;;  %v9979_v30 = vadd.f32 %v5647_v37, %v9809_v18  ;;  %v5955_v40 = vrot.slane %v5941_v36, %v10559_v15 }
 0x6d0   : > { %v5537_v46 = vadd.f32 %v9852_v39, %v5345_v35  ;;  %v5349_v39 = vadd.f32 %v10560_v6, %v9739_v31  ;;  %v5964_v4 = vrot.slane %v5956_v58, %v10559_v15  ;;  %v5545_v36 = vadd.f32 %v9862_v5, %v9749_v28 }
 0x6d1   : > { %v5924_v20 = vcombine.low %v5734_v16, %v5738_v57  ;;  %v5925_v48 = vcombine.high %v5734_v16, %v5738_v57  ;;  %v10004_v58 = vrot.slane %v5957_v24, %v10559_v15 }
 0x6d2   : > { %v9961_v32 = vpop.permute.xlu1 %5466  ;;  %v5655_v55 = vpop.permute.xlu0 %5654  ;;  %v5541_v3 = vadd.f32 %v9856_v51, %v5349_v39 }
 0x6d3   : > { %v5932_v25 = vrot.slane %v5924_v20, %v10553_v52  ;;  %v5939_v7 = vrot.slane %v5925_v48, %v10553_v52  ;;  %v9981_v49 = vadd.f32 %v5655_v55, %v5537_v46  ;;  %6302 = vrot.lane.b32.xlu0 %v5871_v19, %s6848_s6  ;;  %v10561_v55 = vld [vmem:[#allocation59_spill] sm:$0xff] }
 0x6d5   : > { %v5972_v27 = vcombine.low %v5916_v38, %v5932_v25  ;;  %v5973_v44 = vcombine.high %v5916_v38, %v5932_v25  ;;  %v5988_v22 = vcombine.low %v5923_v21, %v5939_v7  ;;  %v5989_v13 = vcombine.high %v5923_v21, %v5939_v7 }
 0x6d6   : > { %v6148_v31 = vcombine.low %v9979_v30, %v9981_v49  ;;  %v6149_v47 = vcombine.high %v9979_v30, %v9981_v49  ;;  %v9990_v18 = vpop.permute.xlu1 %5474  ;;  %v5663_v17 = vpop.permute.xlu0 %5662 }
 0x6d7   : > { %v9993_v41 = vrot.slane %v5972_v27, %v10559_v15  ;;  %v5987_v19 = vrot.slane %v5973_v44, %v10559_v15  ;;  %v5996_v54 = vrot.slane %v5988_v22, %v10559_v15  ;;  %v9998_v29 = vrot.slane %v5989_v13, %v10559_v15  ;;  %6310 = vrot.lane.b32.xlu0 %v5872_v56, %s6850_s8  ;;  %v10562_v13 = vld [vmem:[#allocation43_spill] sm:$0xff] }
 0x6d8   : > { %v10018_v56 = vadd.f32 %v5663_v17, %v5541_v3  ;;  %v6059_v17 = vrot.slane %v6045_v43, %v10553_v52 }
 0x6d9   : > { %v6005_v33 = vcombine.high %v9976_v42, %v9993_v41  ;;  %v6006_v16 = vcombine.low %v5955_v40, %v5987_v19  ;;  %v6007_v37 = vcombine.high %v5955_v40, %v5987_v19  ;;  %v6008_v57 = vcombine.low %v5964_v4, %v5996_v54  ;;  %v10564_v19 = vld [vmem:[#allocation9_spill] sm:$0xff] }
 0x6da   : > { %v10009_v35 = vpop.permute.xlu1 %5482  ;;  %v6009_v20 = vcombine.high %v5964_v4, %v5996_v54  ;;  %v6010_v51 = vcombine.low %v10004_v58, %v9998_v29  ;;  %v6011_v28 = vcombine.high %v10004_v58, %v9998_v29  ;;  %v6004_v5 = vcombine.low %v9976_v42, %v9993_v41  ;;  %v5671_v24 = vpop.permute.xlu0 %5670  ;;  %v10566_v58 = vld [vmem:[#allocation6_spill] sm:$0xff] }
 0x6db   : > { %6288 = vrot.lane.b32.xlu1 %v6005_v33, %s6846_s4  ;;  %v10020_v48 = vadd.f32 %v5671_v24, %v5545_v36  ;;  %6318 = vrot.lane.b32.xlu0 %v5873_v23, %s6851_s9  ;;  %v6052_v29 = vrot.slane %v6044_v11, %v10553_v52  ;;  %v10565_v36 = vld [vmem:[#allocation21_spill] sm:$0xff] }
 0x6dc   : > { %v5351_v33 = vadd.f32 %v10566_v58, %v10565_v36 }
 0x6dd   : > { %v6180_v46 = vcombine.low %v10018_v56, %v10020_v48  ;;  %v6181_v38 = vcombine.high %v10018_v56, %v10020_v48 }
 0x6de   : > { %v5619_v21 = vpop.permute.xlu1 %5618  ;;  %v5543_v30 = vadd.f32 %v9990_v18, %v5351_v33 }
 0x6df   : > { %6296 = vrot.lane.b32.xlu1 %v6006_v16, %s6847_s5  ;;  %6326 = vrot.lane.b32.xlu0 %v5874_v59, %s6837_s24  ;;  %v5711_v7 = vadd.f32 %v5619_v21, %v9769_v61  ;;  %v6020_v59 = vrot.slane %v6012_v60, %v10553_v52  ;;  %v6027_v61 = vrot.slane %v6013_v0, %v10553_v52  ;;  %v10563_v0 = vld [vmem:[#allocation63_spill] sm:$0xff] }
 0x6e0   : > { %v5347_v54 = vadd.f32 %v10564_v19, %v10563_v0  ;;  %v6156_v16 = vrot.slane %v6148_v31, %v10553_v52 }
 0x6e2   : > { %v5627_v25 = vpop.permute.xlu1 %5626 }
 0x6e3   : > { %v5715_v8 = vadd.f32 %v5627_v25, %v10561_v55  ;;  %6304 = vrot.lane.b32.xlu1 %v6007_v37, %s6848_s6  ;;  %6334 = vrot.lane.b32.xlu0 %v5875_v45, %s6853_s11  ;;  %v5539_v37 = vadd.f32 %v9961_v32, %v5347_v54 }
 0x6e5   : > { %v6028_v14 = vcombine.low %v5711_v7, %v5715_v8  ;;  %v6029_v23 = vcombine.high %v5711_v7, %v5715_v8 }
 0x6e6   : > { %v5635_v6 = vpop.permute.xlu1 %5634 }
 0x6e7   : > { %v6036_v39 = vrot.slane %v6028_v14, %v10553_v52  ;;  %v6043_v27 = vrot.slane %v6029_v23, %v10553_v52  ;;  %6312 = vrot.lane.b32.xlu1 %v6008_v57, %s6850_s8  ;;  %v5719_v60 = vadd.f32 %v5635_v6, %v10562_v13 }
 0x6e9   : > { %v6076_v12 = vcombine.low %v6020_v59, %v6036_v39  ;;  %v6077_v26 = vcombine.high %v6020_v59, %v6036_v39  ;;  %v6092_v45 = vcombine.low %v6027_v61, %v6043_v27  ;;  %v6093_v44 = vcombine.high %v6027_v61, %v6043_v27  ;;  %v5163_v39 = vld [vmem:[#allocation2 + $0x1a2] sm:$0xff] }
 0x6ea   : > { %v5643_v22 = vpop.permute.xlu1 %5642  ;;  %v6163_v27 = vrot.slane %v6149_v47, %v10553_v52 }
 0x6eb   : > { %6320 = vrot.lane.b32.xlu1 %v6009_v20, %s6851_s9  ;;  %v5723_v40 = vadd.f32 %v5643_v22, %v9801_v9  ;;  %v6084_v21 = vrot.slane %v6076_v12, %v10559_v15  ;;  %v6091_v53 = vrot.slane %v6077_v26, %v10559_v15  ;;  %v6100_v55 = vrot.slane %v6092_v45, %v10559_v15  ;;  %v10567_v22 = vld [vmem:[#allocation12_spill] sm:$0xff] }
 0x6ec   : > { %v6107_v8 = vrot.slane %v6093_v44, %v10559_v15  ;;  %v5355_v44 = vadd.f32 %v10567_v22, %v5163_v39 }
 0x6ed   : > { %v6060_v4 = vcombine.low %v5719_v60, %v5723_v40  ;;  %v6061_v10 = vcombine.high %v5719_v60, %v5723_v40 }
 0x6ee   : > { %v5651_v1 = vpop.permute.xlu1 %5650  ;;  %v5547_v49 = vadd.f32 %v10009_v35, %v5355_v44 }
 0x6ef   : > { %6328 = vrot.lane.b32.xlu1 %v6010_v51, %s6837_s24  ;;  %v6068_v9 = vrot.slane %v6060_v4, %v10553_v52  ;;  %v6075_v3 = vrot.slane %v6061_v10, %v10553_v52  ;;  %v5727_v62 = vadd.f32 %v5651_v1, %v9821_v2 }
 0x6f1   : > { %v6108_v57 = vcombine.low %v6052_v29, %v6068_v9  ;;  %v6109_v20 = vcombine.high %v6052_v29, %v6068_v9  ;;  %v6124_v51 = vcombine.low %v6059_v17, %v6075_v3  ;;  %v6125_v11 = vcombine.high %v6059_v17, %v6075_v3 }
 0x6f2   : > { %v5659_v24 = vpop.permute.xlu1 %5658  ;;  %v6188_v9 = vrot.slane %v6180_v46, %v10553_v52  ;;  %v6195_v3 = vrot.slane %v6181_v38, %v10553_v52 }
 0x6f3   : > { %v5731_v43 = vadd.f32 %v5659_v24, %v5539_v37  ;;  %6336 = vrot.lane.b32.xlu1 %v6011_v28, %s6853_s11  ;;  %v6116_v25 = vrot.slane %v6108_v57, %v10559_v15  ;;  %v6123_v31 = vrot.slane %v6109_v20, %v10559_v15  ;;  %v6132_v32 = vrot.slane %v6124_v51, %v10559_v15 }
 0x6f4   : > { %v10081_v7 = vrot.slane %v6125_v11, %v10559_v15 }
 0x6f5   : > { %v6164_v14 = vcombine.low %v5727_v62, %v5731_v43  ;;  %v6165_v23 = vcombine.high %v5727_v62, %v5731_v43  ;;  %v6140_v2 = vcombine.low %v6084_v21, %v6116_v25  ;;  %v6141_v59 = vcombine.high %v6084_v21, %v6116_v25 }
 0x6f6   : > { %v5667_v6 = vpop.permute.xlu1 %5666  ;;  %v6142_v61 = vcombine.low %v6091_v53, %v6123_v31  ;;  %v6143_v28 = vcombine.high %v6091_v53, %v6123_v31  ;;  %v6144_v45 = vcombine.low %v6100_v55, %v6132_v32  ;;  %v6145_v13 = vcombine.high %v6100_v55, %v6132_v32 }
 0x6f7   : > { %v6172_v12 = vrot.slane %v6164_v14, %v10553_v52  ;;  %v6179_v26 = vrot.slane %v6165_v23, %v10553_v52  ;;  %6342 = vrot.lane.b32.xlu0 %v6140_v2, %s6839_s26  ;;  %v6146_v60 = vcombine.low %v6107_v8, %v10081_v7  ;;  %v6147_v40 = vcombine.high %v6107_v8, %v10081_v7 }
 0x6f8   : > { %v5735_v19 = vadd.f32 %v5667_v6, %v5543_v30 }
 0x6f9   : > { %v6212_v4 = vcombine.low %v6156_v16, %v6172_v12  ;;  %v6213_v10 = vcombine.high %v6156_v16, %v6172_v12  ;;  %v6228_v1 = vcombine.low %v6163_v27, %v6179_v26  ;;  %v6229_v0 = vcombine.high %v6163_v27, %v6179_v26 }
 0x6fa   : > { %v5675_v47 = vpop.permute.xlu1 %5674 }
 0x6fb   : > { %v5739_v54 = vadd.f32 %v5675_v47, %v5547_v49  ;;  %6350 = vrot.lane.b32.xlu0 %v6141_v59, %s6844_s29  ;;  %v6220_v37 = vrot.slane %v6212_v4, %v10559_v15  ;;  %v6227_v57 = vrot.slane %v6213_v10, %v10559_v15  ;;  %v6243_v38 = vrot.slane %v6229_v0, %v10559_v15 }
 0x6fd   : > { %v6196_v29 = vcombine.low %v5735_v19, %v5739_v54  ;;  %v6197_v17 = vcombine.high %v5735_v19, %v5739_v54 }
 0x6ff   : > { %v6204_v18 = vrot.slane %v6196_v29, %v10553_v52  ;;  %v6211_v35 = vrot.slane %v6197_v17, %v10553_v52  ;;  %6358 = vrot.lane.b32.xlu0 %v6142_v61, %s6845_s30  ;;  %v6236_v52 = vrot.slane %v6228_v1, %v10559_v15 }
 0x701   : > { %v6244_v36 = vcombine.low %v6188_v9, %v6204_v18  ;;  %v6245_v58 = vcombine.high %v6188_v9, %v6204_v18  ;;  %v6260_v33 = vcombine.low %v6195_v3, %v6211_v35  ;;  %v6261_v16 = vcombine.high %v6195_v3, %v6211_v35 }
 0x703   : > { %v6252_v46 = vrot.slane %v6244_v36, %v10559_v15  ;;  %v6259_v20 = vrot.slane %v6245_v58, %v10559_v15  ;;  %v6268_v56 = vrot.slane %v6260_v33, %v10559_v15  ;;  %v6275_v48 = vrot.slane %v6261_v16, %v10559_v15  ;;  %6366 = vrot.lane.b32.xlu0 %v6143_v28, %s6840_s27  ;;  %v6812_v36 = vld [vmem:[%s10182_s2] ss:$0 sm:$0xff] }
 0x705   : > { %v6276_v51 = vcombine.low %v6220_v37, %v6252_v46  ;;  %v6277_v11 = vcombine.high %v6220_v37, %v6252_v46  ;;  %v6278_v24 = vcombine.low %v6227_v57, %v6259_v20  ;;  %v6279_v21 = vcombine.high %v6227_v57, %v6259_v20 }
 0x706   : > { %v6280_v53 = vcombine.low %v6236_v52, %v6268_v56  ;;  %v6281_v62 = vcombine.high %v6236_v52, %v6268_v56  ;;  %v6282_v43 = vcombine.low %v6243_v38, %v6275_v48  ;;  %v6283_v25 = vcombine.high %v6243_v38, %v6275_v48 }
 0x707   : > { %6374 = vrot.lane.b32.xlu0 %v6144_v45, %s6843_s28  ;;  %6344 = vrot.lane.b32.xlu1 %v6276_v51, %s6839_s26 }
 0x70b   : > { %6382 = vrot.lane.b32.xlu0 %v6145_v13, %s6849_s7  ;;  %6352 = vrot.lane.b32.xlu1 %v6277_v11, %s6844_s29 }
 0x70f   : > { %6390 = vrot.lane.b32.xlu0 %v6146_v60, %s6838_s25  ;;  %6360 = vrot.lane.b32.xlu1 %v6278_v24, %s6845_s30 }
 0x713   : > { %6398 = vrot.lane.b32.xlu0 %v6147_v40, %s6852_s10  ;;  %6368 = vrot.lane.b32.xlu1 %v6279_v21, %s6840_s27 }
 0x717   : > { %6376 = vrot.lane.b32.xlu1 %v6280_v53, %s6843_s28 }
 0x71b   : > { %6384 = vrot.lane.b32.xlu1 %v6281_v62, %s6849_s7 }
 0x71f   : > { %6392 = vrot.lane.b32.xlu1 %v6282_v43, %s6838_s25 }
 0x723   : > { %6400 = vrot.lane.b32.xlu1 %v6283_v25, %s6852_s10 }
 0x73d   : > { %v6287_v15 = vpop.permute.xlu0 %6286 }
 0x73e   : > { %v6404_v22 = vsel %vm2209_vm1, %v5868_v50, %v6287_v15 }
 0x741   : > { %v6295_v31 = vpop.permute.xlu0 %6294 }
 0x742   : > { %v6406_v44 = vsel %vm255_vm0, %v6404_v22, %v6295_v31 }
 0x745   : > { %v6303_v32 = vpop.permute.xlu0 %6302 }
 0x746   : > { %v6408_v40 = vsel %vm2214_vm2, %v6406_v44, %v6303_v32 }
 0x749   : > { %v6311_v55 = vpop.permute.xlu0 %6310 }
 0x74a   : > { %v6410_v4 = vsel %vm2217_vm3, %v6408_v40, %v6311_v55 }
 0x74d   : > { %v6289_v7 = vpop.permute.xlu1 %6288  ;;  %v6319_v14 = vpop.permute.xlu0 %6318 }
 0x74e   : > { %v6412_v10 = vsel %vm2220_vm4, %v6410_v4, %v6319_v14  ;;  %v6405_v33 = vsel %vm2209_vm1, %v6004_v5, %v6289_v7 }
 0x751   : > { %v6297_v8 = vpop.permute.xlu1 %6296  ;;  %v6327_v6 = vpop.permute.xlu0 %6326 }
 0x752   : > { %v6414_v1 = vsel %vm2223_vm5, %v6412_v10, %v6327_v6  ;;  %v6407_v16 = vsel %vm255_vm0, %v6405_v33, %v6297_v8 }
 0x755   : > { %v6305_v23 = vpop.permute.xlu1 %6304  ;;  %v6335_v59 = vpop.permute.xlu0 %6334 }
 0x756   : > { %v6416_v49 = vsel %vm2226_vm6, %v6414_v1, %v6335_v59  ;;  %v6409_v57 = vsel %vm2214_vm2, %v6407_v16, %v6305_v23 }
 0x759   : > { %v6313_v2 = vpop.permute.xlu1 %6312 }
 0x75a   : > { %v6411_v46 = vsel %vm2217_vm3, %v6409_v57, %v6313_v2 }
 0x75d   : > { %v6321_v61 = vpop.permute.xlu1 %6320 }
 0x75e   : > { %v6413_v20 = vsel %vm2220_vm4, %v6411_v46, %v6321_v61 }
 0x761   : > { %v6329_v27 = vpop.permute.xlu1 %6328 }
 0x762   : > { %v6415_v56 = vsel %vm2223_vm5, %v6413_v20, %v6329_v27 }
 0x765   : > { %v6337_v26 = vpop.permute.xlu1 %6336 }
 0x766   : > { %v6417_v52 = vsel %vm2226_vm6, %v6415_v56, %v6337_v26 }
 0x769   : > { %v6343_v28 = vpop.permute.xlu0 %6342 }
 0x76a   : > { %v6418_v34 = vsel %vm2229_vm7, %v6416_v49, %v6343_v28 }
 0x76d   : > { %v6351_v39 = vpop.permute.xlu0 %6350 }
 0x76e   : > { %v6420_v63 = vsel %vm2232_vm8, %v6418_v34, %v6351_v39 }
 0x771   : > { %v6359_v12 = vpop.permute.xlu0 %6358 }
 0x772   : > { %v6422_v50 = vsel %vm2235_vm9, %v6420_v63, %v6359_v12 }
 0x775   : > { %v6367_v45 = vpop.permute.xlu0 %6366 }
 0x776   : > { %v6424_v54 = vsel %vm2238_vm10, %v6422_v50, %v6367_v45 }
 0x779   : > { %v6375_v13 = vpop.permute.xlu0 %6374  ;;  %v6345_v60 = vpop.permute.xlu1 %6344 }
 0x77a   : > { %v6426_v29 = vsel %vm2241_vm11, %v6424_v54, %v6375_v13  ;;  %v6419_v42 = vsel %vm2229_vm7, %v6417_v52, %v6345_v60 }
 0x77d   : > { %v6383_v0 = vpop.permute.xlu0 %6382  ;;  %v6353_v30 = vpop.permute.xlu1 %6352 }
 0x77e   : > { %v6428_v17 = vsel %vm2244_vm12, %v6426_v29, %v6383_v0  ;;  %v6421_v41 = vsel %vm2232_vm8, %v6419_v42, %v6353_v30 }
 0x781   : > { %v6391_v47 = vpop.permute.xlu0 %6390  ;;  %v6361_v19 = vpop.permute.xlu1 %6360 }
 0x782   : > { %v6430_v9 = vsel %vm2247_vm13, %v6428_v17, %v6391_v47  ;;  %v6423_v5 = vsel %vm2235_vm9, %v6421_v41, %v6361_v19 }
 0x785   : > { %v6399_v3 = vpop.permute.xlu0 %6398  ;;  %v6369_v18 = vpop.permute.xlu1 %6368 }
 0x786   : > { %v6432_v35 = vsel %vm2250_vm14, %v6430_v9, %v6399_v3  ;;  %v6425_v51 = vsel %vm2238_vm10, %v6423_v5, %v6369_v18 }
 0x787   : > { %v6434_v58 = vadd.f32 %v6812_v36, %v6432_v35 }
 0x789   : > { %6436 = vst [vmem:[%s8369_s20 + $0x18] sm:$0xff] %v6434_v58  ;;  %v6377_v37 = vpop.permute.xlu1 %6376 }
 0x78a   : > { %v6427_v11 = vsel %vm2241_vm11, %v6425_v51, %v6377_v37 }
 0x78d   : > { %v6385_v48 = vpop.permute.xlu1 %6384 }
 0x78e   : > { %v6429_v24 = vsel %vm2244_vm12, %v6427_v11, %v6385_v48 }
 0x791   : > { %v6393_v38 = vpop.permute.xlu1 %6392 }
 0x792   : > { %v6431_v21 = vsel %vm2247_vm13, %v6429_v24, %v6393_v38 }
 0x795   : > { %v6401_v53 = vpop.permute.xlu1 %6400 }
 0x796   : > { %v6433_v62 = vsel %vm2250_vm14, %v6431_v21, %v6401_v53 }
 0x797   : > { %v6435_v43 = vadd.f32 %v6812_v36, %v6433_v62 }
 0x799   : > { %6437 = vst [vmem:[%s8369_s20 + $0x38] sm:$0xff] %v6435_v43 }
 0x79a PF: > { %s13_s14 = sadd.s32 1, %s6835_s14   ;;  %s10568_s12 = smov %s6831_s13 }
 0x79b   : > { %p10_p5 = scmp.ge.s32.totalorder %s13_s14, 4   ;;  %s10569_s13 = smov %s10571_s15 }
 0x79d   :  { %12 = sbr.rel (!%p10_p5) target bundleno = 2 (0x2), region = 65 }

</bundles_post_ra>
